<compile_context>
chip_gen: v6e
topology: v6e:2x2x1
jax: 0.10.0
libtpu: 0.0.40
codegen_flags: <defaults>
</compile_context>

<pallas_src>
import functools

import jax
import jax.numpy as jnp
from jax import lax
from jax.experimental import pallas as pl
from jax.experimental.pallas import tpu as pltpu

EPS = 1e-5
NEG_INF = -1e30   # only ever applied to f32 scores (bf16 would overflow)


def _round_up(v, m):
    return (v + m - 1) // m * m


def _layernorm(x, g, b):
    x = x.astype(jnp.float32)
    mu = jnp.mean(x, axis=-1, keepdims=True)
    var = jnp.mean((x - mu) ** 2, axis=-1, keepdims=True)
    return (x - mu) * lax.rsqrt(var + EPS) * g + b


# ---------------------------------------------------------------------------
# Fused encoder kernel: grid = (batch_blocks, layers)
#   l == 0            : load batch block + positional embedding into VMEM scratch
#   every l           : one CLIP residual attention block on the resident x
#   l == n_layers - 1 : ln_final + batched EOT-row gather + text projection
# ---------------------------------------------------------------------------
def _text_encoder_kernel(H, Bblk, S, gelu_bf16,
                         eot_ref,                       # scalar prefetch (SMEM)
                         x_ref, pos_ref,
                         ln1_g, ln1_b, wqkv, bqkv, wo, bo,
                         ln2_g, ln2_b, w1, b1, w2, b2,
                         lnf_g, lnf_b, proj,
                         out_ref,
                         xs_ref, attn_ref):             # VMEM scratches
    b = pl.program_id(0)
    l = pl.program_id(1)
    n_layers = pl.num_programs(1)

    D = x_ref.shape[-1]
    Dh = D // H
    N = Bblk * S
    scale = 1.0 / (Dh ** 0.5)
    f32 = jnp.float32
    bf16 = jnp.bfloat16

    # ---- first layer: park x (+ positional embedding) in VMEM scratch ----
    @pl.when(l == 0)
    def _():
        x0 = x_ref[...] + pos_ref[...][None, :, :]          # (Bblk, S, D)
        xs_ref[...] = x0.reshape(N, D)

    x = xs_ref[...]                                         # (N, D) f32 residual stream

    # ---------------- multi-head self-attention ----------------
    xn = _layernorm(x, ln1_g[0], ln1_b[0])
    # Fused lane-dense QKV projection: one (N, D) @ (D, 3D) matmul + one bias add.
    qkv = jnp.dot(xn.astype(bf16), wqkv[0], preferred_element_type=f32) + bqkv[0]

    q_all = (qkv[:, :D] * scale).astype(bf16).reshape(Bblk, S, D)
    k_all = qkv[:, D:2 * D].astype(bf16).reshape(Bblk, S, D)
    v_all = qkv[:, 2 * D:].astype(bf16).reshape(Bblk, S, D)

    rows_i = lax.broadcasted_iota(jnp.int32, (S, S), 0)
    cols_i = lax.broadcasted_iota(jnp.int32, (S, S), 1)
    causal = (cols_i <= rows_i)[None, :, :]                 # (1, S, S)

    for h in range(H):                                      # static unroll over heads
        lo = h * Dh
        qh = q_all[:, :, lo:lo + Dh]                        # (Bblk, S, Dh)
        kh = k_all[:, :, lo:lo + Dh]
        vh = v_all[:, :, lo:lo + Dh]
        s = jnp.einsum('bqd,bkd->bqk', qh, kh, preferred_element_type=f32)
        s = jnp.where(causal, s, NEG_INF)                   # f32 scores, safe fill
        m = jnp.max(s, axis=-1, keepdims=True)
        e = jnp.exp(s - m)
        denom = jnp.sum(e, axis=-1, keepdims=True)
        p = (e * pl.reciprocal(denom, approx=True)).astype(bf16)
        a = jnp.einsum('bqk,bkd->bqd', p, vh, preferred_element_type=f32)
        # write this head's output straight into the concat buffer (no live partials)
        attn_ref[:, lo:lo + Dh] = a.reshape(N, Dh).astype(bf16)

    # single full-K output projection
    x = x + jnp.dot(attn_ref[...], wo[0], preferred_element_type=f32) + bo[0]

    # ---------------- MLP: c_fc -> QuickGELU -> c_proj ----------------
    xn2 = _layernorm(x, ln2_g[0], ln2_b[0])
    h1 = jnp.dot(xn2.astype(bf16), w1[0], preferred_element_type=f32) + b1[0]
    if gelu_bf16:                                           # v6e / v7x: bf16 VPU+EUP
        h1 = h1.astype(bf16)
        h1 = h1 * jax.nn.sigmoid(1.702 * h1)
        x = x + jnp.dot(h1, w2[0], preferred_element_type=f32) + b2[0]
    else:                                                   # v5e: no bf16 VPU/EUP
        h1 = h1 * jax.nn.sigmoid(1.702 * h1)
        x = x + jnp.dot(h1.astype(bf16), w2[0], preferred_element_type=f32) + b2[0]

    xs_ref[...] = x

    # ---- last layer: gather EOT rows, one layernorm, one matmul, one store ----
    @pl.when(l == n_layers - 1)
    def _():
        rows = [xs_ref[pl.ds(j * S + eot_ref[b * Bblk + j], 1), :]
                for j in range(Bblk)]                       # bblk (1, D) dynamic slices
        rows = rows[0] if Bblk == 1 else jnp.concatenate(rows, axis=0)   # (Bblk, D)
        rows = _layernorm(rows, lnf_g[...], lnf_b[...])
        out_ref[...] = jnp.dot(rows.astype(bf16), proj[...],
                               preferred_element_type=f32)   # (Bblk, E) lane-dense store


# ---------------------------------------------------------------------------
# Pack per-layer parameters: stack along a leading L axis; matmul weights bf16.
# wqkv stays packed as (L, D, 3D) (lane-dense, no Dh=64 lane padding).
# ---------------------------------------------------------------------------
def build_encoder_params(params):
    layers = params['layers']
    bf16, f32 = jnp.bfloat16, jnp.float32

    def stack(name, dtype=f32):
        return jnp.stack([lp[name].astype(dtype) for lp in layers], axis=0)

    return {
        'ln1_g': stack('ln1_g'), 'ln1_b': stack('ln1_b'),     # (L, 1, D)
        'wqkv': stack('wqkv', bf16),                          # (L, D, 3D)
        'bqkv': stack('bqkv'),                                # (L, 1, 3D)
        'wo': stack('wo', bf16), 'bo': stack('bo'),           # (L, D, D) / (L, 1, D)
        'ln2_g': stack('ln2_g'), 'ln2_b': stack('ln2_b'),
        'w1': stack('w1', bf16), 'b1': stack('b1'),           # (L, D, 4D) / (L, 1, 4D)
        'w2': stack('w2', bf16), 'b2': stack('b2'),           # (L, 4D, D) / (L, 1, D)
    }


# ---------------------------------------------------------------------------
# Generation-aware sizing helpers.
# ---------------------------------------------------------------------------
def _vmem_cap_bytes():
    try:
        return int(pltpu.get_tpu_info().vmem_capacity_bytes)
    except Exception:
        return 64 * 1024 * 1024            # conservative fallback (v7x per-core)


def _bf16_vpu_ok():
    try:
        kind = jax.devices()[0].device_kind.lower()
    except Exception:
        return False
    return ("v6" in kind) or ("v7" in kind) or ("tpu7" in kind)


def _vmem_need_bytes(bblk, S_pad, D, E):
    N = bblk * S_pad
    need = 2 * (12 * D * D * 2)            # double-buffered per-layer bf16 weights
    need += 2 * (bblk * S_pad * D * 4)     # double-buffered f32 input block
    need += N * D * 4 + N * D * 2          # xs (f32) + attn (bf16) scratches
    need += N * 3 * D * 4 + N * 4 * D * 4  # qkv / h1 f32 transients
    need += D * E * 2 + S_pad * D * 4      # proj + positional embedding
    need += 4 * 1024 * 1024                # headroom (biases, ln params, misc)
    return need


def _pick_bblk(B, S_pad, D, E, budget):
    # Valid bblk values keep the (bblk, E) output block legal:
    # either a single batch block (bblk == B_pad) or bblk % 8 == 0.
    cands = sorted(set([B] + list(range(8, B, 8))))
    target_rows = 640                      # amortize the 24*D^2-byte weight stream
    pick = None
    for c in cands:
        if c * S_pad >= target_rows:
            pick = c
            break
    if pick is None:
        pick = cands[-1]
    while _vmem_need_bytes(pick, S_pad, D, E) > budget:
        smaller = [c for c in cands if c < pick]
        if not smaller:
            break
        pick = smaller[-1]
    return pick


# ---------------------------------------------------------------------------
# TextEncoder.forward equivalent (flag=True path).
# ---------------------------------------------------------------------------
def text_encoder(prompts, tokenized_prompts, params, flag=True, block_batch=None):
    if not flag:
        # TODO(synk): custom prompt-injecting resblocks (flag=False) not available.
        raise NotImplementedError("flag=False custom transformer path not available")

    H = params['num_heads']
    B, S, D = prompts.shape
    E = params['proj'].shape[1]
    L = len(params['layers'])

    S_pad = _round_up(max(S, 8), 8)
    cap = _vmem_cap_bytes()
    if block_batch is None:
        bblk = _pick_bblk(B, S_pad, D, E, budget=int(cap * 0.85))
    else:
        bblk = block_batch
    B_pad = _round_up(B, bblk)

    x = jnp.pad(prompts.astype(jnp.float32),
                ((0, B_pad - B), (0, S_pad - S), (0, 0)))
    pos = jnp.pad(params['pos_emb'].astype(jnp.float32),
                  ((0, S_pad - S), (0, 0)))
    eot = jnp.argmax(tokenized_prompts, axis=-1).astype(jnp.int32)
    eot = jnp.pad(eot, (0, B_pad - B))

    pk = build_encoder_params(params)
    lnf_g = params['lnf_g'].astype(jnp.float32)
    lnf_b = params['lnf_b'].astype(jnp.float32)
    proj = params['proj'].astype(jnp.bfloat16)

    vmem_limit = int(min(cap * 0.9,
                         max(48 * 1024 * 1024,
                             _vmem_need_bytes(bblk, S_pad, D, E) + (8 << 20))))

    grid = (B_pad // bblk, L)

    in_specs = [
        pl.BlockSpec((bblk, S_pad, D), lambda b, l, ids: (b, 0, 0)),     # prompts
        pl.BlockSpec((S_pad, D), lambda b, l, ids: (0, 0)),              # pos_emb
        pl.BlockSpec((1, 1, D), lambda b, l, ids: (l, 0, 0)),            # ln1_g
        pl.BlockSpec((1, 1, D), lambda b, l, ids: (l, 0, 0)),            # ln1_b
        pl.BlockSpec((1, D, 3 * D), lambda b, l, ids: (l, 0, 0)),        # wqkv (fused)
        pl.BlockSpec((1, 1, 3 * D), lambda b, l, ids: (l, 0, 0)),        # bqkv
        pl.BlockSpec((1, D, D), lambda b, l, ids: (l, 0, 0)),            # wo
        pl.BlockSpec((1, 1, D), lambda b, l, ids: (l, 0, 0)),            # bo
        pl.BlockSpec((1, 1, D), lambda b, l, ids: (l, 0, 0)),            # ln2_g
        pl.BlockSpec((1, 1, D), lambda b, l, ids: (l, 0, 0)),            # ln2_b
        pl.BlockSpec((1, D, 4 * D), lambda b, l, ids: (l, 0, 0)),        # w1
        pl.BlockSpec((1, 1, 4 * D), lambda b, l, ids: (l, 0, 0)),        # b1
        pl.BlockSpec((1, 4 * D, D), lambda b, l, ids: (l, 0, 0)),        # w2
        pl.BlockSpec((1, 1, D), lambda b, l, ids: (l, 0, 0)),            # b2
        pl.BlockSpec((1, D), lambda b, l, ids: (0, 0)),                  # lnf_g
        pl.BlockSpec((1, D), lambda b, l, ids: (0, 0)),                  # lnf_b
        pl.BlockSpec((D, E), lambda b, l, ids: (0, 0)),                  # proj
    ]
    out_spec = pl.BlockSpec((bblk, E), lambda b, l, ids: (b, 0))

    out = pl.pallas_call(
        functools.partial(_text_encoder_kernel, H, bblk, S_pad, _bf16_vpu_ok()),
        grid_spec=pltpu.PrefetchScalarGridSpec(
            num_scalar_prefetch=1,
            grid=grid,
            in_specs=in_specs,
            out_specs=out_spec,
            scratch_shapes=[pltpu.VMEM((bblk * S_pad, D), jnp.float32),    # residual x
                            pltpu.VMEM((bblk * S_pad, D), jnp.bfloat16)],  # attn concat
        ),
        out_shape=jax.ShapeDtypeStruct((B_pad, E), jnp.float32),
        compiler_params=pltpu.CompilerParams(
            dimension_semantics=("parallel", "arbitrary"),
            vmem_limit_bytes=vmem_limit,
        ),
    )(eot, x, pos,
      pk['ln1_g'], pk['ln1_b'], pk['wqkv'], pk['bqkv'], pk['wo'], pk['bo'],
      pk['ln2_g'], pk['ln2_b'], pk['w1'], pk['b1'], pk['w2'], pk['b2'],
      lnf_g, lnf_b, proj)

    return out[:B]


# ---------------------------------------------------------------------------
# Pure-JAX reference (same bf16 matmul / f32 accumulate precision choices).
# ---------------------------------------------------------------------------
def _reference(prompts, tokenized, params):
    f32, bf16 = jnp.float32, jnp.bfloat16
    H = params['num_heads']
    x = prompts.astype(f32) + params['pos_emb'][None]
    B, S, D = x.shape
    Dh = D // H
    scale = 1.0 / (Dh ** 0.5)
    causal = jnp.tril(jnp.ones((S, S), dtype=bool))
    for lp in params['layers']:
        xn = _layernorm(x, lp['ln1_g'], lp['ln1_b'])
        qkv = jnp.dot(xn.astype(bf16), lp['wqkv'].astype(bf16),
                      preferred_element_type=f32) + lp['bqkv']
        q, k, v = jnp.split(qkv, 3, axis=-1)
        q = (q * scale).reshape(B, S, H, Dh).transpose(0, 2, 1, 3).astype(bf16)
        k = k.reshape(B, S, H, Dh).transpose(0, 2, 1, 3).astype(bf16)
        v = v.reshape(B, S, H, Dh).transpose(0, 2, 1, 3).astype(bf16)
        s = jnp.einsum('bhqd,bhkd->bhqk', q, k, preferred_element_type=f32)
        s = jnp.where(causal[None, None], s, NEG_INF)
        p = jax.nn.softmax(s, axis=-1).astype(bf16)
        a = jnp.einsum('bhqk,bhkd->bhqd', p, v, preferred_element_type=f32)
        a = a.transpose(0, 2, 1, 3).reshape(B, S, D)
        x = x + jnp.dot(a.astype(bf16), lp['wo'].astype(bf16),
                        preferred_element_type=f32) + lp['bo']
        xn2 = _layernorm(x, lp['ln2_g'], lp['ln2_b'])
        h1 = jnp.dot(xn2.astype(bf16), lp['w1'].astype(bf16),
                     preferred_element_type=f32) + lp['b1']
        h1 = h1 * jax.nn.sigmoid(1.702 * h1)
        x = x + jnp.dot(h1.astype(bf16), lp['w2'].astype(bf16),
                        preferred_element_type=f32) + lp['b2']
    xn = _layernorm(x, params['lnf_g'], params['lnf_b'])
    eot = jnp.argmax(tokenized, axis=-1)
    rows = xn[jnp.arange(B), eot]
    return jnp.dot(rows.astype(bf16), params['proj'].astype(bf16),
                   preferred_element_type=f32)


# ---------------------------------------------------------------------------
# Deterministic synthetic parameter init (shapes follow CLIP's text tower).
# ---------------------------------------------------------------------------
def init_params(key, n_layers, S, D, H, E):
    def nrm(k, shape, scale=0.05):
        return scale * jax.random.normal(k, shape, dtype=jnp.float32)

    keys = jax.random.split(key, 2 + n_layers)
    params = {
        'num_heads': H,
        'pos_emb': nrm(keys[0], (S, D), 0.02),
        'proj': nrm(keys[1], (D, E)),
        'lnf_g': jnp.ones((1, D), jnp.float32),
        'lnf_b': jnp.zeros((1, D), jnp.float32),
        'layers': [],
    }
    for i in range(n_layers):
        ks = jax.random.split(keys[2 + i], 4)
        params['layers'].append({
            'ln1_g': jnp.ones((1, D), jnp.float32),
            'ln1_b': jnp.zeros((1, D), jnp.float32),
            'wqkv': nrm(ks[0], (D, 3 * D)),
            'bqkv': jnp.zeros((1, 3 * D), jnp.float32),
            'wo': nrm(ks[1], (D, D)),
            'bo': jnp.zeros((1, D), jnp.float32),
            'ln2_g': jnp.ones((1, D), jnp.float32),
            'ln2_b': jnp.zeros((1, D), jnp.float32),
            'w1': nrm(ks[2], (D, 4 * D)),
            'b1': jnp.zeros((1, 4 * D), jnp.float32),
            'w2': nrm(ks[3], (4 * D, D)),
            'b2': jnp.zeros((1, D), jnp.float32),
        })
    return params


if __name__ == "__main__":
    # batch, seq, width, heads, proj dim, layers (S=10 exercises the pad-to-8 path)
    B, S, D, H, E, L = 4, 10, 128, 4, 128, 2
    key = jax.random.PRNGKey(0)
    kp, kx, kt = jax.random.split(key, 3)

    params = init_params(kp, L, S, D, H, E)
    prompts = 0.02 * jax.random.normal(kx, (B, S, D), dtype=jnp.float32)
    tokenized_prompts = jax.random.randint(kt, (B, S), 0, 1000, dtype=jnp.int32)

    out = text_encoder(prompts, tokenized_prompts, params, flag=True)
    out = jax.block_until_ready(out)

    assert out.shape == (B, E), out.shape
    assert bool(jnp.all(jnp.isfinite(out)))

    ref = _reference(prompts, tokenized_prompts, params)
    err = float(jnp.max(jnp.abs(out - ref)))
    assert err < 2e-2, f"max abs err vs reference: {err}"

    print("KERNEL_OK")
</pallas_src>

<mosaic_0001>
module attributes {stable_mosaic.version = 11 : i64} {
  func.func @_text_encoder_kernel(%arg0: i32, %arg1: i32, %arg2: memref<4xi32, #tpu.memory_space<smem>>, %arg3: memref<4x16x128xf32, #tpu.memory_space<vmem>>, %arg4: memref<16x128xf32, #tpu.memory_space<vmem>>, %arg5: memref<1x1x128xf32, #tpu.memory_space<vmem>>, %arg6: memref<1x1x128xf32, #tpu.memory_space<vmem>>, %arg7: memref<1x128x384xbf16, #tpu.memory_space<vmem>>, %arg8: memref<1x1x384xf32, #tpu.memory_space<vmem>>, %arg9: memref<1x128x128xbf16, #tpu.memory_space<vmem>>, %arg10: memref<1x1x128xf32, #tpu.memory_space<vmem>>, %arg11: memref<1x1x128xf32, #tpu.memory_space<vmem>>, %arg12: memref<1x1x128xf32, #tpu.memory_space<vmem>>, %arg13: memref<1x128x512xbf16, #tpu.memory_space<vmem>>, %arg14: memref<1x1x512xf32, #tpu.memory_space<vmem>>, %arg15: memref<1x512x128xbf16, #tpu.memory_space<vmem>>, %arg16: memref<1x1x128xf32, #tpu.memory_space<vmem>>, %arg17: memref<1x128xf32, #tpu.memory_space<vmem>>, %arg18: memref<1x128xf32, #tpu.memory_space<vmem>>, %arg19: memref<128x128xbf16, #tpu.memory_space<vmem>>, %arg20: memref<4x128xf32, #tpu.memory_space<vmem>>, %arg21: memref<64x128xf32, #tpu.memory_space<vmem>>, %arg22: memref<64x128xbf16, #tpu.memory_space<vmem>>) attributes {dimension_semantics = [#tpu.dimension_semantics<parallel>, #tpu.dimension_semantics<arbitrary>], iteration_bounds = array<i64: 1, 2>, scalar_prefetch = 1 : i64, scratch_operands = 2 : i64, tpu.core_type = #tpu.core_type<tc>, window_params = [{transform_indices = @transform_0, window_bounds = array<i64: 4, 16, 128>}, {pipeline_mode = #tpu.pipeline_mode<synchronous>, transform_indices = @transform_1, window_bounds = array<i64: 16, 128>}, {transform_indices = @transform_2, window_bounds = array<i64: 1, 1, 128>}, {transform_indices = @transform_3, window_bounds = array<i64: 1, 1, 128>}, {transform_indices = @transform_4, window_bounds = array<i64: 1, 128, 384>}, {transform_indices = @transform_5, window_bounds = array<i64: 1, 1, 384>}, {transform_indices = @transform_6, window_bounds = array<i64: 1, 128, 128>}, {transform_indices = @transform_7, window_bounds = array<i64: 1, 1, 128>}, {transform_indices = @transform_8, window_bounds = array<i64: 1, 1, 128>}, {transform_indices = @transform_9, window_bounds = array<i64: 1, 1, 128>}, {transform_indices = @transform_10, window_bounds = array<i64: 1, 128, 512>}, {transform_indices = @transform_11, window_bounds = array<i64: 1, 1, 512>}, {transform_indices = @transform_12, window_bounds = array<i64: 1, 512, 128>}, {transform_indices = @transform_13, window_bounds = array<i64: 1, 1, 128>}, {pipeline_mode = #tpu.pipeline_mode<synchronous>, transform_indices = @transform_14, window_bounds = array<i64: 1, 128>}, {pipeline_mode = #tpu.pipeline_mode<synchronous>, transform_indices = @transform_15, window_bounds = array<i64: 1, 128>}, {pipeline_mode = #tpu.pipeline_mode<synchronous>, transform_indices = @transform_16, window_bounds = array<i64: 128, 128>}, {transform_indices = @transform_17, window_bounds = array<i64: 4, 128>}]} {
    %c0_i32 = arith.constant 0 : i32
    %0 = arith.cmpi eq, %arg1, %c0_i32 : i32
    %1 = arith.extui %0 : i1 to i32
    %c0_i32_0 = arith.constant 0 : i32
    %2 = arith.cmpi ne, %1, %c0_i32_0 : i32
    scf.if %2 {
      %c0_84 = arith.constant 0 : index
      %c0_85 = arith.constant 0 : index
      %c0_86 = arith.constant 0 : index
      %209 = vector.load %arg3[%c0_84, %c0_85, %c0_86] : memref<4x16x128xf32, #tpu.memory_space<vmem>>, vector<4x16x128xf32>
      %c0_87 = arith.constant 0 : index
      %c0_88 = arith.constant 0 : index
      %210 = vector.load %arg4[%c0_87, %c0_88] : memref<16x128xf32, #tpu.memory_space<vmem>>, vector<16x128xf32>
      %211 = vector.shape_cast %210 : vector<16x128xf32> to vector<1x16x128xf32>
      %212 = vector.broadcast %211 : vector<1x16x128xf32> to vector<4x16x128xf32>
      %213 = arith.addf %209, %212 : vector<4x16x128xf32>
      %214 = vector.shape_cast %213 : vector<4x16x128xf32> to vector<64x128xf32>
      %c0_89 = arith.constant 0 : index
      %c0_90 = arith.constant 0 : index
      %215 = vector.load %arg21[%c0_89, %c0_90] : memref<64x128xf32, #tpu.memory_space<vmem>>, vector<64x128xf32>
      tpu.vector_store %arg21[%c0_89, %c0_90], %214 {strides = array<i32>} : memref<64x128xf32, #tpu.memory_space<vmem>>, vector<64x128xf32>,
    } else {
    }
    %c0 = arith.constant 0 : index
    %c0_1 = arith.constant 0 : index
    %3 = vector.load %arg21[%c0, %c0_1] : memref<64x128xf32, #tpu.memory_space<vmem>>, vector<64x128xf32>
    %c0_2 = arith.constant 0 : index
    %c0_3 = arith.constant 0 : index
    %c0_4 = arith.constant 0 : index
    %4 = vector.load %arg5[%c0_2, %c0_3, %c0_4] : memref<1x1x128xf32, #tpu.memory_space<vmem>>, vector<1x1x128xf32>
    %5 = vector.shape_cast %4 : vector<1x1x128xf32> to vector<1x128xf32>
    %c0_5 = arith.constant 0 : index
    %c0_6 = arith.constant 0 : index
    %c0_7 = arith.constant 0 : index
    %6 = vector.load %arg6[%c0_5, %c0_6, %c0_7] : memref<1x1x128xf32, #tpu.memory_space<vmem>>, vector<1x1x128xf32>
    %7 = vector.shape_cast %6 : vector<1x1x128xf32> to vector<1x128xf32>
    %cst = arith.constant dense<0.000000e+00> : vector<64xf32>
    %8 = vector.multi_reduction <add>, %3, %cst [1] : vector<64x128xf32> to vector<64xf32>
    %9 = vector.shape_cast %8 : vector<64xf32> to vector<64x1xf32>
    %cst_8 = arith.constant 1.280000e+02 : f32
    %10 = vector.broadcast %cst_8 : f32 to vector<64x1xf32>
    %11 = arith.divf %9, %10 : vector<64x1xf32>
    %12 = vector.broadcast %11 : vector<64x1xf32> to vector<64x128xf32>
    %13 = arith.subf %3, %12 : vector<64x128xf32>
    %14 = arith.mulf %13, %13 : vector<64x128xf32>
    %cst_9 = arith.constant dense<0.000000e+00> : vector<64xf32>
    %15 = vector.multi_reduction <add>, %14, %cst_9 [1] : vector<64x128xf32> to vector<64xf32>
    %16 = vector.shape_cast %15 : vector<64xf32> to vector<64x1xf32>
    %cst_10 = arith.constant 1.280000e+02 : f32
    %17 = vector.broadcast %cst_10 : f32 to vector<64x1xf32>
    %18 = arith.divf %16, %17 : vector<64x1xf32>
    %19 = vector.broadcast %11 : vector<64x1xf32> to vector<64x128xf32>
    %20 = arith.subf %3, %19 : vector<64x128xf32>
    %cst_11 = arith.constant 9.99999974E-6 : f32
    %21 = vector.broadcast %cst_11 : f32 to vector<64x1xf32>
    %22 = arith.addf %18, %21 : vector<64x1xf32>
    %23 = math.rsqrt %22 : vector<64x1xf32>
    %24 = vector.broadcast %23 : vector<64x1xf32> to vector<64x128xf32>
    %25 = arith.mulf %20, %24 : vector<64x128xf32>
    %26 = vector.broadcast %5 : vector<1x128xf32> to vector<64x128xf32>
    %27 = arith.mulf %25, %26 : vector<64x128xf32>
    %28 = vector.broadcast %7 : vector<1x128xf32> to vector<64x128xf32>
    %29 = arith.addf %27, %28 : vector<64x128xf32>
    %30 = arith.truncf %29 : vector<64x128xf32> to vector<64x128xbf16>
    %c0_12 = arith.constant 0 : index
    %c0_13 = arith.constant 0 : index
    %c0_14 = arith.constant 0 : index
    %31 = vector.load %arg7[%c0_12, %c0_13, %c0_14] : memref<1x128x384xbf16, #tpu.memory_space<vmem>>, vector<1x128x384xbf16>
    %32 = vector.shape_cast %31 : vector<1x128x384xbf16> to vector<128x384xbf16>
    %cst_15 = arith.constant dense<0.000000e+00> : vector<64x384xf32>
    %33 = tpu.matmul %30, %32, %cst_15 {dimension_numbers = #tpu.dot_dimension_numbers<[1], [0], [0], [1], [0, 0, 1, 1], [], []>} : vector<64x128xbf16>, vector<128x384xbf16>, vector<64x384xf32> -> vector<64x384xf32>
    %c0_16 = arith.constant 0 : index
    %c0_17 = arith.constant 0 : index
    %c0_18 = arith.constant 0 : index
    %34 = vector.load %arg8[%c0_16, %c0_17, %c0_18] : memref<1x1x384xf32, #tpu.memory_space<vmem>>, vector<1x1x384xf32>
    %35 = vector.shape_cast %34 : vector<1x1x384xf32> to vector<1x384xf32>
    %36 = vector.broadcast %35 : vector<1x384xf32> to vector<64x384xf32>
    %37 = arith.addf %33, %36 : vector<64x384xf32>
    %38 = vector.extract_strided_slice %37 {offsets = [0, 0], sizes = [64, 128], strides = [1, 1]} : vector<64x384xf32> to vector<64x128xf32>
    %cst_19 = arith.constant 0.176776692 : f32
    %39 = vector.broadcast %cst_19 : f32 to vector<64x128xf32>
    %40 = arith.mulf %38, %39 : vector<64x128xf32>
    %41 = arith.truncf %40 : vector<64x128xf32> to vector<64x128xbf16>
    %42 = vector.shape_cast %41 : vector<64x128xbf16> to vector<4x16x128xbf16>
    %43 = vector.extract_strided_slice %37 {offsets = [0, 128], sizes = [64, 128], strides = [1, 1]} : vector<64x384xf32> to vector<64x128xf32>
    %44 = arith.truncf %43 : vector<64x128xf32> to vector<64x128xbf16>
    %45 = vector.shape_cast %44 : vector<64x128xbf16> to vector<4x16x128xbf16>
    %46 = vector.extract_strided_slice %37 {offsets = [0, 256], sizes = [64, 128], strides = [1, 1]} : vector<64x384xf32> to vector<64x128xf32>
    %47 = arith.truncf %46 : vector<64x128xf32> to vector<64x128xbf16>
    %48 = vector.shape_cast %47 : vector<64x128xbf16> to vector<4x16x128xbf16>
    %49 = tpu.iota {dimensions = array<i32: 0>} : vector<16x16xi32>
    %50 = tpu.iota {dimensions = array<i32: 1>} : vector<16x16xi32>
    %51 = arith.cmpi sle, %50, %49 : vector<16x16xi32>
    %52 = vector.shape_cast %51 : vector<16x16xi1> to vector<1x16x16xi1>
    %53 = vector.extract_strided_slice %42 {offsets = [0, 0, 0], sizes = [4, 16, 32], strides = [1, 1, 1]} : vector<4x16x128xbf16> to vector<4x16x32xbf16>
    %54 = vector.extract_strided_slice %45 {offsets = [0, 0, 0], sizes = [4, 16, 32], strides = [1, 1, 1]} : vector<4x16x128xbf16> to vector<4x16x32xbf16>
    %55 = vector.extract_strided_slice %48 {offsets = [0, 0, 0], sizes = [4, 16, 32], strides = [1, 1, 1]} : vector<4x16x128xbf16> to vector<4x16x32xbf16>
    "tpu.trace_start"() <{level = 10 : i32, message = "bqd,bkd->bqk"}> : () -> ()
    %cst_20 = arith.constant dense<0.000000e+00> : vector<4x16x16xf32>
    %56 = tpu.matmul %53, %54, %cst_20 {dimension_numbers = #tpu.dot_dimension_numbers<[2], [2], [1], [1], [0, 0, 0, 1, 1, 1], [0], [0]>} : vector<4x16x32xbf16>, vector<4x16x32xbf16>, vector<4x16x16xf32> -> vector<4x16x16xf32>
    %cst_21 = arith.constant -1.000000e+30 : f32
    "tpu.trace_stop"() : () -> ()
    %57 = vector.shape_cast %52 : vector<1x16x16xi1> to vector<1x16x16xi1>
    %58 = vector.broadcast %57 : vector<1x16x16xi1> to vector<4x16x16xi1>
    %59 = vector.broadcast %cst_21 : f32 to vector<4x16x16xf32>
    %60 = arith.select %58, %56, %59 : vector<4x16x16xi1>, vector<4x16x16xf32>
    %cst_22 = arith.constant dense<0xFF800000> : vector<4x16xf32>
    %61 = vector.multi_reduction <maximumf>, %60, %cst_22 [2] : vector<4x16x16xf32> to vector<4x16xf32>
    %62 = vector.shape_cast %61 : vector<4x16xf32> to vector<4x16x1xf32>
    %63 = vector.broadcast %62 : vector<4x16x1xf32> to vector<4x16x16xf32>
    %64 = arith.subf %60, %63 : vector<4x16x16xf32>
    %65 = math.exp %64 : vector<4x16x16xf32>
    %cst_23 = arith.constant dense<0.000000e+00> : vector<4x16xf32>
    %66 = vector.multi_reduction <add>, %65, %cst_23 [2] : vector<4x16x16xf32> to vector<4x16xf32>
    %67 = vector.shape_cast %66 : vector<4x16xf32> to vector<4x16x1xf32>
    %68 = tpu.reciprocal %67 {approx = true} : vector<4x16x1xf32> -> vector<4x16x1xf32>
    %69 = vector.broadcast %68 : vector<4x16x1xf32> to vector<4x16x16xf32>
    %70 = arith.mulf %65, %69 : vector<4x16x16xf32>
    %71 = arith.truncf %70 : vector<4x16x16xf32> to vector<4x16x16xbf16>
    "tpu.trace_start"() <{level = 10 : i32, message = "bqk,bkd->bqd"}> : () -> ()
    %cst_24 = arith.constant dense<0.000000e+00> : vector<4x16x32xf32>
    %72 = tpu.matmul %71, %55, %cst_24 {dimension_numbers = #tpu.dot_dimension_numbers<[2], [1], [1], [2], [0, 0, 0, 1, 1, 2], [0], [0]>} : vector<4x16x16xbf16>, vector<4x16x32xbf16>, vector<4x16x32xf32> -> vector<4x16x32xf32>
    "tpu.trace_stop"() : () -> ()
    %73 = vector.shape_cast %72 : vector<4x16x32xf32> to vector<64x32xf32>
    %74 = arith.truncf %73 : vector<64x32xf32> to vector<64x32xbf16>
    %c0_25 = arith.constant 0 : index
    %c0_26 = arith.constant 0 : index
    %75 = vector.load %arg22[%c0_25, %c0_26] : memref<64x128xbf16, #tpu.memory_space<vmem>>, vector<64x32xbf16>
    tpu.vector_store %arg22[%c0_25, %c0_26], %74 {strides = array<i32>} : memref<64x128xbf16, #tpu.memory_space<vmem>>, vector<64x32xbf16>,
    %76 = vector.extract_strided_slice %42 {offsets = [0, 0, 32], sizes = [4, 16, 32], strides = [1, 1, 1]} : vector<4x16x128xbf16> to vector<4x16x32xbf16>
    %77 = vector.extract_strided_slice %45 {offsets = [0, 0, 32], sizes = [4, 16, 32], strides = [1, 1, 1]} : vector<4x16x128xbf16> to vector<4x16x32xbf16>
    %78 = vector.extract_strided_slice %48 {offsets = [0, 0, 32], sizes = [4, 16, 32], strides = [1, 1, 1]} : vector<4x16x128xbf16> to vector<4x16x32xbf16>
    "tpu.trace_start"() <{level = 10 : i32, message = "bqd,bkd->bqk"}> : () -> ()
    %cst_27 = arith.constant dense<0.000000e+00> : vector<4x16x16xf32>
    %79 = tpu.matmul %76, %77, %cst_27 {dimension_numbers = #tpu.dot_dimension_numbers<[2], [2], [1], [1], [0, 0, 0, 1, 1, 1], [0], [0]>} : vector<4x16x32xbf16>, vector<4x16x32xbf16>, vector<4x16x16xf32> -> vector<4x16x16xf32>
    %cst_28 = arith.constant -1.000000e+30 : f32
    "tpu.trace_stop"() : () -> ()
    %80 = vector.shape_cast %52 : vector<1x16x16xi1> to vector<1x16x16xi1>
    %81 = vector.broadcast %80 : vector<1x16x16xi1> to vector<4x16x16xi1>
    %82 = vector.broadcast %cst_28 : f32 to vector<4x16x16xf32>
    %83 = arith.select %81, %79, %82 : vector<4x16x16xi1>, vector<4x16x16xf32>
    %cst_29 = arith.constant dense<0xFF800000> : vector<4x16xf32>
    %84 = vector.multi_reduction <maximumf>, %83, %cst_29 [2] : vector<4x16x16xf32> to vector<4x16xf32>
    %85 = vector.shape_cast %84 : vector<4x16xf32> to vector<4x16x1xf32>
    %86 = vector.broadcast %85 : vector<4x16x1xf32> to vector<4x16x16xf32>
    %87 = arith.subf %83, %86 : vector<4x16x16xf32>
    %88 = math.exp %87 : vector<4x16x16xf32>
    %cst_30 = arith.constant dense<0.000000e+00> : vector<4x16xf32>
    %89 = vector.multi_reduction <add>, %88, %cst_30 [2] : vector<4x16x16xf32> to vector<4x16xf32>
    %90 = vector.shape_cast %89 : vector<4x16xf32> to vector<4x16x1xf32>
    %91 = tpu.reciprocal %90 {approx = true} : vector<4x16x1xf32> -> vector<4x16x1xf32>
    %92 = vector.broadcast %91 : vector<4x16x1xf32> to vector<4x16x16xf32>
    %93 = arith.mulf %88, %92 : vector<4x16x16xf32>
    %94 = arith.truncf %93 : vector<4x16x16xf32> to vector<4x16x16xbf16>
    "tpu.trace_start"() <{level = 10 : i32, message = "bqk,bkd->bqd"}> : () -> ()
    %cst_31 = arith.constant dense<0.000000e+00> : vector<4x16x32xf32>
    %95 = tpu.matmul %94, %78, %cst_31 {dimension_numbers = #tpu.dot_dimension_numbers<[2], [1], [1], [2], [0, 0, 0, 1, 1, 2], [0], [0]>} : vector<4x16x16xbf16>, vector<4x16x32xbf16>, vector<4x16x32xf32> -> vector<4x16x32xf32>
    "tpu.trace_stop"() : () -> ()
    %96 = vector.shape_cast %95 : vector<4x16x32xf32> to vector<64x32xf32>
    %97 = arith.truncf %96 : vector<64x32xf32> to vector<64x32xbf16>
    %c0_32 = arith.constant 0 : index
    %c32 = arith.constant 32 : index
    %98 = vector.load %arg22[%c0_32, %c32] : memref<64x128xbf16, #tpu.memory_space<vmem>>, vector<64x32xbf16>
    tpu.vector_store %arg22[%c0_32, %c32], %97 {strides = array<i32>} : memref<64x128xbf16, #tpu.memory_space<vmem>>, vector<64x32xbf16>,
    %99 = vector.extract_strided_slice %42 {offsets = [0, 0, 64], sizes = [4, 16, 32], strides = [1, 1, 1]} : vector<4x16x128xbf16> to vector<4x16x32xbf16>
    %100 = vector.extract_strided_slice %45 {offsets = [0, 0, 64], sizes = [4, 16, 32], strides = [1, 1, 1]} : vector<4x16x128xbf16> to vector<4x16x32xbf16>
    %101 = vector.extract_strided_slice %48 {offsets = [0, 0, 64], sizes = [4, 16, 32], strides = [1, 1, 1]} : vector<4x16x128xbf16> to vector<4x16x32xbf16>
    "tpu.trace_start"() <{level = 10 : i32, message = "bqd,bkd->bqk"}> : () -> ()
    %cst_33 = arith.constant dense<0.000000e+00> : vector<4x16x16xf32>
    %102 = tpu.matmul %99, %100, %cst_33 {dimension_numbers = #tpu.dot_dimension_numbers<[2], [2], [1], [1], [0, 0, 0, 1, 1, 1], [0], [0]>} : vector<4x16x32xbf16>, vector<4x16x32xbf16>, vector<4x16x16xf32> -> vector<4x16x16xf32>
    %cst_34 = arith.constant -1.000000e+30 : f32
    "tpu.trace_stop"() : () -> ()
    %103 = vector.shape_cast %52 : vector<1x16x16xi1> to vector<1x16x16xi1>
    %104 = vector.broadcast %103 : vector<1x16x16xi1> to vector<4x16x16xi1>
    %105 = vector.broadcast %cst_34 : f32 to vector<4x16x16xf32>
    %106 = arith.select %104, %102, %105 : vector<4x16x16xi1>, vector<4x16x16xf32>
    %cst_35 = arith.constant dense<0xFF800000> : vector<4x16xf32>
    %107 = vector.multi_reduction <maximumf>, %106, %cst_35 [2] : vector<4x16x16xf32> to vector<4x16xf32>
    %108 = vector.shape_cast %107 : vector<4x16xf32> to vector<4x16x1xf32>
    %109 = vector.broadcast %108 : vector<4x16x1xf32> to vector<4x16x16xf32>
    %110 = arith.subf %106, %109 : vector<4x16x16xf32>
    %111 = math.exp %110 : vector<4x16x16xf32>
    %cst_36 = arith.constant dense<0.000000e+00> : vector<4x16xf32>
    %112 = vector.multi_reduction <add>, %111, %cst_36 [2] : vector<4x16x16xf32> to vector<4x16xf32>
    %113 = vector.shape_cast %112 : vector<4x16xf32> to vector<4x16x1xf32>
    %114 = tpu.reciprocal %113 {approx = true} : vector<4x16x1xf32> -> vector<4x16x1xf32>
    %115 = vector.broadcast %114 : vector<4x16x1xf32> to vector<4x16x16xf32>
    %116 = arith.mulf %111, %115 : vector<4x16x16xf32>
    %117 = arith.truncf %116 : vector<4x16x16xf32> to vector<4x16x16xbf16>
    "tpu.trace_start"() <{level = 10 : i32, message = "bqk,bkd->bqd"}> : () -> ()
    %cst_37 = arith.constant dense<0.000000e+00> : vector<4x16x32xf32>
    %118 = tpu.matmul %117, %101, %cst_37 {dimension_numbers = #tpu.dot_dimension_numbers<[2], [1], [1], [2], [0, 0, 0, 1, 1, 2], [0], [0]>} : vector<4x16x16xbf16>, vector<4x16x32xbf16>, vector<4x16x32xf32> -> vector<4x16x32xf32>
    "tpu.trace_stop"() : () -> ()
    %119 = vector.shape_cast %118 : vector<4x16x32xf32> to vector<64x32xf32>
    %120 = arith.truncf %119 : vector<64x32xf32> to vector<64x32xbf16>
    %c0_38 = arith.constant 0 : index
    %c64 = arith.constant 64 : index
    %121 = vector.load %arg22[%c0_38, %c64] : memref<64x128xbf16, #tpu.memory_space<vmem>>, vector<64x32xbf16>
    tpu.vector_store %arg22[%c0_38, %c64], %120 {strides = array<i32>} : memref<64x128xbf16, #tpu.memory_space<vmem>>, vector<64x32xbf16>,
    %122 = vector.extract_strided_slice %42 {offsets = [0, 0, 96], sizes = [4, 16, 32], strides = [1, 1, 1]} : vector<4x16x128xbf16> to vector<4x16x32xbf16>
    %123 = vector.extract_strided_slice %45 {offsets = [0, 0, 96], sizes = [4, 16, 32], strides = [1, 1, 1]} : vector<4x16x128xbf16> to vector<4x16x32xbf16>
    %124 = vector.extract_strided_slice %48 {offsets = [0, 0, 96], sizes = [4, 16, 32], strides = [1, 1, 1]} : vector<4x16x128xbf16> to vector<4x16x32xbf16>
    "tpu.trace_start"() <{level = 10 : i32, message = "bqd,bkd->bqk"}> : () -> ()
    %cst_39 = arith.constant dense<0.000000e+00> : vector<4x16x16xf32>
    %125 = tpu.matmul %122, %123, %cst_39 {dimension_numbers = #tpu.dot_dimension_numbers<[2], [2], [1], [1], [0, 0, 0, 1, 1, 1], [0], [0]>} : vector<4x16x32xbf16>, vector<4x16x32xbf16>, vector<4x16x16xf32> -> vector<4x16x16xf32>
    %cst_40 = arith.constant -1.000000e+30 : f32
    "tpu.trace_stop"() : () -> ()
    %126 = vector.shape_cast %52 : vector<1x16x16xi1> to vector<1x16x16xi1>
    %127 = vector.broadcast %126 : vector<1x16x16xi1> to vector<4x16x16xi1>
    %128 = vector.broadcast %cst_40 : f32 to vector<4x16x16xf32>
    %129 = arith.select %127, %125, %128 : vector<4x16x16xi1>, vector<4x16x16xf32>
    %cst_41 = arith.constant dense<0xFF800000> : vector<4x16xf32>
    %130 = vector.multi_reduction <maximumf>, %129, %cst_41 [2] : vector<4x16x16xf32> to vector<4x16xf32>
    %131 = vector.shape_cast %130 : vector<4x16xf32> to vector<4x16x1xf32>
    %132 = vector.broadcast %131 : vector<4x16x1xf32> to vector<4x16x16xf32>
    %133 = arith.subf %129, %132 : vector<4x16x16xf32>
    %134 = math.exp %133 : vector<4x16x16xf32>
    %cst_42 = arith.constant dense<0.000000e+00> : vector<4x16xf32>
    %135 = vector.multi_reduction <add>, %134, %cst_42 [2] : vector<4x16x16xf32> to vector<4x16xf32>
    %136 = vector.shape_cast %135 : vector<4x16xf32> to vector<4x16x1xf32>
    %137 = tpu.reciprocal %136 {approx = true} : vector<4x16x1xf32> -> vector<4x16x1xf32>
    %138 = vector.broadcast %137 : vector<4x16x1xf32> to vector<4x16x16xf32>
    %139 = arith.mulf %134, %138 : vector<4x16x16xf32>
    %140 = arith.truncf %139 : vector<4x16x16xf32> to vector<4x16x16xbf16>
    "tpu.trace_start"() <{level = 10 : i32, message = "bqk,bkd->bqd"}> : () -> ()
    %cst_43 = arith.constant dense<0.000000e+00> : vector<4x16x32xf32>
    %141 = tpu.matmul %140, %124, %cst_43 {dimension_numbers = #tpu.dot_dimension_numbers<[2], [1], [1], [2], [0, 0, 0, 1, 1, 2], [0], [0]>} : vector<4x16x16xbf16>, vector<4x16x32xbf16>, vector<4x16x32xf32> -> vector<4x16x32xf32>
    "tpu.trace_stop"() : () -> ()
    %142 = vector.shape_cast %141 : vector<4x16x32xf32> to vector<64x32xf32>
    %143 = arith.truncf %142 : vector<64x32xf32> to vector<64x32xbf16>
    %c0_44 = arith.constant 0 : index
    %c96 = arith.constant 96 : index
    %144 = vector.load %arg22[%c0_44, %c96] : memref<64x128xbf16, #tpu.memory_space<vmem>>, vector<64x32xbf16>
    tpu.vector_store %arg22[%c0_44, %c96], %143 {strides = array<i32>} : memref<64x128xbf16, #tpu.memory_space<vmem>>, vector<64x32xbf16>,
    %c0_45 = arith.constant 0 : index
    %c0_46 = arith.constant 0 : index
    %145 = vector.load %arg22[%c0_45, %c0_46] : memref<64x128xbf16, #tpu.memory_space<vmem>>, vector<64x128xbf16>
    %c0_47 = arith.constant 0 : index
    %c0_48 = arith.constant 0 : index
    %c0_49 = arith.constant 0 : index
    %146 = vector.load %arg9[%c0_47, %c0_48, %c0_49] : memref<1x128x128xbf16, #tpu.memory_space<vmem>>, vector<1x128x128xbf16>
    %147 = vector.shape_cast %146 : vector<1x128x128xbf16> to vector<128x128xbf16>
    %cst_50 = arith.constant dense<0.000000e+00> : vector<64x128xf32>
    %148 = tpu.matmul %145, %147, %cst_50 {dimension_numbers = #tpu.dot_dimension_numbers<[1], [0], [0], [1], [0, 0, 1, 1], [], []>} : vector<64x128xbf16>, vector<128x128xbf16>, vector<64x128xf32> -> vector<64x128xf32>
    %149 = arith.addf %3, %148 : vector<64x128xf32>
    %c0_51 = arith.constant 0 : index
    %c0_52 = arith.constant 0 : index
    %c0_53 = arith.constant 0 : index
    %150 = vector.load %arg10[%c0_51, %c0_52, %c0_53] : memref<1x1x128xf32, #tpu.memory_space<vmem>>, vector<1x1x128xf32>
    %151 = vector.shape_cast %150 : vector<1x1x128xf32> to vector<1x128xf32>
    %152 = vector.broadcast %151 : vector<1x128xf32> to vector<64x128xf32>
    %153 = arith.addf %149, %152 : vector<64x128xf32>
    %c0_54 = arith.constant 0 : index
    %c0_55 = arith.constant 0 : index
    %c0_56 = arith.constant 0 : index
    %154 = vector.load %arg11[%c0_54, %c0_55, %c0_56] : memref<1x1x128xf32, #tpu.memory_space<vmem>>, vector<1x1x128xf32>
    %155 = vector.shape_cast %154 : vector<1x1x128xf32> to vector<1x128xf32>
    %c0_57 = arith.constant 0 : index
    %c0_58 = arith.constant 0 : index
    %c0_59 = arith.constant 0 : index
    %156 = vector.load %arg12[%c0_57, %c0_58, %c0_59] : memref<1x1x128xf32, #tpu.memory_space<vmem>>, vector<1x1x128xf32>
    %157 = vector.shape_cast %156 : vector<1x1x128xf32> to vector<1x128xf32>
    %cst_60 = arith.constant dense<0.000000e+00> : vector<64xf32>
    %158 = vector.multi_reduction <add>, %153, %cst_60 [1] : vector<64x128xf32> to vector<64xf32>
    %159 = vector.shape_cast %158 : vector<64xf32> to vector<64x1xf32>
    %cst_61 = arith.constant 1.280000e+02 : f32
    %160 = vector.broadcast %cst_61 : f32 to vector<64x1xf32>
    %161 = arith.divf %159, %160 : vector<64x1xf32>
    %162 = vector.broadcast %161 : vector<64x1xf32> to vector<64x128xf32>
    %163 = arith.subf %153, %162 : vector<64x128xf32>
    %164 = arith.mulf %163, %163 : vector<64x128xf32>
    %cst_62 = arith.constant dense<0.000000e+00> : vector<64xf32>
    %165 = vector.multi_reduction <add>, %164, %cst_62 [1] : vector<64x128xf32> to vector<64xf32>
    %166 = vector.shape_cast %165 : vector<64xf32> to vector<64x1xf32>
    %cst_63 = arith.constant 1.280000e+02 : f32
    %167 = vector.broadcast %cst_63 : f32 to vector<64x1xf32>
    %168 = arith.divf %166, %167 : vector<64x1xf32>
    %169 = vector.broadcast %161 : vector<64x1xf32> to vector<64x128xf32>
    %170 = arith.subf %153, %169 : vector<64x128xf32>
    %cst_64 = arith.constant 9.99999974E-6 : f32
    %171 = vector.broadcast %cst_64 : f32 to vector<64x1xf32>
    %172 = arith.addf %168, %171 : vector<64x1xf32>
    %173 = math.rsqrt %172 : vector<64x1xf32>
    %174 = vector.broadcast %173 : vector<64x1xf32> to vector<64x128xf32>
    %175 = arith.mulf %170, %174 : vector<64x128xf32>
    %176 = vector.broadcast %155 : vector<1x128xf32> to vector<64x128xf32>
    %177 = arith.mulf %175, %176 : vector<64x128xf32>
    %178 = vector.broadcast %157 : vector<1x128xf32> to vector<64x128xf32>
    %179 = arith.addf %177, %178 : vector<64x128xf32>
    %180 = arith.truncf %179 : vector<64x128xf32> to vector<64x128xbf16>
    %c0_65 = arith.constant 0 : index
    %c0_66 = arith.constant 0 : index
    %c0_67 = arith.constant 0 : index
    %181 = vector.load %arg13[%c0_65, %c0_66, %c0_67] : memref<1x128x512xbf16, #tpu.memory_space<vmem>>, vector<1x128x512xbf16>
    %182 = vector.shape_cast %181 : vector<1x128x512xbf16> to vector<128x512xbf16>
    %cst_68 = arith.constant dense<0.000000e+00> : vector<64x512xf32>
    %183 = tpu.matmul %180, %182, %cst_68 {dimension_numbers = #tpu.dot_dimension_numbers<[1], [0], [0], [1], [0, 0, 1, 1], [], []>} : vector<64x128xbf16>, vector<128x512xbf16>, vector<64x512xf32> -> vector<64x512xf32>
    %c0_69 = arith.constant 0 : index
    %c0_70 = arith.constant 0 : index
    %c0_71 = arith.constant 0 : index
    %184 = vector.load %arg14[%c0_69, %c0_70, %c0_71] : memref<1x1x512xf32, #tpu.memory_space<vmem>>, vector<1x1x512xf32>
    %185 = vector.shape_cast %184 : vector<1x1x512xf32> to vector<1x512xf32>
    %186 = vector.broadcast %185 : vector<1x512xf32> to vector<64x512xf32>
    %187 = arith.addf %183, %186 : vector<64x512xf32>
    %cst_72 = arith.constant 1.702000e+00 : f32
    %188 = vector.broadcast %cst_72 : f32 to vector<64x512xf32>
    %189 = arith.mulf %188, %187 : vector<64x512xf32>
    %190 = arith.negf %189 : vector<64x512xf32>
    %191 = math.exp %190 : vector<64x512xf32>
    %cst_73 = arith.constant 1.000000e+00 : f32
    %192 = vector.broadcast %cst_73 : f32 to vector<64x512xf32>
    %193 = arith.addf %192, %191 : vector<64x512xf32>
    %194 = arith.divf %192, %193 : vector<64x512xf32>
    %195 = arith.mulf %187, %194 : vector<64x512xf32>
    %196 = arith.truncf %195 : vector<64x512xf32> to vector<64x512xbf16>
    %c0_74 = arith.constant 0 : index
    %c0_75 = arith.constant 0 : index
    %c0_76 = arith.constant 0 : index
    %197 = vector.load %arg15[%c0_74, %c0_75, %c0_76] : memref<1x512x128xbf16, #tpu.memory_space<vmem>>, vector<1x512x128xbf16>
    %198 = vector.shape_cast %197 : vector<1x512x128xbf16> to vector<512x128xbf16>
    %cst_77 = arith.constant dense<0.000000e+00> : vector<64x128xf32>
    %199 = tpu.matmul %196, %198, %cst_77 {dimension_numbers = #tpu.dot_dimension_numbers<[1], [0], [0], [1], [0, 0, 1, 1], [], []>} : vector<64x512xbf16>, vector<512x128xbf16>, vector<64x128xf32> -> vector<64x128xf32>
    %200 = arith.addf %153, %199 : vector<64x128xf32>
    %c0_78 = arith.constant 0 : index
    %c0_79 = arith.constant 0 : index
    %c0_80 = arith.constant 0 : index
    %201 = vector.load %arg16[%c0_78, %c0_79, %c0_80] : memref<1x1x128xf32, #tpu.memory_space<vmem>>, vector<1x1x128xf32>
    %202 = vector.shape_cast %201 : vector<1x1x128xf32> to vector<1x128xf32>
    %203 = vector.broadcast %202 : vector<1x128xf32> to vector<64x128xf32>
    %204 = arith.addf %200, %203 : vector<64x128xf32>
    %c0_81 = arith.constant 0 : index
    %c0_82 = arith.constant 0 : index
    %205 = vector.load %arg21[%c0_81, %c0_82] : memref<64x128xf32, #tpu.memory_space<vmem>>, vector<64x128xf32>
    tpu.vector_store %arg21[%c0_81, %c0_82], %204 {strides = array<i32>} : memref<64x128xf32, #tpu.memory_space<vmem>>, vector<64x128xf32>,
    %c1_i32 = arith.constant 1 : i32
    %206 = arith.cmpi eq, %arg1, %c1_i32 : i32
    %207 = arith.extui %206 : i1 to i32
    %c0_i32_83 = arith.constant 0 : i32
    %208 = arith.cmpi ne, %207, %c0_i32_83 : i32
    scf.if %208 {
      %c4_i32 = arith.constant 4 : i32
      %209 = arith.muli %arg0, %c4_i32 : i32
      %c0_i32_84 = arith.constant 0 : i32
      %210 = arith.addi %209, %c0_i32_84 : i32
      %211 = arith.index_cast %210 : i32 to index
      %212 = memref.load %arg2[%211] : memref<4xi32, #tpu.memory_space<smem>>
      %c0_i32_85 = arith.constant 0 : i32
      %213 = arith.addi %c0_i32_85, %212 : i32
      %214 = arith.index_cast %213 : i32 to index
      %c0_86 = arith.constant 0 : index
      %215 = vector.load %arg21[%214, %c0_86] : memref<64x128xf32, #tpu.memory_space<vmem>>, vector<1x128xf32>
      %c4_i32_87 = arith.constant 4 : i32
      %216 = arith.muli %arg0, %c4_i32_87 : i32
      %c1_i32_88 = arith.constant 1 : i32
      %217 = arith.addi %216, %c1_i32_88 : i32
      %218 = arith.index_cast %217 : i32 to index
      %219 = memref.load %arg2[%218] : memref<4xi32, #tpu.memory_space<smem>>
      %c16_i32 = arith.constant 16 : i32
      %220 = arith.addi %c16_i32, %219 : i32
      %221 = arith.index_cast %220 : i32 to index
      %c0_89 = arith.constant 0 : index
      %222 = vector.load %arg21[%221, %c0_89] : memref<64x128xf32, #tpu.memory_space<vmem>>, vector<1x128xf32>
      %c4_i32_90 = arith.constant 4 : i32
      %223 = arith.muli %arg0, %c4_i32_90 : i32
      %c2_i32 = arith.constant 2 : i32
      %224 = arith.addi %223, %c2_i32 : i32
      %225 = arith.index_cast %224 : i32 to index
      %226 = memref.load %arg2[%225] : memref<4xi32, #tpu.memory_space<smem>>
      %c32_i32 = arith.constant 32 : i32
      %227 = arith.addi %c32_i32, %226 : i32
      %228 = arith.index_cast %227 : i32 to index
      %c0_91 = arith.constant 0 : index
      %229 = vector.load %arg21[%228, %c0_91] : memref<64x128xf32, #tpu.memory_space<vmem>>, vector<1x128xf32>
      %c4_i32_92 = arith.constant 4 : i32
      %230 = arith.muli %arg0, %c4_i32_92 : i32
      %c3_i32 = arith.constant 3 : i32
      %231 = arith.addi %230, %c3_i32 : i32
      %232 = arith.index_cast %231 : i32 to index
      %233 = memref.load %arg2[%232] : memref<4xi32, #tpu.memory_space<smem>>
      %c48_i32 = arith.constant 48 : i32
      %234 = arith.addi %c48_i32, %233 : i32
      %235 = arith.index_cast %234 : i32 to index
      %c0_93 = arith.constant 0 : index
      %236 = vector.load %arg21[%235, %c0_93] : memref<64x128xf32, #tpu.memory_space<vmem>>, vector<1x128xf32>
      %237 = tpu.concatenate %215, %222, %229, %236 in 0 : vector<1x128xf32>, vector<1x128xf32>, vector<1x128xf32>, vector<1x128xf32> -> vector<4x128xf32>
      %c0_94 = arith.constant 0 : index
      %c0_95 = arith.constant 0 : index
      %238 = vector.load %arg17[%c0_94, %c0_95] : memref<1x128xf32, #tpu.memory_space<vmem>>, vector<1x128xf32>
      %c0_96 = arith.constant 0 : index
      %c0_97 = arith.constant 0 : index
      %239 = vector.load %arg18[%c0_96, %c0_97] : memref<1x128xf32, #tpu.memory_space<vmem>>, vector<1x128xf32>
      %cst_98 = arith.constant dense<0.000000e+00> : vector<4xf32>
      %240 = vector.multi_reduction <add>, %237, %cst_98 [1] : vector<4x128xf32> to vector<4xf32>
      %241 = vector.shape_cast %240 : vector<4xf32> to vector<4x1xf32>
      %cst_99 = arith.constant 1.280000e+02 : f32
      %242 = vector.broadcast %cst_99 : f32 to vector<4x1xf32>
      %243 = arith.divf %241, %242 : vector<4x1xf32>
      %244 = vector.broadcast %243 : vector<4x1xf32> to vector<4x128xf32>
      %245 = arith.subf %237, %244 : vector<4x128xf32>
      %246 = arith.mulf %245, %245 : vector<4x128xf32>
      %cst_100 = arith.constant dense<0.000000e+00> : vector<4xf32>
      %247 = vector.multi_reduction <add>, %246, %cst_100 [1] : vector<4x128xf32> to vector<4xf32>
      %248 = vector.shape_cast %247 : vector<4xf32> to vector<4x1xf32>
      %cst_101 = arith.constant 1.280000e+02 : f32
      %249 = vector.broadcast %cst_101 : f32 to vector<4x1xf32>
      %250 = arith.divf %248, %249 : vector<4x1xf32>
      %251 = vector.broadcast %243 : vector<4x1xf32> to vector<4x128xf32>
      %252 = arith.subf %237, %251 : vector<4x128xf32>
      %cst_102 = arith.constant 9.99999974E-6 : f32
      %253 = vector.broadcast %cst_102 : f32 to vector<4x1xf32>
      %254 = arith.addf %250, %253 : vector<4x1xf32>
      %255 = math.rsqrt %254 : vector<4x1xf32>
      %256 = vector.broadcast %255 : vector<4x1xf32> to vector<4x128xf32>
      %257 = arith.mulf %252, %256 : vector<4x128xf32>
      %258 = vector.broadcast %238 : vector<1x128xf32> to vector<4x128xf32>
      %259 = arith.mulf %257, %258 : vector<4x128xf32>
      %260 = vector.broadcast %239 : vector<1x128xf32> to vector<4x128xf32>
      %261 = arith.addf %259, %260 : vector<4x128xf32>
      %262 = arith.truncf %261 : vector<4x128xf32> to vector<4x128xbf16>
      %c0_103 = arith.constant 0 : index
      %c0_104 = arith.constant 0 : index
      %263 = vector.load %arg19[%c0_103, %c0_104] : memref<128x128xbf16, #tpu.memory_space<vmem>>, vector<128x128xbf16>
      %cst_105 = arith.constant dense<0.000000e+00> : vector<4x128xf32>
      %264 = tpu.matmul %262, %263, %cst_105 {dimension_numbers = #tpu.dot_dimension_numbers<[1], [0], [0], [1], [0, 0, 1, 1], [], []>} : vector<4x128xbf16>, vector<128x128xbf16>, vector<4x128xf32> -> vector<4x128xf32>
      %c0_106 = arith.constant 0 : index
      %c0_107 = arith.constant 0 : index
      %265 = vector.load %arg20[%c0_106, %c0_107] : memref<4x128xf32, #tpu.memory_space<vmem>>, vector<4x128xf32>
      tpu.vector_store %arg20[%c0_106, %c0_107], %264 {strides = array<i32>} : memref<4x128xf32, #tpu.memory_space<vmem>>, vector<4x128xf32>,
    } else {
    }
    return
  }
  func.func @transform_0(%arg0: i32, %arg1: i32, %arg2: memref<4xi32, #tpu.memory_space<smem>>) -> (i32, i32, i32) {
    %c0_i32 = arith.constant 0 : i32
    %c0_i32_0 = arith.constant 0 : i32
    %c0_i32_1 = arith.constant 0 : i32
    return %arg0, %c0_i32, %c0_i32_0 : i32, i32, i32
  }
  func.func @transform_1(%arg0: i32, %arg1: i32, %arg2: memref<4xi32, #tpu.memory_space<smem>>) -> (i32, i32) {
    %c0_i32 = arith.constant 0 : i32
    %c0_i32_0 = arith.constant 0 : i32
    %c0_i32_1 = arith.constant 0 : i32
    return %c0_i32, %c0_i32_0 : i32, i32
  }
  func.func @transform_2(%arg0: i32, %arg1: i32, %arg2: memref<4xi32, #tpu.memory_space<smem>>) -> (i32, i32, i32) {
    %c0_i32 = arith.constant 0 : i32
    %c0_i32_0 = arith.constant 0 : i32
    %c0_i32_1 = arith.constant 0 : i32
    return %arg1, %c0_i32, %c0_i32_0 : i32, i32, i32
  }
  func.func @transform_3(%arg0: i32, %arg1: i32, %arg2: memref<4xi32, #tpu.memory_space<smem>>) -> (i32, i32, i32) {
    %c0_i32 = arith.constant 0 : i32
    %c0_i32_0 = arith.constant 0 : i32
    %c0_i32_1 = arith.constant 0 : i32
    return %arg1, %c0_i32, %c0_i32_0 : i32, i32, i32
  }
  func.func @transform_4(%arg0: i32, %arg1: i32, %arg2: memref<4xi32, #tpu.memory_space<smem>>) -> (i32, i32, i32) {
    %c0_i32 = arith.constant 0 : i32
    %c0_i32_0 = arith.constant 0 : i32
    %c0_i32_1 = arith.constant 0 : i32
    return %arg1, %c0_i32, %c0_i32_0 : i32, i32, i32
  }
  func.func @transform_5(%arg0: i32, %arg1: i32, %arg2: memref<4xi32, #tpu.memory_space<smem>>) -> (i32, i32, i32) {
    %c0_i32 = arith.constant 0 : i32
    %c0_i32_0 = arith.constant 0 : i32
    %c0_i32_1 = arith.constant 0 : i32
    return %arg1, %c0_i32, %c0_i32_0 : i32, i32, i32
  }
  func.func @transform_6(%arg0: i32, %arg1: i32, %arg2: memref<4xi32, #tpu.memory_space<smem>>) -> (i32, i32, i32) {
    %c0_i32 = arith.constant 0 : i32
    %c0_i32_0 = arith.constant 0 : i32
    %c0_i32_1 = arith.constant 0 : i32
    return %arg1, %c0_i32, %c0_i32_0 : i32, i32, i32
  }
  func.func @transform_7(%arg0: i32, %arg1: i32, %arg2: memref<4xi32, #tpu.memory_space<smem>>) -> (i32, i32, i32) {
    %c0_i32 = arith.constant 0 : i32
    %c0_i32_0 = arith.constant 0 : i32
    %c0_i32_1 = arith.constant 0 : i32
    return %arg1, %c0_i32, %c0_i32_0 : i32, i32, i32
  }
  func.func @transform_8(%arg0: i32, %arg1: i32, %arg2: memref<4xi32, #tpu.memory_space<smem>>) -> (i32, i32, i32) {
    %c0_i32 = arith.constant 0 : i32
    %c0_i32_0 = arith.constant 0 : i32
    %c0_i32_1 = arith.constant 0 : i32
    return %arg1, %c0_i32, %c0_i32_0 : i32, i32, i32
  }
  func.func @transform_9(%arg0: i32, %arg1: i32, %arg2: memref<4xi32, #tpu.memory_space<smem>>) -> (i32, i32, i32) {
    %c0_i32 = arith.constant 0 : i32
    %c0_i32_0 = arith.constant 0 : i32
    %c0_i32_1 = arith.constant 0 : i32
    return %arg1, %c0_i32, %c0_i32_0 : i32, i32, i32
  }
  func.func @transform_10(%arg0: i32, %arg1: i32, %arg2: memref<4xi32, #tpu.memory_space<smem>>) -> (i32, i32, i32) {
    %c0_i32 = arith.constant 0 : i32
    %c0_i32_0 = arith.constant 0 : i32
    %c0_i32_1 = arith.constant 0 : i32
    return %arg1, %c0_i32, %c0_i32_0 : i32, i32, i32
  }
  func.func @transform_11(%arg0: i32, %arg1: i32, %arg2: memref<4xi32, #tpu.memory_space<smem>>) -> (i32, i32, i32) {
    %c0_i32 = arith.constant 0 : i32
    %c0_i32_0 = arith.constant 0 : i32
    %c0_i32_1 = arith.constant 0 : i32
    return %arg1, %c0_i32, %c0_i32_0 : i32, i32, i32
  }
  func.func @transform_12(%arg0: i32, %arg1: i32, %arg2: memref<4xi32, #tpu.memory_space<smem>>) -> (i32, i32, i32) {
    %c0_i32 = arith.constant 0 : i32
    %c0_i32_0 = arith.constant 0 : i32
    %c0_i32_1 = arith.constant 0 : i32
    return %arg1, %c0_i32, %c0_i32_0 : i32, i32, i32
  }
  func.func @transform_13(%arg0: i32, %arg1: i32, %arg2: memref<4xi32, #tpu.memory_space<smem>>) -> (i32, i32, i32) {
    %c0_i32 = arith.constant 0 : i32
    %c0_i32_0 = arith.constant 0 : i32
    %c0_i32_1 = arith.constant 0 : i32
    return %arg1, %c0_i32, %c0_i32_0 : i32, i32, i32
  }
  func.func @transform_14(%arg0: i32, %arg1: i32, %arg2: memref<4xi32, #tpu.memory_space<smem>>) -> (i32, i32) {
    %c0_i32 = arith.constant 0 : i32
    %c0_i32_0 = arith.constant 0 : i32
    %c0_i32_1 = arith.constant 0 : i32
    return %c0_i32, %c0_i32_0 : i32, i32
  }
  func.func @transform_15(%arg0: i32, %arg1: i32, %arg2: memref<4xi32, #tpu.memory_space<smem>>) -> (i32, i32) {
    %c0_i32 = arith.constant 0 : i32
    %c0_i32_0 = arith.constant 0 : i32
    %c0_i32_1 = arith.constant 0 : i32
    return %c0_i32, %c0_i32_0 : i32, i32
  }
  func.func @transform_16(%arg0: i32, %arg1: i32, %arg2: memref<4xi32, #tpu.memory_space<smem>>) -> (i32, i32) {
    %c0_i32 = arith.constant 0 : i32
    %c0_i32_0 = arith.constant 0 : i32
    %c0_i32_1 = arith.constant 0 : i32
    return %c0_i32, %c0_i32_0 : i32, i32
  }
  func.func @transform_17(%arg0: i32, %arg1: i32, %arg2: memref<4xi32, #tpu.memory_space<smem>>) -> (i32, i32) {
    %c0_i32 = arith.constant 0 : i32
    %c0_i32_0 = arith.constant 0 : i32
    return %arg0, %c0_i32 : i32, i32
  }
}

</mosaic_0001>

<bundles_post_ra>
// kernel: tpu_custom_call.1
= control target key start
LH: loop header
LB: loop body
LE: loop exit
PB: predicated region body
PF: predicated region fallthrough
CT: control target
= control target key end

     0   :  { %s7069_s27 = smov [#allocation5]   ;;  %s8650_s0 = inlined_call_operand.hbm [shape: s32[4], index: 0, kind: input, shape index: {}]   ;;  %s8651_s1 = inlined_call_operand.hbm [shape: f32[4,16,128], index: 1, kind: input, shape index: {}]   ;;  %s8652_s2 = inlined_call_operand.hbm [shape: f32[16,128], index: 2, kind: input, shape index: {}]   ;;  %s8653_s3 = inlined_call_operand.vmem [shape: f32[2,1,128], index: 3, kind: input, shape index: {}]   ;;  %s8654_s4 = inlined_call_operand.hbm [shape: f32[2,1,128], index: 4, kind: input, shape index: {}]   ;;  %s8655_s5 = inlined_call_operand.hbm [shape: bf16[2,128,384], index: 5, kind: input, shape index: {}]   ;;  %s8656_s6 = inlined_call_operand.vmem [shape: f32[2,1,384], index: 6, kind: input, shape index: {}]   ;;  %s8657_s7 = inlined_call_operand.hbm [shape: bf16[2,128,128], index: 7, kind: input, shape index: {}]   ;;  %s8658_s8 = inlined_call_operand.hbm [shape: f32[2,1,128], index: 8, kind: input, shape index: {}]   ;;  %s8659_s9 = inlined_call_operand.hbm [shape: f32[2,1,128], index: 9, kind: input, shape index: {}]   ;;  %s8660_s10 = inlined_call_operand.vmem [shape: f32[2,1,128], index: 10, kind: input, shape index: {}]   ;;  %s8661_s11 = inlined_call_operand.hbm [shape: bf16[2,128,512], index: 11, kind: input, shape index: {}]   ;;  %s8662_s12 = inlined_call_operand.vmem [shape: f32[2,1,512], index: 12, kind: input, shape index: {}]   ;;  %s8663_s13 = inlined_call_operand.hbm [shape: bf16[2,512,128], index: 13, kind: input, shape index: {}]   ;;  %s8664_s14 = inlined_call_operand.vmem [shape: f32[2,1,128], index: 14, kind: input, shape index: {}]   ;;  %s8665_s15 = inlined_call_operand.vmem [shape: f32[1,128], index: 15, kind: input, shape index: {}]   ;;  %s8666_s16 = inlined_call_operand.vmem [shape: f32[1,128], index: 16, kind: input, shape index: {}]   ;;  %s8667_s17 = inlined_call_operand.hbm [shape: bf16[128,128], index: 17, kind: input, shape index: {}]   ;;  %s8668_s18 = inlined_call_operand.hbm [shape: f32[4,128], index: 18, kind: output, shape index: {}]  }
   0x1   :  { %8679 = sst [smem:[#allocation33_spill]] %s8650_s0 }
   0x2   :  { %8680 = sst [smem:[#allocation34_spill]] %s8651_s1 }
   0x3   :  { %8681 = sst [smem:[#allocation35_spill]] %s8652_s2 }
   0x4   :  { %8682 = sst [smem:[#allocation36_spill]] %s8653_s3 }
   0x5   :  { %8683 = sst [smem:[#allocation37_spill]] %s8654_s4 }
   0x6   :  { %8684 = sst [smem:[#allocation38_spill]] %s8655_s5 }
   0x7   :  { %8685 = sst [smem:[#allocation39_spill]] %s8656_s6 }
   0x8   :  { %8686 = sst [smem:[#allocation40_spill]] %s8657_s7 }
   0x9   :  { %8687 = sst [smem:[#allocation41_spill]] %s8658_s8 }
   0xa   :  { %8688 = sst [smem:[#allocation42_spill]] %s8659_s9 }
   0xb   :  { %8689 = sst [smem:[#allocation43_spill]] %s8660_s10 }
   0xc   :  { %8690 = sst [smem:[#allocation44_spill]] %s8662_s12 }
   0xd   :  { %8691 = sst [smem:[#allocation45_spill]] %s8664_s14 }
   0xe   :  { %8692 = sst [smem:[#allocation46_spill]] %s8665_s15 }
   0xf   :  { %8693 = sst [smem:[#allocation47_spill]] %s8666_s16 }
  0x10   :  { %8694 = sst [smem:[#allocation48_spill]] %s8668_s18 }
  0x11   :  { %s8695_s12 = sld [smem:[#allocation33_spill]] }
  0x17   :  { %24 = dma.hbm_to_smem %s8695_s12, 16, %s7069_s27, [#allocation4] }
  0x18   :  { %7023 = dma.done.wait [#allocation4], 16 }
  0x19   :  { %7024 = vsyncadd [#allocation4], 4294967280 }
  0x1a   :  { %26 = sfence }
  0x1b   :  { %27 = vsyncpa [#allocation7], 0 }
  0x1c   :  { %28 = vsyncpa [#allocation10], 0 }
  0x1d   :  { %29 = vsyncpa [#allocation8], 0  ;;  %s7195_s30 = smov 0   ;;  %s7197_s0 = smov 0  }
  0x1e   :  { %s7199_s19 = smov 0   ;;  %s7201_s1 = smov 0  }
  0x1f   :  { %s7203_s20 = smov 0   ;;  %s7205_s21 = smov 0  }
  0x20 LB: > { %8696 = sst [smem:[#allocation26_spill]] %s7051_s0  ;;  %s7224_s12 = sadd.s32 4294967295, %s7067_s21   ;;  %s7067_s21 = sphi %s7205_s21, %s35_s21   ;;  %s7063_s20 = sphi %s7203_s20, %s8752_s20   ;;  %s7059_s1 = sphi %s7201_s1, %s8751_s1   ;;  %s7055_s19 = sphi %s7199_s19, %s8749_s19   ;;  %s7051_s0 = sphi %s7197_s0, %s8748_s0   ;;  %s7047_s30 = sphi %s7195_s30, %s8747_s30  }
  0x21   : > { %8697 = sst [smem:[#allocation27_spill]] %s7055_s19  ;;  %p134_p0 = scmp.ne.s32.totalorder %s7055_s19, %s7051_s0 }
  0x22   : > { %8698 = sst [smem:[#allocation28_spill]] %s7059_s1  ;;  %p135_p1 = scmp.eq.s32.totalorder %s7067_s21, 0 }
  0x23   : > { %8699 = sst [smem:[#allocation29_spill]] %s7067_s21  ;;  %p140_p2 = scmp.ne.s32.totalorder %s7051_s0, %s7047_s30 }
  0x24   : > { %p8669_p3 = scmp.eq.s32.totalorder %s7224_s12, 0  ;;  %p136_p4 = por %p135_p1, %p134_p0 }
  0x25   : > { %p5381_p5 = scmp.ge.s32.totalorder %s7067_s21, 1  ;;  %p500_p7 = scmp.lt.s32.totalorder %s7067_s21, 3 }
  0x26   : > { %p7235_p6 = por %p8669_p3, %p140_p2  ;;  %s7070_s24 = smov [#allocation6]  }
  0x27   : > { %p7240_p8 = pnand %p5381_p5, %p500_p7  ;;  %s516_s25 = sshll.u32 %s7070_s24, 4  ;;  %s517_s25 = int_to_ptr.vmem [resolvable:$true] %s516_s25 }
  0x28   : > { %s8700_s2 = scalar_select %p7235_p6, 1, 0 }
  0x29   : > { %p6153_p9 = pneg %p7240_p8  ;;  %p6188_p10 = scmp.lt.s32.totalorder %s7067_s21, 2 }
  0x2a   : > { %8701 = sst [smem:[#allocation30_spill]] %s8700_s2  ;;  %s44_s28 = sadd.s32 1, %s7063_s20 }
  0x2b   : > { %p7249_p11 = pnand %p6153_p9, %p8669_p3  ;;  %p7253_p12 = pnand %p6188_p10, %p136_p4 }
  0x2c   : > { %s6712_s29 = scalar_lea.vmem %s517_s25, 1024  ;;  %p6720_p5 = scmp.lt.s32.totalorder %s517_s25, %s517_s25 }
  0x2d   : > { %p6703_p13 = pneg %p7249_p11  ;;  %p6713_p0 = scmp.ne.s32.totalorder %s517_s25, %s6712_s29 }
  0x2e   : > { %p6721_p7 = scmp.lt.s32.totalorder %s6712_s29, %s6712_s29 }
  0x2f   : > { %p6715_p1 = pnand %p6713_p0, %p6703_p13 }
  0x30   : > { %p6722_p9 = por %p6721_p7, %p6720_p5 }
  0x31   : > { %p6716_p2 = pneg %p6715_p1 }
  0x33   : > { %p6723_p3 = pnand %p6722_p9, %p6716_p2 }
  0x35   : > { %6726 = shalt.err (!%p6723_p3)
}
  0x36   : > { %s8670_s30 = smov 128   ;;  %s8671_s24 = smov 8  }
  0x37   : > { %s8705_s16 = sld [smem:[#allocation34_spill]]  ;;  %p45_p4 = scmp.ge.s32.totalorder %s44_s28, 2 }
  0x38   : > { %s568_s29 = sand.u32 1, %s7067_s21   ;;  %s7273_s15 = sand.u32 1, %s7055_s19  }
  0x39   : > { %s8754_s28 = smov (%p45_p4, %s44_s28), 0  ;;  %s7280_s6 = sshll.u32 %s7063_s20, 4 }
  0x3a   : > { %8706 = sst [smem:[#allocation31_spill]] %s8754_s28  ;;  %s124_s14 = ssub.s32 %s7063_s20, %s8754_s28 }
  0x3b   : > { %p125_p3 = scmp.eq.s32.totalorder %s124_s14, 0  ;;  %s8707_s4 = sld [smem:[#allocation37_spill]] }
  0x3c   : > { %s571_s22 = scalar_lea.vmem [#allocation11], %s7273_s15  ;;  %s7293_s21 = scalar_lea.sflag [#allocation7], %s568_s29 }
  0x3d   : > { %6156 = dma.hbm_to_vmem [thread:$0]  (!%p7249_p11), %s8705_s16, 1024, %s517_s25, [#allocation7], %s8670_s30, %s8670_s30, %s8671_s24  }
  0x3e   : > { %s578_s16 = sshll.u32 %s571_s22, 4  ;;  %s6119_s25 = smul.u32 192, %s7273_s15  ;;  %s579_s16 = int_to_ptr.vmem [resolvable:$true] %s578_s16 }
  0x3f   : > { %s8708_s30 = sadd.s32 1, %s7055_s19  ;;  %p7297_p10 = pneg %p7253_p12 }
  0x40   : > { %s7291_s24 = scalar_select %p125_p3, %s7055_s19, %s8708_s30  }
  0x41   : > { %s576_s18 = scalar_lea.hbm %s8707_s4, %s7280_s6  ;;  %s6740_s14 = scalar_lea.vmem %s579_s16, 16 }
  0x42   : > { %8709 = sst [smem:[#allocation32_spill]] %s7291_s24  ;;  %p6741_p0 = scmp.ne.s32.totalorder %s579_s16, %s6740_s14 }
  0x43   : > { %s7073_s3 = smov [#allocation11]  }
  0x44   : > { %p6743_p1 = pnand %p6741_p0, %p7297_p10  ;;  %s6745_s10 = sshll.u32 %s7073_s3, 4  ;;  %s6746_s10 = int_to_ptr.vmem [resolvable:$false] %s6745_s10 }
  0x45   : > { %s6747_s22 = scalar_lea.vmem %s6746_s10, 32  ;;  %p6748_p5 = scmp.lt.s32.totalorder %s579_s16, %s6746_s10 }
  0x46   : > { %p6744_p2 = pneg %p6743_p1  ;;  %p6749_p7 = scmp.lt.s32.totalorder %s6747_s22, %s6740_s14 }
  0x48   : > { %p6750_p9 = por %p6749_p7, %p6748_p5 }
  0x4a   : > { %p6751_p4 = pnand %p6750_p9, %p6744_p2 }
  0x4c   : > { %6754 = shalt.err (!%p6751_p4)
}
  0x4d   : > { %6166 = dma.hbm_to_vmem [thread:$0]  (!%p7253_p12), %s576_s18, 16, %s579_s16, %s7293_s21  }
  0x4e   : > { %s6120_s30 = smul.u32 3072, %s7063_s20  ;;  %s589_s29 = scalar_lea.vmem [#allocation12], %s6119_s25 }
  0x4f   : > { %s596_s4 = sshll.u32 %s589_s29, 4  ;;  %s8711_s5 = sld [smem:[#allocation38_spill]]  ;;  %s597_s4 = int_to_ptr.vmem [resolvable:$true] %s596_s4 }
  0x50   : > { %s6768_s1 = scalar_lea.vmem %s597_s4, 3072  ;;  %s7074_s14 = smov [#allocation12]  }
  0x51   : > { %p6769_p3 = scmp.ne.s32.totalorder %s597_s4, %s6768_s1  ;;  %s6773_s10 = sshll.u32 %s7074_s14, 4  ;;  %s6774_s10 = int_to_ptr.vmem [resolvable:$false] %s6773_s10 }
  0x52   : > { %s6775_s22 = scalar_lea.vmem %s6774_s10, 6144  ;;  %p6776_p2 = scmp.lt.s32.totalorder %s597_s4, %s6774_s10 }
  0x53   : > { %p6771_p0 = pnand %p6769_p3, %p7297_p10  ;;  %p6777_p5 = scmp.lt.s32.totalorder %s6775_s22, %s6768_s1 }
  0x55   : > { %s595_s3 = scalar_lea.hbm %s8711_s5, %s6120_s30  ;;  %p6772_p1 = pneg %p6771_p0 }
  0x56   : > { %p6778_p7 = por %p6777_p5, %p6776_p2 }
  0x58   : > { %p6779_p9 = pnand %p6778_p7, %p6772_p1 }
  0x5a   : > { %6782 = shalt.err (!%p6779_p9)
}
  0x5b   : > { %s7075_s18 = smov 192   ;;  %s7076_s19 = smov 12  }
  0x5c   : > { %6169 = dma.hbm_to_vmem [thread:$0]  (!%p7253_p12), %s595_s3, 3072, %s597_s4, %s7293_s21, %s7075_s18, %s7075_s18, %s7076_s19  }
  0x5d   : > { %s5388_s24 = sshll.u32 %s7273_s15, 6  ;;  %s5631_s16 = sshll.u32 %s7063_s20, 10 }
  0x5e   : > { %s8712_s7 = sld [smem:[#allocation40_spill]]  ;;  %s617_s1 = scalar_lea.vmem [#allocation13], %s5388_s24 }
  0x5f   : > { %s624_s14 = sshll.u32 %s617_s1, 4  ;;  %s8713_s8 = sld [smem:[#allocation41_spill]]  ;;  %s625_s14 = int_to_ptr.vmem [resolvable:$true] %s624_s14 }
  0x60   : > { %s6796_s2 = scalar_lea.vmem %s625_s14, 1024  ;;  %s7077_s0 = smov [#allocation13]  }
  0x61   : > { %p6797_p4 = scmp.ne.s32.totalorder %s625_s14, %s6796_s2  ;;  %s6801_s4 = sshll.u32 %s7077_s0, 4  ;;  %s6802_s4 = int_to_ptr.vmem [resolvable:$false] %s6801_s4 }
  0x62   : > { %s6803_s3 = scalar_lea.vmem %s6802_s4, 2048  ;;  %p6804_p1 = scmp.lt.s32.totalorder %s625_s14, %s6802_s4 }
  0x63   : > { %p6799_p3 = pnand %p6797_p4, %p7297_p10  ;;  %p6805_p2 = scmp.lt.s32.totalorder %s6803_s3, %s6796_s2 }
  0x64   : > { %s623_s29 = scalar_lea.hbm %s8712_s7, %s5631_s16 }
  0x65   : > { %s642_s5 = scalar_lea.hbm %s8713_s8, %s7280_s6  ;;  %p6800_p0 = pneg %p6799_p3 }
  0x66   : > { %p6806_p5 = por %p6805_p2, %p6804_p1 }
  0x68   : > { %p6807_p7 = pnand %p6806_p5, %p6800_p0 }
  0x6a   : > { %6810 = shalt.err (!%p6807_p7)
}
  0x6b   : > { %s7078_s18 = smov 64   ;;  %s7079_s19 = smov 4  }
  0x6c   : > { %6172 = dma.hbm_to_vmem [thread:$0]  (!%p7253_p12), %s623_s29, 1024, %s625_s14, %s7293_s21, %s7078_s18, %s7078_s18, %s7079_s19  }
  0x6d   : > { %s637_s0 = scalar_lea.vmem [#allocation14], %s7273_s15  ;;  %s8714_s9 = sld [smem:[#allocation42_spill]] }
  0x6e   : > { %s644_s24 = sshll.u32 %s637_s0, 4  ;;  %s7080_s1 = smov [#allocation14]   ;;  %s645_s24 = int_to_ptr.vmem [resolvable:$true] %s644_s24 }
  0x6f   : > { %s6824_s30 = scalar_lea.vmem %s645_s24, 16  ;;  %s6829_s10 = sshll.u32 %s7080_s1, 4  ;;  %s6830_s10 = int_to_ptr.vmem [resolvable:$false] %s6829_s10 }
  0x70   : > { %p6825_p9 = scmp.ne.s32.totalorder %s645_s24, %s6824_s30  ;;  %s6831_s22 = scalar_lea.vmem %s6830_s10, 32 }
  0x71   : > { %p6832_p0 = scmp.lt.s32.totalorder %s645_s24, %s6830_s10  ;;  %p6833_p1 = scmp.lt.s32.totalorder %s6831_s22, %s6824_s30 }
  0x72   : > { %p6827_p4 = pnand %p6825_p9, %p7297_p10 }
  0x73   : > { %s659_s25 = scalar_lea.hbm %s8714_s9, %s7280_s6  ;;  %p6834_p2 = por %p6833_p1, %p6832_p0 }
  0x74   : > { %p6828_p3 = pneg %p6827_p4 }
  0x76   : > { %p6835_p5 = pnand %p6834_p2, %p6828_p3 }
  0x78   : > { %6838 = shalt.err (!%p6835_p5)
}
  0x79   : > { %6175 = dma.hbm_to_vmem [thread:$0]  (!%p7253_p12), %s642_s5, 16, %s645_s24, %s7293_s21  }
  0x7a   : > { %s654_s4 = scalar_lea.vmem [#allocation15], %s7273_s15  ;;  %s7081_s0 = smov [#allocation9]  }
  0x7b   : > { %s661_s3 = sshll.u32 %s654_s4, 4  ;;  %s529_s16 = sshll.u32 %s7081_s0, 4  ;;  %s662_s3 = int_to_ptr.vmem [resolvable:$true] %s661_s3  ;;  %s530_s16 = int_to_ptr.vmem [resolvable:$true] %s529_s16 }
  0x7c   : > { %s6852_s2 = scalar_lea.vmem %s662_s3, 16  ;;  %s7082_s30 = smov [#allocation15]  }
  0x7d   : > { %p6853_p7 = scmp.ne.s32.totalorder %s662_s3, %s6852_s2  ;;  %s6857_s1 = sshll.u32 %s7082_s30, 4  ;;  %s6858_s1 = int_to_ptr.vmem [resolvable:$false] %s6857_s1 }
  0x7e   : > { %s6859_s10 = scalar_lea.vmem %s6858_s1, 32  ;;  %p6860_p3 = scmp.lt.s32.totalorder %s662_s3, %s6858_s1 }
  0x7f   : > { %p6855_p9 = pnand %p6853_p7, %p7297_p10  ;;  %p6861_p0 = scmp.lt.s32.totalorder %s6859_s10, %s6852_s2 }
  0x81   : > { %p6856_p4 = pneg %p6855_p9  ;;  %p6862_p1 = por %p6861_p0, %p6860_p3 }
  0x83   : > { %p6863_p2 = pnand %p6862_p1, %p6856_p4 }
  0x85   : > { %6866 = shalt.err (!%p6863_p2)
}
  0x86   : > { %6178 = dma.hbm_to_vmem [thread:$0]  (!%p7253_p12), %s659_s25, 16, %s662_s3, %s7293_s21  }
  0x87   : > { %s5393_s22 = sshll.u32 %s7273_s15, 8  ;;  %s6878_s29 = scalar_lea.vmem %s530_s16, 256 }
  0x88   : > { %p6879_p5 = scmp.ne.s32.totalorder %s530_s16, %s6878_s29  ;;  %p6886_p4 = scmp.lt.s32.totalorder %s530_s16, %s530_s16 }
  0x89   : > { %p6887_p3 = scmp.lt.s32.totalorder %s6878_s29, %s6878_s29 }
  0x8a   : > { %p6881_p7 = pnand %p6879_p5, %p6703_p13 }
  0x8b   : > { %p6888_p0 = por %p6887_p3, %p6886_p4 }
  0x8c   : > { %p6882_p9 = pneg %p6881_p7 }
  0x8e   : > { %p6889_p1 = pnand %p6888_p0, %p6882_p9 }
  0x90   : > { %6892 = shalt.err (!%p6889_p1)
}
  0x91   : > { %s8715_s14 = smov 8   ;;  %s8716_s6 = smov 128  }
  0x92   : > { %s8717_s3 = sld [smem:[#allocation35_spill]]  ;;  %s5632_s0 = sshll.u32 %s7063_s20, 12 }
  0x93   : > { %s684_s1 = scalar_lea.hbm %s8661_s11, %s5632_s0  ;;  %s678_s10 = scalar_lea.vmem [#allocation16], %s5393_s22 }
  0x94   : > { %s685_s5 = sshll.u32 %s678_s10, 4  ;;  %s7083_s29 = smov [#allocation16]   ;;  %s686_s5 = int_to_ptr.vmem [resolvable:$true] %s685_s5 }
  0x95   : > { %s6906_s24 = scalar_lea.vmem %s686_s5, 4096  ;;  %s6911_s4 = sshll.u32 %s7083_s29, 4  ;;  %s6912_s4 = int_to_ptr.vmem [resolvable:$false] %s6911_s4 }
  0x96   : > { %p6907_p2 = scmp.ne.s32.totalorder %s686_s5, %s6906_s24  ;;  %s6913_s25 = scalar_lea.vmem %s6912_s4, 8192 }
  0x97   : > { %p6914_p9 = scmp.lt.s32.totalorder %s686_s5, %s6912_s4  ;;  %p6915_p4 = scmp.lt.s32.totalorder %s6913_s25, %s6906_s24 }
  0x98   : > { %6159 = dma.hbm_to_vmem [thread:$0]  (!%p7249_p11), %s8717_s3, 256, %s530_s16, [#allocation10], %s8716_s6, %s8716_s6, %s8715_s14  }
  0x99   : > { %p6909_p5 = pnand %p6907_p2, %p7297_p10  ;;  %p6916_p3 = por %p6915_p4, %p6914_p9 }
  0x9b   : > { %p6910_p7 = pneg %p6909_p5 }
  0x9d   : > { %p6917_p0 = pnand %p6916_p3, %p6910_p7 }
  0x9f   : > { %6920 = shalt.err (!%p6917_p0)
}
  0xa0   : > { %s7084_s16 = smov 256   ;;  %s7085_s14 = smov 16  }
  0xa1   : > { %6181 = dma.hbm_to_vmem [thread:$0]  (!%p7253_p12), %s684_s1, 4096, %s686_s5, %s7293_s21, %s7084_s16, %s7084_s16, %s7085_s14  }
  0xa2   : > { %s7086_s6 = smov [#allocation18]   ;;  %s7384_s10 = scalar_lea.hbm %s8663_s13, %s5632_s0 }
  0xa3   : > { %s548_s3 = sshll.u32 %s7086_s6, 4  ;;  %s549_s3 = int_to_ptr.vmem [resolvable:$true] %s548_s3 }
  0xa4   : > { %s6932_s29 = scalar_lea.vmem %s549_s3, 1024  ;;  %p6940_p7 = scmp.lt.s32.totalorder %s549_s3, %s549_s3 }
  0xa5   : > { %p6933_p1 = scmp.ne.s32.totalorder %s549_s3, %s6932_s29  ;;  %p6941_p9 = scmp.lt.s32.totalorder %s6932_s29, %s6932_s29 }
  0xa7   : > { %p6935_p2 = pnand %p6933_p1, %p6703_p13  ;;  %p6942_p4 = por %p6941_p9, %p6940_p7 }
  0xa9   : > { %p6936_p5 = pneg %p6935_p2 }
  0xab   : > { %p6943_p3 = pnand %p6942_p4, %p6936_p5 }
  0xad   : > { %6946 = shalt.err (!%p6943_p3)
}
  0xae   : > { %6162 = dma.hbm_to_vmem [thread:$0]  (!%p7249_p11), %s8667_s17, 1024, %s549_s3, [#allocation10], %s7078_s18, %s7078_s18, %s7079_s19  }
  0xaf   : > { %s706_s0 = scalar_lea.vmem [#allocation17], %s5393_s22  ;;  %s7087_s25 = smov [#allocation17]  }
  0xb0   : > { %s713_s24 = sshll.u32 %s706_s0, 4  ;;  %s6965_s26 = sshll.u32 %s7087_s25, 4  ;;  %s714_s24 = int_to_ptr.vmem [resolvable:$true] %s713_s24  ;;  %s6966_s26 = int_to_ptr.vmem [resolvable:$false] %s6965_s26 }
  0xb1   : > { %s6960_s4 = scalar_lea.vmem %s714_s24, 4096  ;;  %s6967_s16 = scalar_lea.vmem %s6966_s26, 8192 }
  0xb2   : > { %p6961_p13 = scmp.ne.s32.totalorder %s714_s24, %s6960_s4  ;;  %p6968_p2 = scmp.lt.s32.totalorder %s714_s24, %s6966_s26 }
  0xb3   : > { %p6969_p5 = scmp.lt.s32.totalorder %s6967_s16, %s6960_s4 }
  0xb4   : > { %p6963_p0 = pnand %p6961_p13, %p7297_p10 }
  0xb5   : > { %p6970_p7 = por %p6969_p5, %p6968_p2 }
  0xb6   : > { %p6964_p1 = pneg %p6963_p0 }
  0xb8   : > { %p6971_p9 = pnand %p6970_p7, %p6964_p1 }
  0xba   : > { %6974 = shalt.err (!%p6971_p9)
}
  0xbb   : > { %6184 = dma.hbm_to_vmem [thread:$0]  (!%p7253_p12), %s7384_s10, 4096, %s714_s24, %s7293_s21, %s7078_s18, %s7078_s18, %s7079_s19  }
  0xbc   : > { %731 = sbr.rel (%p7240_p8) target bundleno = 4880 (0x1310), region = 88  ;;  %p8718_p11 = scmp.eq.s32.totalorder (!%p7240_p8), %s7224_s12, 0 }
  0xc1   : > { %7026 = dma.done.wait (%p8718_p11), [#allocation7], 1024   ;;  %p8719_p10 = pmov %p8718_p11 }
  0xc3   : > { %7028 = vsyncadd (%p8719_p10), [#allocation7], 4294966272  ;;  %p8720_p4 = pmov %p8719_p10 }
  0xc5   : > { %7030 = dma.done.wait (%p8720_p4), [#allocation10], 256   ;;  %p8721_p3 = pmov %p8720_p4 }
  0xc6   : > { %s8722_s15 = sld [smem:[#allocation26_spill]]  ;;  %s741_s28 = sand.u32 1, %s7224_s12  }
  0xc7   : > { %7032 = vsyncadd (%p8721_p3), [#allocation10], 4294967040  ;;  %s742_s23 = scalar_lea.sflag [#allocation7], %s741_s28 }
  0xcc   : > { %s7420_s21 = sand.u32 1, %s8722_s15  }
  0xcd   : > { %7034 = dma.done.wait (%p7235_p6), %s742_s23, 12336  }
  0xce   : > { %7036 = vsyncadd (%p7235_p6), %s742_s23, 4294954960  ;;  %s6121_s19 = smul.u32 192, %s7420_s21  ;;  %s5402_s22 = sshll.u32 %s7420_s21, 6 }
  0xcf   : > { %s5403_s14 = sshll.u32 %s7420_s21, 8  ;;  %s7432_s3 = scalar_lea.vmem [#allocation13], %s5402_s22 }
  0xd0   : > { %s7430_s6 = scalar_lea.vmem [#allocation12], %s6121_s19  ;;  %s7436_s10 = scalar_lea.vmem [#allocation16], %s5403_s14 }
  0xd1   : > { %s7438_s29 = scalar_lea.vmem [#allocation17], %s5403_s14  ;;  %p8724_p6 = pmov %p8721_p3 }
  0xd2   : > { %p8725_p8 = pmov %p8721_p3 }
  0xd3   : > { %7038 = dma.done.wait (%p8724_p6), [#allocation10], 1024  }
  0xd4   : > { %7040 = vsyncadd (%p8725_p8), [#allocation10], 4294966272  ;;  %s8726_s1 = sld [smem:[#allocation28_spill]] }
  0xd5   : > { %s8727_s4 = sld [smem:[#allocation36_spill]] }
  0xd6   : > { %s8728_s27 = sld [smem:[#allocation43_spill]] }
  0xd7   : > { %s8729_s14 = sld [smem:[#allocation39_spill]] }
  0xd8   : > { %s8730_s7 = sld [smem:[#allocation44_spill]] }
  0xd9   : > { %s8731_s9 = sld [smem:[#allocation45_spill]] }
  0xda   : > { %p891_p12 = scmp.lt.s32.totalorder %s8726_s1, 1  ;;  %p5407_p13 = scmp.ne.s32.totalorder %s8726_s1, 0 }
  0xdc   : > { %s7446_s5 = scalar_select %p891_p12, %s8726_s1, 1 }
  0xdd   : > { %912 = sbr.rel (%p5407_p13) target bundleno = 234 (0xea), region = 132 }
  0xde   : > { %s893_s25 = scalar_lea.vmem %s8727_s4, %s7446_s5  ;;  %s6122_s26 = smul.u32 3, %s7446_s5 }
  0xdf   : > { %s900_s28 = scalar_lea.vmem %s8728_s27, %s7446_s5  ;;  %s5406_s23 = sshll.u32 %s7446_s5, 2 }
  0xe0   : > { %s7461_s30 = scalar_lea.vmem %s8729_s14, %s6122_s26  ;;  %s7466_s0 = scalar_lea.vmem %s8730_s7, %s5406_s23 }
  0xe1   : > { %s907_s4 = scalar_lea.vmem %s8731_s9, %s7446_s5 }
  0xe2   : > { %v913_v0 = vld [vmem:[#allocation6] sm:$0xff]  ;;  %v914_v2 = vld [vmem:[#allocation6 + $0x8] sm:$0xff]  ;;  %v915_v5 = vld [vmem:[#allocation6 + $0x10] sm:$0xff] }
  0xe3   : > { %v921_v1 = vld [vmem:[#allocation9] sm:$0xff]  ;;  %v922_v4 = vld [vmem:[#allocation9 + $0x8] sm:$0xff]  ;;  %v916_v6 = vld [vmem:[#allocation6 + $0x18] sm:$0xff] }
  0xe4   : > { %v923_v3 = vadd.f32 %v921_v1, %v913_v0  ;;  %v924_v7 = vadd.f32 %v922_v4, %v914_v2  ;;  %v925_v8 = vadd.f32 %v921_v1, %v915_v5  ;;  %v926_v9 = vadd.f32 %v922_v4, %v916_v6  ;;  %v917_v10 = vld [vmem:[#allocation6 + $0x20] sm:$0xff]  ;;  %v918_v11 = vld [vmem:[#allocation6 + $0x28] sm:$0xff]  ;;  %v919_v12 = vld [vmem:[#allocation6 + $0x30] sm:$0xff] }
  0xe5   : > { %v927_v13 = vadd.f32 %v921_v1, %v917_v10  ;;  %v928_v14 = vadd.f32 %v922_v4, %v918_v11  ;;  %v929_v15 = vadd.f32 %v921_v1, %v919_v12  ;;  %v920_v16 = vld [vmem:[#allocation6 + $0x38] sm:$0xff] }
  0xe6   : > { %931 = vst [vmem:[#allocation2] sm:$0xff] %v923_v3  ;;  %932 = vst [vmem:[#allocation2 + $0x8] sm:$0xff] %v924_v7  ;;  %v930_v17 = vadd.f32 %v922_v4, %v920_v16 }
  0xe7   : > { %933 = vst [vmem:[#allocation2 + $0x10] sm:$0xff] %v925_v8  ;;  %934 = vst [vmem:[#allocation2 + $0x18] sm:$0xff] %v926_v9 }
  0xe8   : > { %935 = vst [vmem:[#allocation2 + $0x20] sm:$0xff] %v927_v13  ;;  %936 = vst [vmem:[#allocation2 + $0x28] sm:$0xff] %v928_v14 }
  0xe9   : > { %937 = vst [vmem:[#allocation2 + $0x30] sm:$0xff] %v929_v15  ;;  %938 = vst [vmem:[#allocation2 + $0x38] sm:$0xff] %v930_v17 }
  0xea PF: > { %v6263_v26 = vld [vmem:[%s7430_s6 + $0xac] ss:$12 sps:$4 sm:$0xff]   ;;  %v6265_v27 = vld [vmem:[%s7430_s6 + $0xa8] ss:$12 sps:$4 sm:$0xff]   ;;  %v6268_v60 = vld [vmem:[%s7430_s6 + $0xb0] ss:$12 sps:$4 sm:$0xff]  }
  0xeb   : > { %1247 = vmatprep.subr.bf16.mxu0 %v6263_v26  ;;  %v6266_v59 = vld [vmem:[%s7430_s6 + $0x94] ss:$12 sps:$4 sm:$0xff]   ;;  %v6269_v61 = vld [vmem:[%s7430_s6 + $0x90] ss:$12 sps:$4 sm:$0xff]   ;;  %5843 = vmatprep.subr.bf16.mxu1 %v6268_v60  ;;  %v6272_v0 = vld [vmem:[%s7430_s6 + $0x98] ss:$12 sps:$4 sm:$0xff]  }
  0xec   : > { %1248 = vmatpush1.bf16.msra.mxu0 %v6265_v27  ;;  %5844 = vmatpush3.bf16.msra.mxu1 %v6268_v60  ;;  %v6270_v63 = vld [vmem:[%s7430_s6 + $0x7c] ss:$12 sps:$4 sm:$0xff]   ;;  %v6273_v1 = vld [vmem:[%s7430_s6 + $0x78] ss:$12 sps:$4 sm:$0xff]   ;;  %v6276_v3 = vld [vmem:[%s7430_s6 + $0x80] ss:$12 sps:$4 sm:$0xff]  }
  0xed   : > { %v939_v18 = vld [vmem:[#allocation2] sm:$0xff]  ;;  %v940_v20 = vld [vmem:[#allocation2 + $0x8] sm:$0xff]  ;;  %1249 = vmatprep.subr.bf16.mxu0 %v6266_v59  ;;  %5845 = vmatprep.subr.bf16.mxu1 %v6272_v0  ;;  %v7088_v16 = vmov 0   ;;  %s8733_s18 = scalar_lea.vmem [#allocation11], %s7420_s21  ;;  %vm7090_vm0 = vmmov 0   ;;  %vm1412_vm1 = vcmask 261120  }
  0xee   : > { %v941_v19 = vld [vmem:[#allocation2 + $0x10] sm:$0xff]  ;;  %949 = vadd.xlane.f32.xlu0 %v939_v18  ;;  %v942_v21 = vld [vmem:[#allocation2 + $0x18] sm:$0xff]  ;;  %1279 = vmatprep.mubr.bf16.mxu0 %v7088_v16  ;;  %vm1613_vm3 = vcmask 130048   ;;  %vm1914_vm5 = vcmask 257024   ;;  %s7092_s2 = smov 64   ;;  %vm2475_vm6 = vcmask 519424  }
  0xef   : > { %953 = vadd.xlane.f32.xlu1 %v941_v19  ;;  %v943_v22 = vld [vmem:[#allocation2 + $0x20] sm:$0xff]  ;;  %v944_v23 = vld [vmem:[#allocation2 + $0x28] sm:$0xff]  ;;  %vm3024_vm7 = vcmask 781824   ;;  %vm3573_vm8 = vcmask 1044224   ;;  %s8742_s5 = sld [smem:[#allocation28_spill]] }
  0xf0   : > { %v945_v24 = vld [vmem:[#allocation2 + $0x30] sm:$0xff]  ;;  %v946_v25 = vld [vmem:[#allocation2 + $0x38] sm:$0xff]  ;;  %1250 = vmatpush1.bf16.msra.mxu0 %v6269_v61  ;;  %5846 = vmatpush3.bf16.msra.mxu1 %v6272_v0 }
  0xf1   : > { %1251 = vmatprep.subr.bf16.mxu0 %v6270_v63  ;;  %v6274_v2 = vld [vmem:[%s7430_s6 + $0x64] ss:$12 sps:$4 sm:$0xff]   ;;  %v6277_v4 = vld [vmem:[%s7430_s6 + $0x60] ss:$12 sps:$4 sm:$0xff]   ;;  %5847 = vmatprep.subr.bf16.mxu1 %v6276_v3  ;;  %v6280_v6 = vld [vmem:[%s7430_s6 + $0x68] ss:$12 sps:$4 sm:$0xff]  }
  0xf2   : > { %951 = vadd.xlane.f32.xlu0 %v940_v20  ;;  %v6278_v5 = vld [vmem:[%s7430_s6 + $0x4c] ss:$12 sps:$4 sm:$0xff]   ;;  %v6281_v7 = vld [vmem:[%s7430_s6 + $0x48] ss:$12 sps:$4 sm:$0xff]   ;;  %v6284_v9 = vld [vmem:[%s7430_s6 + $0x50] ss:$12 sps:$4 sm:$0xff]  }
  0xf3   : > { %955 = vadd.xlane.f32.xlu1 %v942_v21  ;;  %v6282_v8 = vld [vmem:[%s7430_s6 + $0x34] ss:$12 sps:$4 sm:$0xff]   ;;  %v6285_v10 = vld [vmem:[%s7430_s6 + $0x30] ss:$12 sps:$4 sm:$0xff]   ;;  %v6288_v12 = vld [vmem:[%s7430_s6 + $0x38] ss:$12 sps:$4 sm:$0xff]  }
  0xf4   : > { %1252 = vmatpush1.bf16.msra.mxu0 %v6273_v1  ;;  %5848 = vmatpush3.bf16.msra.mxu1 %v6276_v3  ;;  %v6286_v11 = vld [vmem:[%s7430_s6 + $0x1c] ss:$12 sps:$4 sm:$0xff]   ;;  %v6289_v13 = vld [vmem:[%s7430_s6 + $0x18] ss:$12 sps:$4 sm:$0xff]   ;;  %v6292_v15 = vld [vmem:[%s7430_s6 + $0x20] ss:$12 sps:$4 sm:$0xff]  }
  0xf5   : > { %1253 = vmatprep.subr.bf16.mxu0 %v6274_v2  ;;  %5849 = vmatprep.subr.bf16.mxu1 %v6280_v6  ;;  %v6290_v14 = vld [vmem:[%s7430_s6 + $0x4] ss:$12 sps:$4 sm:$0xff]   ;;  %v6293_v17 = vld [vmem:[%s7430_s6] ss:$12 sps:$4 sm:$0xff]   ;;  %p5610_p0 = scmp.ne.s32.totalorder %s8742_s5, 1 }
  0xf6   : > { %957 = vadd.xlane.f32.xlu0 %v943_v22  ;;  %s4942_s15 = sld [smem:[#allocation5]] (!%p5610_p0) }
  0xf7   : > { %959 = vadd.xlane.f32.xlu1 %v944_v23  ;;  %s5611_s27 = sld [smem:[#allocation5 + $0x1]] (!%p5610_p0) }
  0xf8   : > { %1254 = vmatpush1.bf16.msra.mxu0 %v6277_v4  ;;  %5850 = vmatpush3.bf16.msra.mxu1 %v6280_v6  ;;  %s5615_s23 = sld [smem:[#allocation5 + $0x3]] (!%p5610_p0) }
  0xf9   : > { %1255 = vmatprep.subr.bf16.mxu0 %v6278_v5  ;;  %5851 = vmatprep.subr.bf16.mxu1 %v6284_v9  ;;  %s8743_s7 = sld [smem:[#allocation46_spill]] (!%p5610_p0) }
  0xfa   : > { %961 = vadd.xlane.f32.xlu0 %v945_v24 }
  0xfb   : > { %963 = vadd.xlane.f32.xlu1 %v946_v25 }
  0xfc   : > { %1256 = vmatpush1.bf16.msra.mxu0 %v6281_v7  ;;  %5852 = vmatpush3.bf16.msra.mxu1 %v6284_v9  ;;  %s4943_s19 = scalar_lea.vmem (!%p5610_p0), [#allocation2], %s4942_s15 }
  0xfd   : > { %1257 = vmatprep.subr.bf16.mxu0 %v6282_v8  ;;  %5853 = vmatprep.subr.bf16.mxu1 %v6288_v12  ;;  %s5232_s22 = scalar_lea.vmem (!%p5610_p0), [#allocation2], %s5611_s27 }
 0x100   : > { %1258 = vmatpush1.bf16.msra.mxu0 %v6285_v10  ;;  %5854 = vmatpush3.bf16.msra.mxu1 %v6288_v12 }
 0x101   : > { %1259 = vmatprep.subr.bf16.mxu0 %v6286_v11  ;;  %5855 = vmatprep.subr.bf16.mxu1 %v6292_v15 }
 0x104   : > { %1260 = vmatpush1.bf16.msra.mxu0 %v6289_v13  ;;  %5856 = vmatpush3.bf16.msra.mxu1 %v6292_v15 }
 0x105   : > { %1261 = vmatprep.subr.bf16.mxu0 %v6290_v14 }
 0x108   : > { %1262 = vmatpush1.bf16.msra.mxu0 %v6293_v17 }
 0x177   : > { %v950_v28 = vpop.xlane.xlu0 %949 }
 0x178   : > { %v954_v29 = vpop.xlane.xlu1 %953  ;;  %v966_v30 = vmul.f32 0.0078125, %v950_v28 }
 0x179   : > { %v968_v31 = vmul.f32 0.0078125, %v954_v29 }
 0x17a   : > { %v7475_v32 = vsub.f32 %v939_v18, %v966_v30  ;;  %v6294_v18 = vld [vmem:[%s7430_s6 + $0x8] ss:$12 sps:$4 sm:$0xff]   ;;  %s7091_s6 = smov 96  }
 0x17b   : > { %v7477_v33 = vsub.f32 %v941_v19, %v968_v31  ;;  %v952_v34 = vpop.xlane.xlu0 %951  ;;  %5857 = vmatprep.subr.bf16.mxu1 %v6294_v18 }
 0x17c   : > { %v956_v35 = vpop.xlane.xlu1 %955  ;;  %v967_v36 = vmul.f32 0.0078125, %v952_v34  ;;  %v982_v37 = vmul.f32 %v7475_v32, %v7475_v32  ;;  %5858 = vmatpush3.bf16.msra.mxu1 %v6294_v18 }
 0x17d   : > { %v969_v38 = vmul.f32 0.0078125, %v956_v35  ;;  %v984_v39 = vmul.f32 %v7477_v33, %v7477_v33 }
 0x17e   : > { %990 = vadd.xlane.f32.xlu0 %v982_v37  ;;  %v7483_v40 = vsub.f32 %v940_v20, %v967_v36 }
 0x17f   : > { %v7485_v41 = vsub.f32 %v942_v21, %v969_v38  ;;  %v958_v42 = vpop.xlane.xlu0 %957 }
 0x180   : > { %v960_v43 = vpop.xlane.xlu1 %959  ;;  %v970_v44 = vmul.f32 0.0078125, %v958_v42  ;;  %v983_v45 = vmul.f32 %v7483_v40, %v7483_v40 }
 0x181   : > { %v971_v46 = vmul.f32 0.0078125, %v960_v43  ;;  %v985_v47 = vmul.f32 %v7485_v41, %v7485_v41 }
 0x182   : > { %994 = vadd.xlane.f32.xlu0 %v984_v39  ;;  %992 = vadd.xlane.f32.xlu1 %v983_v45  ;;  %v7491_v48 = vsub.f32 %v943_v22, %v970_v44 }
 0x183   : > { %v7493_v49 = vsub.f32 %v944_v23, %v971_v46  ;;  %v962_v50 = vpop.xlane.xlu0 %961 }
 0x184   : > { %v964_v51 = vpop.xlane.xlu1 %963  ;;  %v972_v52 = vmul.f32 0.0078125, %v962_v50  ;;  %v986_v53 = vmul.f32 %v7491_v48, %v7491_v48 }
 0x185   : > { %v973_v54 = vmul.f32 0.0078125, %v964_v51  ;;  %v987_v55 = vmul.f32 %v7493_v49, %v7493_v49  ;;  %v5408_v51 = vld [vmem:[%s893_s25] ss:$0 sm:$0xff] }
 0x186   : > { %996 = vadd.xlane.f32.xlu1 %v985_v47  ;;  %998 = vadd.xlane.f32.xlu0 %v986_v53  ;;  %v7499_v56 = vsub.f32 %v945_v24, %v972_v52 }
 0x187   : > { %v7501_v57 = vsub.f32 %v946_v25, %v973_v54 }
 0x188   : > { %v988_v58 = vmul.f32 %v7499_v56, %v7499_v56 }
 0x189   : > { %v989_v62 = vmul.f32 %v7501_v57, %v7501_v57 }
 0x18a   : > { %1000 = vadd.xlane.f32.xlu1 %v987_v55  ;;  %1002 = vadd.xlane.f32.xlu0 %v988_v58  ;;  %v5409_v58 = vld [vmem:[%s8733_s18] ss:$0 sm:$0xff]  ;;  %s8744_s18 = sld [smem:[#allocation47_spill]] (!%p5610_p0) }
 0x18e   : > { %1004 = vadd.xlane.f32.xlu1 %v989_v62 }
 0x207   : > { %v991_v19 = vpop.xlane.xlu0 %990 }
 0x208   : > { %v1006_v20 = vmul.f32 0.0078125, %v991_v19 }
 0x20a   : > { %v1014_v21 = vadd.f32 1e-05, %v1006_v20 }
 0x20b   : > { %v993_v22 = vpop.xlane.xlu1 %992  ;;  %v995_v23 = vpop.xlane.xlu0 %994 }
 0x20c   : > { %6387 = vrsqrt.f32 %v1014_v21  ;;  %v1007_v24 = vmul.f32 0.0078125, %v993_v22  ;;  %v1008_v25 = vmul.f32 0.0078125, %v995_v23  ;;  %v1102_v23 = vld [vmem:[%s7461_s30] sm:$0x7]  ;;  %s7093_s30 = smov 32  }
 0x20e   : > { %v1015_v26 = vadd.f32 1e-05, %v1007_v24  ;;  %v1016_v27 = vadd.f32 1e-05, %v1008_v25 }
 0x20f   : > { %v997_v28 = vpop.xlane.xlu1 %996  ;;  %v999_v29 = vpop.xlane.xlu0 %998 }
 0x210   : > { %6389 = vrsqrt.f32 %v1015_v26  ;;  %v1009_v30 = vmul.f32 0.0078125, %v997_v28  ;;  %v1010_v31 = vmul.f32 0.0078125, %v999_v29 }
 0x211   : > { %6391 = vrsqrt.f32 %v1016_v27 }
 0x212   : > { %v1017_v34 = vadd.f32 1e-05, %v1009_v30  ;;  %v1018_v35 = vadd.f32 1e-05, %v1010_v31 }
 0x213   : > { %v1001_v36 = vpop.xlane.xlu1 %1000  ;;  %v1003_v37 = vpop.xlane.xlu0 %1002 }
 0x214   : > { %6393 = vrsqrt.f32 %v1017_v34  ;;  %v1011_v38 = vmul.f32 0.0078125, %v1001_v36  ;;  %v1012_v39 = vmul.f32 0.0078125, %v1003_v37 }
 0x215   : > { %6395 = vrsqrt.f32 %v1018_v35 }
 0x216   : > { %v1019_v42 = vadd.f32 1e-05, %v1011_v38  ;;  %v1020_v43 = vadd.f32 1e-05, %v1012_v39 }
 0x217   : > { %v1005_v44 = vpop.xlane.xlu1 %1004 }
 0x218   : > { %6397 = vrsqrt.f32 %v1019_v42  ;;  %v1013_v45 = vmul.f32 0.0078125, %v1005_v44 }
 0x219   : > { %v6388_v46 = vpop.eup %6387  ;;  %6399 = vrsqrt.f32 %v1020_v43 }
 0x21a   : > { %v1021_v47 = vadd.f32 1e-05, %v1013_v45  ;;  %v1030_v50 = vmul.f32 %v6388_v46, %v7475_v32 }
 0x21c   : > { %6401 = vrsqrt.f32 %v1021_v47  ;;  %v1044_v55 = vmul.f32 %v5408_v51, %v1030_v50 }
 0x21d   : > { %v6390_v52 = vpop.eup %6389 }
 0x21e   : > { %v6392_v53 = vpop.eup %6391  ;;  %v1031_v54 = vmul.f32 %v6390_v52, %v7483_v40  ;;  %v1058_v32 = vadd.f32 %v5409_v58, %v1044_v55 }
 0x21f   : > { %v1032_v59 = vmul.f32 %v6392_v53, %v7477_v33 }
 0x220   : > { %v1045_v60 = vmul.f32 %v5408_v51, %v1031_v54 }
 0x221   : > { %v6394_v61 = vpop.eup %6393  ;;  %v1046_v62 = vmul.f32 %v5408_v51, %v1032_v59 }
 0x222   : > { %v6396_v63 = vpop.eup %6395  ;;  %v1059_v0 = vadd.f32 %v5409_v58, %v1045_v60  ;;  %v1033_v1 = vmul.f32 %v6394_v61, %v7485_v41 }
 0x223   : > { %v1034_v2 = vmul.f32 %v6396_v63, %v7491_v48  ;;  %v1060_v6 = vadd.f32 %v5409_v58, %v1046_v62 }
 0x224   : > { %v1066_v3 = vpack.c.bf16 %v1059_v0, %v1058_v32  ;;  %v1047_v4 = vmul.f32 %v5408_v51, %v1033_v1 }
 0x225   : > { %v6398_v5 = vpop.eup %6397  ;;  %v1048_v8 = vmul.f32 %v5408_v51, %v1034_v2 }
 0x226   : > { %v6400_v40 = vpop.eup %6399  ;;  %1280 = vmatmul.mubr.bf16.vlgmr.msra.gmra.mxu0 %v1066_v3  ;;  %5859 = vmatprep.mubr.bf16.mxu1 %v1066_v3  ;;  %v1061_v7 = vadd.f32 %v5409_v58, %v1047_v4  ;;  %v1035_v33 = vmul.f32 %v6398_v5, %v7493_v49 }
 0x227   : > { %1289 = vmatprep.mubr.bf16.mxu0 %v7088_v16  ;;  %v1036_v9 = vmul.f32 %v6400_v40, %v7499_v56  ;;  %v1062_v48 = vadd.f32 %v5409_v58, %v1048_v8  ;;  %v7089_v56 = vmov 0.0  }
 0x228   : > { %v1067_v10 = vpack.c.bf16 %v1061_v7, %v1060_v6  ;;  %v1049_v11 = vmul.f32 %v5408_v51, %v1035_v33  ;;  %5867 = vmatprep.subr.bf16.mxu1 %v7089_v56  ;;  %5879 = vmatprep.subr.bf16.mxu0 %v7089_v56 }
 0x229   : > { %v6402_v41 = vpop.eup %6401  ;;  %v1050_v14 = vmul.f32 %v5408_v51, %v1036_v9 }
 0x22a   : > { %5860 = vmatmul.mubr.bf16.vlgmr.msra.gmra.mxu1 %v1067_v10  ;;  %v1063_v12 = vadd.f32 %v5409_v58, %v1049_v11  ;;  %v1037_v13 = vmul.f32 %v6402_v41, %v7501_v57  ;;  %v1104_v57 = vlaneseq }
 0x22b   : > { %v1064_v18 = vadd.f32 %v5409_v58, %v1050_v14 }
 0x22c   : > { %v1068_v15 = vpack.c.bf16 %v1063_v12, %v1062_v48  ;;  %v1051_v17 = vmul.f32 %v5408_v51, %v1037_v13  ;;  %v7555_v20 = vshrl.u32 %v1104_v57, 7 }
 0x22e   : > { %1290 = vmatmul.mubr.bf16.gmra.mxu0 %v1067_v10  ;;  %5863 = vmatprep.mubr.bf16.mxu1 %v1068_v15  ;;  %v1065_v49 = vadd.f32 %v5409_v58, %v1051_v17  ;;  %v1110_v21 = vsub.s32 1, %v7555_v20  ;;  %v1106_v26 = vsub.s32 0, %v7555_v20  ;;  %v1114_v34 = vsub.s32 2, %v7555_v20 }
 0x22f   : > { %1299 = vmatprep.mubr.bf16.mxu0 %v7088_v16 }
 0x230   : > { %v1069_v19 = vpack.c.bf16 %v1065_v49, %v1064_v18  ;;  %v7561_v25 = vrot.slane %v1102_v23, %v1110_v21  ;;  %v7573_v36 = vrot.slane %v1102_v23, %v1106_v26  ;;  %v7582_v45 = vrot.slane %v1102_v23, %v1114_v34 }
 0x232   : > { %5864 = vmatmul.mubr.bf16.gmra.mxu1 %v1069_v19 }
 0x233   : > { %5869 = vmatprep.mubr.msk.bf16.mxu1 %vm7090_vm0, %v7089_v56 }
 0x236   : > { %1300 = vmatmul.mubr.bf16.gmra.mxu0 %v1068_v15 }
 0x237   : > { %1309 = vmatprep.mubr.bf16.mxu0 %v7088_v16 }
 0x23e   : > { %1310 = vmatmul.mubr.bf16.gmra.mxu0 %v1069_v19 }
 0x23f   : > { %5881 = vmatprep.mubr.msk.bf16.mxu0 %vm7090_vm0, %v7089_v56 }
 0x2e6   : > { %v1281_v22 = vpop.f32.mrf.mxu0 }
 0x2e7   : > { %v1282_v46 = vadd.f32 %v1281_v22, %v7573_v36 }
 0x2e8   : > { %v1283_v24 = vpop.f32.mrf.mxu0 }
 0x2e9   : > { %v1284_v31 = vadd.f32 %v1283_v24, %v7561_v25  ;;  %v1385_v61 = vmul.f32 0.17677669, %v1282_v46 }
 0x2ea   : > { %v1285_v27 = vpop.f32.mrf.mxu0  ;;  %v7564_v28 = vpop.f32.mrf.mxu1 }
 0x2eb   : > { %v1286_v42 = vadd.f32 %v1285_v27, %v7573_v36 }
 0x2ec   : > { %v1287_v29 = vpop.f32.mrf.mxu0  ;;  %v7566_v30 = vpop.f32.mrf.mxu1 }
 0x2ed   : > { %v1288_v35 = vadd.f32 %v1287_v29, %v7561_v25  ;;  %v1386_v53 = vmul.f32 0.17677669, %v1286_v42 }
 0x2ee   : > { %v1291_v37 = vpop.f32.mrf.mxu0  ;;  %v7575_v38 = vpop.f32.mrf.mxu1 }
 0x2ef   : > { %v7577_v39 = vpack.c.bf16 %v1288_v35, %v1284_v31  ;;  %v7595_v1 = vpack.c.bf16 %v1386_v53, %v1385_v61  ;;  %v1292_v40 = vadd.f32 %v1291_v37, %v7573_v36  ;;  %v1355_v35 = vadd.f32 %v7566_v30, %v7582_v45 }
 0x2f0   : > { %v1293_v43 = vpop.f32.mrf.mxu0  ;;  %v1357_v44 = vpop.f32.mrf.mxu1  ;;  %v1366_v30 = vadd.f32 %v7575_v38, %v7582_v45  ;;  %v1409_v38 = vand.u32 127, %v1104_v57  ;;  %v1407_v53 = vadd.s32 8, %v7555_v20 }
 0x2f1   : > { %v1417_v51 = vsel %vm1412_vm1, %v7577_v39, 0  ;;  %v1294_v58 = vadd.f32 %v1293_v43, %v7561_v25  ;;  %v1387_v48 = vmul.f32 0.17677669, %v1292_v40  ;;  %v1358_v23 = vadd.f32 %v1357_v44, %v7582_v45 }
 0x2f2   : > { %v1295_v47 = vpop.f32.mrf.mxu0  ;;  %v5865_v50 = vpop.f32.mrf.mxu1  ;;  %5868 = vmatpush3.bf16.xpose.msra.mxu1 %v1417_v51  ;;  %vm7665_vm2 = vcmp.le.s32.totalorder %v1409_v38, %v7555_v20  ;;  %vm7671_vm4 = vcmp.le.s32.totalorder %v1409_v38, %v1407_v53 }
 0x2f3   : > { %v1379_v52 = vadd.f32 %v5865_v50, %v7582_v45  ;;  %5873 = vmatprep.subr.bf16.mxu1 %v7089_v56  ;;  %v1296_v2 = vadd.f32 %v1295_v47, %v7573_v36  ;;  %v7636_v46 = vpack.c.bf16 %v1358_v23, %v1355_v35  ;;  %v1363_v50 = vadd.f32 %v7564_v28, %v7582_v45 }
 0x2f4   : > { %v1297_v54 = vpop.f32.mrf.mxu0  ;;  %v1370_v55 = vpop.f32.mrf.mxu1 }
 0x2f5   : > { %v1298_v59 = vadd.f32 %v1297_v54, %v7561_v25  ;;  %v1371_v60 = vadd.f32 %v1370_v55, %v7582_v45  ;;  %v1388_v9 = vmul.f32 0.17677669, %v1296_v2 }
 0x2f6   : > { %v1301_v62 = vpop.f32.mrf.mxu0  ;;  %v5866_v63 = vpop.f32.mrf.mxu1 }
 0x2f7   : > { %v7592_v32 = vpack.c.bf16 %v1298_v59, %v1294_v58  ;;  %v1382_v0 = vadd.f32 %v5866_v63, %v7582_v45  ;;  %v7616_v15 = vpack.c.bf16 %v1388_v9, %v1387_v48  ;;  %v1302_v18 = vadd.f32 %v1301_v62, %v7573_v36 }
 0x2f8   : > { %v1303_v3 = vpop.f32.mrf.mxu0  ;;  %v1373_v4 = vpop.f32.mrf.mxu1 }
 0x2f9   : > { %v7598_v5 = vpack.c.bf16 %v1382_v0, %v1379_v52  ;;  %v1374_v6 = vadd.f32 %v1373_v4, %v7582_v45  ;;  %5870 = vmatmul.mubr.msk.bf16.vlgmr.msra.gmra.mxu1 %vm1412_vm1, %v7595_v1  ;;  %v1464_v33 = vsel %vm1412_vm1, %v7592_v32, 0  ;;  %v1304_v11 = vadd.f32 %v1303_v3, %v7561_v25 }
 0x2fa   : > { %v1305_v7 = vpop.f32.mrf.mxu0  ;;  %5874 = vmatpush3.bf16.xpose.msra.mxu1 %v1464_v33  ;;  %5875 = vmatprep.mubr.msk.bf16.mxu1 %vm7090_vm0, %v7089_v56  ;;  %v1389_v27 = vmul.f32 0.17677669, %v1302_v18  ;;  %v7654_v52 = vpack.c.bf16 %v1366_v30, %v1363_v50 }
 0x2fb   : > { %v7606_v8 = vpack.c.bf16 %v1374_v6, %v1371_v60  ;;  %5885 = vmatprep.subr.bf16.mxu1 %v7089_v56  ;;  %v1306_v13 = vadd.f32 %v1305_v7, %v7573_v36 }
 0x2fc   : > { %v1307_v10 = vpop.f32.mrf.mxu0 }
 0x2fd   : > { %v1308_v41 = vadd.f32 %v1307_v10, %v7561_v25  ;;  %v1390_v22 = vmul.f32 0.17677669, %v1306_v13 }
 0x2fe   : > { %v1311_v12 = vpop.f32.mrf.mxu0 }
 0x2ff   : > { %v7614_v14 = vpack.c.bf16 %v1308_v41, %v1304_v11  ;;  %v7631_v37 = vpack.c.bf16 %v1390_v22, %v1389_v27  ;;  %v1312_v47 = vadd.f32 %v1311_v12, %v7573_v36 }
 0x300   : > { %v1313_v17 = vpop.f32.mrf.mxu0 }
 0x301   : > { %v1511_v49 = vsel %vm1412_vm1, %v7614_v14, 0  ;;  %5876 = vmatmul.mubr.msk.bf16.vlgmr.msra.gmra.mxu1 %vm1412_vm1, %v7616_v15  ;;  %v1314_v29 = vadd.f32 %v1313_v17, %v7561_v25 }
 0x302   : > { %v1315_v19 = vpop.f32.mrf.mxu0  ;;  %5880 = vmatpush3.bf16.xpose.msra.mxu0 %v1511_v49  ;;  %5887 = vmatprep.mubr.msk.bf16.mxu1 %vm7090_vm0, %v7089_v56 }
 0x303   : > { %5891 = vmatprep.subr.bf16.mxu0 %v7089_v56  ;;  %v1316_v42 = vadd.f32 %v1315_v19, %v7573_v36  ;;  %v1391_v36 = vmul.f32 0.17677669, %v1312_v47 }
 0x304   : > { %v1317_v24 = vpop.f32.mrf.mxu0 }
 0x305   : > { %v1318_v31 = vadd.f32 %v1317_v24, %v7561_v25  ;;  %v1392_v25 = vmul.f32 0.17677669, %v1316_v42 }
 0x307   : > { %v7634_v43 = vpack.c.bf16 %v1318_v31, %v1314_v29  ;;  %v7652_v51 = vpack.c.bf16 %v1392_v25, %v1391_v36 }
 0x309   : > { %5882 = vmatmul.mubr.msk.bf16.vlgmr.msra.gmra.mxu0 %vm1412_vm1, %v7631_v37  ;;  %v1558_v44 = vsel %vm1412_vm1, %v7634_v43, 0 }
 0x30a   : > { %5886 = vmatpush3.bf16.xpose.msra.mxu1 %v1558_v44  ;;  %5892 = vmatpush3.bf16.msra.mxu0 %v7636_v46 }
 0x30b   : > { %5897 = vmatprep.subr.bf16.mxu1 %v7089_v56  ;;  %5893 = vmatprep.mubr.msk.bf16.mxu0 %vm7090_vm0, %v7089_v56 }
 0x30c   : > { %5903 = vmatprep.subr.bf16.mxu0 %v7089_v56 }
 0x311   : > { %5888 = vmatmul.mubr.msk.bf16.vlgmr.msra.gmra.mxu1 %vm1412_vm1, %v7652_v51 }
 0x312   : > { %5898 = vmatpush3.bf16.msra.mxu1 %v7654_v52  ;;  %5899 = vmatprep.mubr.msk.bf16.mxu1 %vm7090_vm0, %v7089_v56 }
 0x313   : > { %5909 = vmatprep.subr.bf16.mxu1 %v7089_v56 }
 0x3b9   : > { %v1453_v45 = vpop.f32.mrf.mxu1 }
 0x3ba   : > { %v1605_v54 = vsel %vm7665_vm2, %v1453_v45, -1e+30 }
 0x3bb   : > { %v5871_v58 = vpop.f32.mrf.mxu1  ;;  %v1614_v59 = vsel %vm1613_vm3, %v1605_v54, -inf }
 0x3bc   : > { %1615 = vmax.xlane.f32.xlu0 %v1614_v59 }
 0x3bd   : > { %v1456_v57 = vpop.f32.mrf.mxu1 }
 0x3be   : > { %v1606_v60 = vsel %vm7671_vm4, %v1456_v57, -1e+30 }
 0x3bf   : > { %v5872_v61 = vpop.f32.mrf.mxu1  ;;  %v1617_v62 = vsel %vm1613_vm3, %v1606_v60, -inf }
 0x3c0   : > { %1618 = vmax.xlane.f32.xlu1 %v1617_v62 }
 0x3c1   : > { %v1500_v63 = vpop.f32.mrf.mxu1 }
 0x3c2   : > { %v1607_v0 = vsel %vm7665_vm2, %v1500_v63, -1e+30 }
 0x3c3   : > { %v5877_v2 = vpop.f32.mrf.mxu1  ;;  %v1620_v3 = vsel %vm1613_vm3, %v1607_v0, -inf }
 0x3c4   : > { %1621 = vmax.xlane.f32.xlu0 %v1620_v3 }
 0x3c5   : > { %v1503_v4 = vpop.f32.mrf.mxu1 }
 0x3c6   : > { %v1608_v6 = vsel %vm7671_vm4, %v1503_v4, -1e+30 }
 0x3c7   : > { %v5878_v40 = vpop.f32.mrf.mxu1  ;;  %v1623_v7 = vsel %vm1613_vm3, %v1608_v6, -inf }
 0x3c8   : > { %1624 = vmax.xlane.f32.xlu1 %v1623_v7 }
 0x3c9   : > { %v1547_v33 = vpop.f32.mrf.mxu0 }
 0x3ca   : > { %v1609_v9 = vsel %vm7665_vm2, %v1547_v33, -1e+30 }
 0x3cb   : > { %v5883_v10 = vpop.f32.mrf.mxu0  ;;  %v1626_v11 = vsel %vm1613_vm3, %v1609_v9, -inf }
 0x3cc   : > { %1627 = vmax.xlane.f32.xlu0 %v1626_v11 }
 0x3cd   : > { %v1550_v41 = vpop.f32.mrf.mxu0 }
 0x3ce   : > { %v1610_v48 = vsel %vm7671_vm4, %v1550_v41, -1e+30 }
 0x3cf   : > { %v5884_v12 = vpop.f32.mrf.mxu0  ;;  %v1629_v13 = vsel %vm1613_vm3, %v1610_v48, -inf }
 0x3d0   : > { %1630 = vmax.xlane.f32.xlu1 %v1629_v13 }
 0x3d1   : > { %v1594_v17 = vpop.f32.mrf.mxu1 }
 0x3d2   : > { %v1611_v18 = vsel %vm7665_vm2, %v1594_v17, -1e+30 }
 0x3d3   : > { %v5889_v49 = vpop.f32.mrf.mxu1  ;;  %v1632_v19 = vsel %vm1613_vm3, %v1611_v18, -inf }
 0x3d4   : > { %1633 = vmax.xlane.f32.xlu0 %v1632_v19 }
 0x3d5   : > { %v1597_v22 = vpop.f32.mrf.mxu1 }
 0x3d6   : > { %v1612_v23 = vsel %vm7671_vm4, %v1597_v22, -1e+30 }
 0x3d7   : > { %v5890_v24 = vpop.f32.mrf.mxu1  ;;  %v1635_v27 = vsel %vm1613_vm3, %v1612_v23, -inf }
 0x3d8   : > { %1636 = vmax.xlane.f32.xlu1 %v1635_v27 }
 0x445   : > { %v1616_v29 = vpop.xlane.xlu0 %1615 }
 0x446   : > { %v1638_v31 = vsub.f32 %v1605_v54, %v1616_v29 }
 0x448   : > { %v1646_v35 = vmul.f32 1.442695, %v1638_v31 }
 0x449   : > { %v1619_v42 = vpop.xlane.xlu1 %1618 }
 0x44a   : > { %6403 = vpow2.f32 %v1646_v35  ;;  %v1639_v47 = vsub.f32 %v1606_v60, %v1619_v42 }
 0x44c   : > { %v1648_v44 = vmul.f32 1.442695, %v1639_v47 }
 0x44d   : > { %v1622_v25 = vpop.xlane.xlu0 %1621 }
 0x44e   : > { %6405 = vpow2.f32 %v1648_v44  ;;  %v1640_v30 = vsub.f32 %v1607_v0, %v1622_v25 }
 0x450   : > { %v1650_v36 = vmul.f32 1.442695, %v1640_v30 }
 0x451   : > { %v1625_v50 = vpop.xlane.xlu1 %1624 }
 0x452   : > { %6407 = vpow2.f32 %v1650_v36  ;;  %v1641_v38 = vsub.f32 %v1608_v6, %v1625_v50 }
 0x454   : > { %v1652_v53 = vmul.f32 1.442695, %v1641_v38 }
 0x455   : > { %v1628_v45 = vpop.xlane.xlu0 %1627 }
 0x456   : > { %v1642_v58 = vsub.f32 %v1609_v9, %v1628_v45  ;;  %6409 = vpow2.f32 %v1652_v53 }
 0x457   : > { %v6404_v59 = vpop.eup %6403 }
 0x458   : > { %v1654_v57 = vmul.f32 1.442695, %v1642_v58  ;;  %v1662_v54 = vsel %vm1613_vm3, %v6404_v59, 0.0 }
 0x459   : > { %v1631_v61 = vpop.xlane.xlu1 %1630  ;;  %1663 = vadd.xlane.f32.xlu0 %v1662_v54 }
 0x45a   : > { %6411 = vpow2.f32 %v1654_v57  ;;  %v1643_v62 = vsub.f32 %v1610_v48, %v1631_v61 }
 0x45b   : > { %v6406_v60 = vpop.eup %6405 }
 0x45c   : > { %v1656_v63 = vmul.f32 1.442695, %v1643_v62  ;;  %v1665_v0 = vsel %vm1613_vm3, %v6406_v60, 0.0 }
 0x45d   : > { %v1634_v2 = vpop.xlane.xlu0 %1633  ;;  %1666 = vadd.xlane.f32.xlu1 %v1665_v0 }
 0x45e   : > { %6413 = vpow2.f32 %v1656_v63  ;;  %v1644_v3 = vsub.f32 %v1611_v18, %v1634_v2 }
 0x45f   : > { %v6408_v4 = vpop.eup %6407 }
 0x460   : > { %v1658_v6 = vmul.f32 1.442695, %v1644_v3  ;;  %v1668_v40 = vsel %vm1613_vm3, %v6408_v4, 0.0 }
 0x461   : > { %1669 = vadd.xlane.f32.xlu0 %v1668_v40  ;;  %v1637_v13 = vpop.xlane.xlu1 %1636 }
 0x462   : > { %6415 = vpow2.f32 %v1658_v6  ;;  %v1645_v17 = vsub.f32 %v1612_v23, %v1637_v13 }
 0x463   : > { %v6410_v7 = vpop.eup %6409 }
 0x464   : > { %v1671_v33 = vsel %vm1613_vm3, %v6410_v7, 0.0  ;;  %v1660_v18 = vmul.f32 1.442695, %v1645_v17 }
 0x465   : > { %1672 = vadd.xlane.f32.xlu1 %v1671_v33 }
 0x466   : > { %6417 = vpow2.f32 %v1660_v18 }
 0x467   : > { %v6412_v9 = vpop.eup %6411 }
 0x468   : > { %v1674_v10 = vsel %vm1613_vm3, %v6412_v9, 0.0 }
 0x469   : > { %1675 = vadd.xlane.f32.xlu0 %v1674_v10 }
 0x46b   : > { %v6414_v11 = vpop.eup %6413 }
 0x46c   : > { %v1677_v41 = vsel %vm1613_vm3, %v6414_v11, 0.0 }
 0x46d   : > { %1678 = vadd.xlane.f32.xlu1 %v1677_v41 }
 0x46f   : > { %v7703_v48 = vpop.eup %6415 }
 0x470   : > { %v1680_v12 = vsel %vm1613_vm3, %v7703_v48, 0.0 }
 0x471   : > { %1681 = vadd.xlane.f32.xlu0 %v1680_v12 }
 0x473   : > { %v7717_v49 = vpop.eup %6417 }
 0x474   : > { %v1683_v19 = vsel %vm1613_vm3, %v7717_v49, 0.0 }
 0x47e   : > { %1980 = vrot.lane.b32.xlu1 %v7592_v32, %s7091_s6 }
 0x482   : > { %1924 = vrot.lane.b32.xlu1 %v7595_v1, %s7091_s6 }
 0x487   : > { %1927 = vrot.lane.b32.xlu0 %v7577_v39, %s7091_s6 }
 0x48b   : > { %1977 = vrot.lane.b32.xlu0 %v7616_v15, %s7091_s6 }
 0x48f   : > { %2030 = vrot.lane.b32.xlu0 %v7631_v37, %s7091_s6 }
 0x4a6   : > { %1684 = vadd.xlane.f32.xlu1 %v1683_v19 }
 0x4b7   : > { %2033 = vrot.lane.b32.xlu1 %v7614_v14, %s7091_s6 }
 0x4bb   : > { %2086 = vrot.lane.b32.xlu1 %v7634_v43, %s7091_s6 }
 0x4bf   : > { %2083 = vrot.lane.b32.xlu1 %v7652_v51, %s7091_s6 }
 0x4e2   : > { %v1664_v22 = vpop.xlane.xlu0 %1663 }
 0x4e3   : > { %6419 = vrcp.f32 %v1664_v22 }
 0x4e6   : > { %v1667_v23 = vpop.xlane.xlu1 %1666 }
 0x4e7   : > { %6421 = vrcp.f32 %v1667_v23 }
 0x4ea   : > { %v1670_v24 = vpop.xlane.xlu0 %1669 }
 0x4eb   : > { %6423 = vrcp.f32 %v1670_v24 }
 0x4ee   : > { %v1673_v27 = vpop.xlane.xlu1 %1672 }
 0x4ef   : > { %6425 = vrcp.f32 %v1673_v27 }
 0x4f0   : > { %v6420_v31 = vpop.eup %6419 }
 0x4f1   : > { %v1694_v47 = vmul.f32 %v6420_v31, %v6404_v59 }
 0x4f2   : > { %v1676_v29 = vpop.xlane.xlu0 %1675 }
 0x4f3   : > { %6427 = vrcp.f32 %v1676_v29 }
 0x4f4   : > { %v6422_v35 = vpop.eup %6421 }
 0x4f5   : > { %v1695_v44 = vmul.f32 %v6422_v35, %v6406_v60 }
 0x4f6   : > { %v1679_v42 = vpop.xlane.xlu1 %1678 }
 0x4f7   : > { %6429 = vrcp.f32 %v1679_v42  ;;  %v1702_v25 = vpack.c.bf16 %v1695_v44, %v1694_v47 }
 0x4f8   : > { %v6424_v30 = vpop.eup %6423 }
 0x4f9   : > { %5894 = vmatmul.mubr.msk.bf16.vlgmr.msra.gmra.mxu0 %vm1613_vm3, %v1702_v25  ;;  %v1696_v50 = vmul.f32 %v6424_v30, %v6408_v4 }
 0x4fa   : > { %5904 = vmatpush3.bf16.msra.mxu0 %v7606_v8  ;;  %5905 = vmatprep.mubr.msk.bf16.mxu0 %vm7090_vm0, %v7089_v56  ;;  %v1682_v53 = vpop.xlane.xlu0 %1681  ;;  %v1981_v63 = vpop.permute.xlu1 %1980 }
 0x4fb   : > { %5915 = vmatprep.subr.bf16.mxu0 %v7089_v56  ;;  %6431 = vrcp.f32 %v1682_v53  ;;  %v1986_v41 = vsel %vm1412_vm1, %v1981_v63, 0 }
 0x4fc   : > { %v6426_v36 = vpop.eup %6425 }
 0x4fd   : > { %v1697_v38 = vmul.f32 %v6426_v36, %v6410_v7 }
 0x4fe   : > { %v1928_v54 = vpop.permute.xlu0 %1927  ;;  %v1925_v2 = vpop.permute.xlu1 %1924 }
 0x4ff   : > { %v1703_v45 = vpack.c.bf16 %v1697_v38, %v1696_v50  ;;  %v1933_v60 = vsel %vm1412_vm1, %v1928_v54, 0 }
 0x500   : > { %v6428_v58 = vpop.eup %6427 }
 0x501   : > { %5900 = vmatmul.mubr.msk.bf16.vlgmr.msra.gmra.mxu1 %vm1613_vm3, %v1703_v45  ;;  %v1698_v57 = vmul.f32 %v6428_v58, %v6412_v9 }
 0x502   : > { %5910 = vmatpush3.bf16.msra.mxu1 %v7598_v5  ;;  %5911 = vmatprep.mubr.msk.bf16.mxu1 %vm7090_vm0, %v7089_v56  ;;  %v1978_v6 = vpop.permute.xlu0 %1977 }
 0x503   : > { %5921 = vmatprep.subr.bf16.mxu1 %v7089_v56 }
 0x504   : > { %v6430_v59 = vpop.eup %6429 }
 0x505   : > { %v1699_v61 = vmul.f32 %v6430_v59, %v6414_v11 }
 0x506   : > { %v2031_v7 = vpop.permute.xlu0 %2030 }
 0x507   : > { %v1704_v62 = vpack.c.bf16 %v1699_v61, %v1698_v57 }
 0x508   : > { %v6432_v40 = vpop.eup %6431 }
 0x509   : > { %5906 = vmatmul.mubr.msk.bf16.vlgmr.msra.gmra.mxu0 %vm1613_vm3, %v1704_v62  ;;  %v1700_v9 = vmul.f32 %v6432_v40, %v7703_v48 }
 0x50a   : > { %5916 = vmatpush3.bf16.xpose.msra.mxu0 %v1933_v60  ;;  %5917 = vmatprep.mubr.msk.bf16.mxu0 %vm7090_vm0, %v7089_v56 }
 0x50b   : > { %5927 = vmatprep.subr.bf16.mxu0 %v7089_v56 }
 0x511   : > { %5918 = vmatmul.mubr.msk.bf16.vlgmr.msra.gmra.mxu0 %vm1412_vm1, %v1925_v2 }
 0x512   : > { %5929 = vmatprep.mubr.msk.bf16.mxu0 %vm7090_vm0, %v7089_v56 }
 0x52f   : > { %v1685_v0 = vpop.xlane.xlu1 %1684 }
 0x530   : > { %6433 = vrcp.f32 %v1685_v0 }
 0x533   : > { %v2034_v3 = vpop.permute.xlu1 %2033 }
 0x534   : > { %v2039_v4 = vsel %vm1412_vm1, %v2034_v3, 0 }
 0x535   : > { %5928 = vmatpush3.bf16.xpose.msra.mxu0 %v2039_v4 }
 0x536   : > { %5939 = vmatprep.subr.bf16.mxu0 %v7089_v56 }
 0x537   : > { %v2087_v12 = vpop.permute.xlu1 %2086 }
 0x538   : > { %v2092_v13 = vsel %vm1412_vm1, %v2087_v12, 0 }
 0x53b   : > { %v2084_v48 = vpop.permute.xlu1 %2083 }
 0x53c   : > { %5930 = vmatmul.mubr.msk.bf16.vlgmr.msra.gmra.mxu0 %vm1412_vm1, %v2031_v7 }
 0x53d   : > { %v6434_v33 = vpop.eup %6433  ;;  %5941 = vmatprep.mubr.msk.bf16.mxu0 %vm7090_vm0, %v7089_v56 }
 0x53e   : > { %v1701_v10 = vmul.f32 %v6434_v33, %v7717_v49 }
 0x540   : > { %v1705_v11 = vpack.c.bf16 %v1701_v10, %v1700_v9 }
 0x542   : > { %5912 = vmatmul.mubr.msk.bf16.vlgmr.msra.gmra.mxu1 %vm1613_vm3, %v1705_v11 }
 0x543   : > { %5922 = vmatpush3.bf16.xpose.msra.mxu1 %v1986_v41  ;;  %5923 = vmatprep.mubr.msk.bf16.mxu1 %vm7090_vm0, %v7089_v56 }
 0x544   : > { %5933 = vmatprep.subr.bf16.mxu1 %v7089_v56 }
 0x54a   : > { %5924 = vmatmul.mubr.msk.bf16.vlgmr.msra.gmra.mxu1 %vm1412_vm1, %v1978_v6 }
 0x54b   : > { %5934 = vmatpush3.bf16.xpose.msra.mxu1 %v2092_v13  ;;  %5935 = vmatprep.mubr.msk.bf16.mxu1 %vm7090_vm0, %v7089_v56 }
 0x54c   : > { %5945 = vmatprep.subr.bf16.mxu1 %v7089_v56 }
 0x552   : > { %5936 = vmatmul.mubr.msk.bf16.vlgmr.msra.gmra.mxu1 %vm1412_vm1, %v2084_v48 }
 0x553   : > { %5947 = vmatprep.mubr.msk.bf16.mxu1 %vm7090_vm0, %v7089_v56 }
 0x5b9   : > { %v1743_v17 = vpop.f32.mrf.mxu0 }
 0x5ba   : > { %v5634_v18 = vpack.c.bf16 %v1743_v17, %v1743_v17 }
 0x5bb   : > { %v5895_v49 = vpop.f32.mrf.mxu0 }
 0x5bc   : > { %1915 = vst.msk [vmem:[#allocation3] sm:$0xf] %vm1914_vm5, %v5634_v18 }
 0x5bd   : > { %v1746_v19 = vpop.f32.mrf.mxu0 }
 0x5be   : > { %v5635_v22 = vpack.c.bf16 %v1746_v19, %v1746_v19 }
 0x5bf   : > { %v5896_v23 = vpop.f32.mrf.mxu0 }
 0x5c0   : > { %1916 = vst.msk [vmem:[#allocation3 + $0x4] sm:$0xf] %vm1914_vm5, %v5635_v22 }
 0x5c1   : > { %v1787_v24 = vpop.f32.mrf.mxu1 }
 0x5c2   : > { %v5636_v27 = vpack.c.bf16 %v1787_v24, %v1787_v24 }
 0x5c3   : > { %v5901_v29 = vpop.f32.mrf.mxu1 }
 0x5c4   : > { %1917 = vst.msk [vmem:[#allocation3 + $0x8] sm:$0xf] %vm1914_vm5, %v5636_v27 }
 0x5c5   : > { %v1790_v31 = vpop.f32.mrf.mxu1 }
 0x5c6   : > { %v5637_v35 = vpack.c.bf16 %v1790_v31, %v1790_v31 }
 0x5c7   : > { %v5902_v42 = vpop.f32.mrf.mxu1 }
 0x5c8   : > { %1918 = vst.msk [vmem:[#allocation3 + $0xc] sm:$0xf] %vm1914_vm5, %v5637_v35 }
 0x5c9   : > { %v1831_v47 = vpop.f32.mrf.mxu0 }
 0x5ca   : > { %v5638_v44 = vpack.c.bf16 %v1831_v47, %v1831_v47 }
 0x5cb   : > { %v5907_v25 = vpop.f32.mrf.mxu0 }
 0x5cc   : > { %1919 = vst.msk [vmem:[#allocation3 + $0x10] sm:$0xf] %vm1914_vm5, %v5638_v44 }
 0x5cd   : > { %v1834_v30 = vpop.f32.mrf.mxu0 }
 0x5ce   : > { %v5639_v36 = vpack.c.bf16 %v1834_v30, %v1834_v30 }
 0x5cf   : > { %v5908_v50 = vpop.f32.mrf.mxu0 }
 0x5d0   : > { %1920 = vst.msk [vmem:[#allocation3 + $0x14] sm:$0xf] %vm1914_vm5, %v5639_v36 }
 0x5d1   : > { %v1969_v38 = vpop.f32.mrf.mxu0 }
 0x5d2   : > { %v2135_v53 = vsel %vm7665_vm2, %v1969_v38, -1e+30 }
 0x5d3   : > { %v5919_v45 = vpop.f32.mrf.mxu0  ;;  %v2143_v58 = vsel %vm1613_vm3, %v2135_v53, -inf }
 0x5d4   : > { %2144 = vmax.xlane.f32.xlu0 %v2143_v58 }
 0x5d5   : > { %v1972_v59 = vpop.f32.mrf.mxu0 }
 0x5d6   : > { %v2136_v57 = vsel %vm7671_vm4, %v1972_v59, -1e+30 }
 0x5d7   : > { %v5920_v61 = vpop.f32.mrf.mxu0  ;;  %v2146_v54 = vsel %vm1613_vm3, %v2136_v57, -inf }
 0x5d8   : > { %2147 = vmax.xlane.f32.xlu1 %v2146_v54 }
 0x5fc   : > { %v2075_v62 = vpop.f32.mrf.mxu0 }
 0x5fd   : > { %v2139_v49 = vsel %vm7665_vm2, %v2075_v62, -1e+30 }
 0x5fe   : > { %v5931_v60 = vpop.f32.mrf.mxu0  ;;  %v2155_v23 = vsel %vm1613_vm3, %v2139_v49, -inf }
 0x600   : > { %v2078_v63 = vpop.f32.mrf.mxu0 }
 0x601   : > { %v7779_v2 = vsel %vm7671_vm4, %v2078_v63, -1e+30 }
 0x602   : > { %v1875_v0 = vpop.f32.mrf.mxu1  ;;  %v5932_v3 = vpop.f32.mrf.mxu0  ;;  %v2158_v4 = vsel %vm1613_vm3, %v7779_v2, -inf }
 0x603   : > { %v5640_v6 = vpack.c.bf16 %v1875_v0, %v1875_v0  ;;  %2159 = vmax.xlane.f32.xlu1 %v2158_v4 }
 0x604   : > { %v5913_v40 = vpop.f32.mrf.mxu1 }
 0x605   : > { %1921 = vst.msk [vmem:[#allocation3 + $0x18] sm:$0xf] %vm1914_vm5, %v5640_v6 }
 0x606   : > { %v1878_v7 = vpop.f32.mrf.mxu1 }
 0x607   : > { %v5641_v33 = vpack.c.bf16 %v1878_v7, %v1878_v7 }
 0x608   : > { %v5914_v9 = vpop.f32.mrf.mxu1 }
 0x609   : > { %1922 = vst.msk [vmem:[#allocation3 + $0x1c] sm:$0xf] %vm1914_vm5, %v5641_v33 }
 0x60a   : > { %v2022_v10 = vpop.f32.mrf.mxu1 }
 0x60b   : > { %v2137_v11 = vsel %vm7665_vm2, %v2022_v10, -1e+30 }
 0x60c   : > { %v5925_v41 = vpop.f32.mrf.mxu1  ;;  %v2149_v12 = vsel %vm1613_vm3, %v2137_v11, -inf }
 0x60d   : > { %2150 = vmax.xlane.f32.xlu0 %v2149_v12 }
 0x60e   : > { %v2025_v13 = vpop.f32.mrf.mxu1 }
 0x60f   : > { %v2138_v48 = vsel %vm7671_vm4, %v2025_v13, -1e+30 }
 0x610   : > { %v5926_v17 = vpop.f32.mrf.mxu1  ;;  %v2152_v18 = vsel %vm1613_vm3, %v2138_v48, -inf }
 0x611   : > { %2153 = vmax.xlane.f32.xlu0 %v2152_v18 }
 0x612   : > { %v2128_v19 = vpop.f32.mrf.mxu1 }
 0x613   : > { %v2141_v24 = vsel %vm7665_vm2, %v2128_v19, -1e+30 }
 0x614   : > { %2284 = vrot.lane.b32.xlu1 %v7654_v52, %s7091_s6  ;;  %v5937_v22 = vpop.f32.mrf.mxu1  ;;  %v2161_v31 = vsel %vm1613_vm3, %v2141_v24, -inf }
 0x615   : > { %2156 = vmax.xlane.f32.xlu0 %v2155_v23 }
 0x616   : > { %v2131_v27 = vpop.f32.mrf.mxu1 }
 0x617   : > { %v7805_v35 = vsel %vm7671_vm4, %v2131_v27, -1e+30 }
 0x618   : > { %2332 = vrot.lane.b32.xlu1 %v7606_v8, %s7091_s6  ;;  %v5938_v29 = vpop.f32.mrf.mxu1  ;;  %v2164_v42 = vsel %vm1613_vm3, %v7805_v35, -inf }
 0x619   : > { %2162 = vmax.xlane.f32.xlu0 %v2161_v31 }
 0x62f   : > { %2236 = vrot.lane.b32.xlu0 %v7636_v46, %s7091_s6 }
 0x63c   : > { %2165 = vmax.xlane.f32.xlu1 %v2164_v42 }
 0x64d   : > { %2380 = vrot.lane.b32.xlu1 %v7598_v5, %s7091_s6 }
 0x65d   : > { %v2145_v47 = vpop.xlane.xlu0 %2144 }
 0x65e   : > { %v2167_v44 = vsub.f32 %v2135_v53, %v2145_v47 }
 0x660   : > { %v2175_v25 = vmul.f32 1.442695, %v2167_v44 }
 0x661   : > { %v2148_v30 = vpop.xlane.xlu1 %2147 }
 0x662   : > { %6435 = vpow2.f32 %v2175_v25  ;;  %v2168_v36 = vsub.f32 %v2136_v57, %v2148_v30 }
 0x664   : > { %v2177_v50 = vmul.f32 1.442695, %v2168_v36 }
 0x666   : > { %6437 = vpow2.f32 %v2177_v50 }
 0x66f   : > { %v7811_v38 = vpop.eup %6435 }
 0x670   : > { %v2191_v45 = vsel %vm1613_vm3, %v7811_v38, 0.0 }
 0x671   : > { %2192 = vadd.xlane.f32.xlu0 %v2191_v45 }
 0x673   : > { %v7815_v58 = vpop.eup %6437 }
 0x674   : > { %v2194_v59 = vsel %vm1613_vm3, %v7815_v58, 0.0 }
 0x675   : > { %2195 = vadd.xlane.f32.xlu1 %v2194_v59 }
 0x68c   : > { %v2160_v61 = vpop.xlane.xlu1 %2159 }
 0x68d   : > { %v2172_v62 = vsub.f32 %v7779_v2, %v2160_v61 }
 0x68f   : > { %v2185_v3 = vmul.f32 1.442695, %v2172_v62 }
 0x690   : > { %v2285_v53 = vpop.permute.xlu1 %2284 }
 0x691   : > { %5946 = vmatpush3.bf16.msra.mxu1 %v2285_v53 }
 0x692   : > { %5957 = vmatprep.subr.bf16.mxu1 %v7089_v56 }
 0x694   : > { %v2333_v23 = vpop.permute.xlu1 %2332 }
 0x696   : > { %v2151_v57 = vpop.xlane.xlu0 %2150 }
 0x697   : > { %v2169_v54 = vsub.f32 %v2137_v11, %v2151_v57 }
 0x699   : > { %v2179_v60 = vmul.f32 1.442695, %v2169_v54 }
 0x69a   : > { %v2154_v63 = vpop.xlane.xlu0 %2153 }
 0x69b   : > { %6439 = vpow2.f32 %v2179_v60  ;;  %v2170_v0 = vsub.f32 %v2138_v48, %v2154_v63 }
 0x69d   : > { %v2181_v4 = vmul.f32 1.442695, %v2170_v0 }
 0x69e   : > { %v2157_v6 = vpop.xlane.xlu0 %2156 }
 0x69f   : > { %6441 = vpow2.f32 %v2181_v4  ;;  %v2171_v40 = vsub.f32 %v2139_v49, %v2157_v6 }
 0x6a0   : > { %6443 = vpow2.f32 %v2185_v3 }
 0x6a1   : > { %v2183_v7 = vmul.f32 1.442695, %v2171_v40 }
 0x6a2   : > { %v2163_v33 = vpop.xlane.xlu0 %2162 }
 0x6a3   : > { %6445 = vpow2.f32 %v2183_v7  ;;  %v2173_v9 = vsub.f32 %v2141_v24, %v2163_v33 }
 0x6a5   : > { %v2187_v10 = vmul.f32 1.442695, %v2173_v9 }
 0x6a6   : > { %v2237_v41 = vpop.permute.xlu0 %2236 }
 0x6a7   : > { %6447 = vpow2.f32 %v2187_v10  ;;  %5940 = vmatpush3.bf16.msra.mxu0 %v2237_v41 }
 0x6a8   : > { %v6440_v11 = vpop.eup %6439  ;;  %5951 = vmatprep.subr.bf16.mxu0 %v7089_v56 }
 0x6a9   : > { %v2197_v2 = vsel %vm1613_vm3, %v6440_v11, 0.0 }
 0x6aa   : > { %2198 = vadd.xlane.f32.xlu0 %v2197_v2 }
 0x6ac   : > { %v6442_v12 = vpop.eup %6441 }
 0x6ad   : > { %v2200_v13 = vsel %vm1613_vm3, %v6442_v12, 0.0  ;;  %v6444_v48 = vpop.eup %6443 }
 0x6ae   : > { %2201 = vadd.xlane.f32.xlu1 %v2200_v13  ;;  %v2206_v49 = vsel %vm1613_vm3, %v6444_v48, 0.0 }
 0x6b0   : > { %v6446_v17 = vpop.eup %6445 }
 0x6b1   : > { %v2203_v18 = vsel %vm1613_vm3, %v6446_v17, 0.0 }
 0x6b2   : > { %2204 = vadd.xlane.f32.xlu0 %v2203_v18  ;;  %2207 = vadd.xlane.f32.xlu1 %v2206_v49 }
 0x6b4   : > { %v7826_v19 = vpop.eup %6447 }
 0x6b5   : > { %v2209_v22 = vsel %vm1613_vm3, %v7826_v19, 0.0 }
 0x6b6   : > { %2210 = vadd.xlane.f32.xlu0 %v2209_v22 }
 0x6c3   : > { %2537 = vrot.lane.b32.xlu1 %v7592_v32, %s7092_s2 }
 0x6c5   : > { %v2166_v24 = vpop.xlane.xlu1 %2165 }
 0x6c6   : > { %v2174_v27 = vsub.f32 %v7805_v35, %v2166_v24 }
 0x6c8   : > { %v2189_v29 = vmul.f32 1.442695, %v2174_v27 }
 0x6c9   : > { %v2381_v35 = vpop.permute.xlu1 %2380 }
 0x6ca   : > { %6449 = vpow2.f32 %v2189_v29 }
 0x6cc   : > { %2486 = vrot.lane.b32.xlu0 %v7577_v39, %s7092_s2 }
 0x6d0   : > { %2484 = vrot.lane.b32.xlu0 %v7595_v1, %s7092_s2 }
 0x6d4   : > { %2535 = vrot.lane.b32.xlu0 %v7616_v15, %s7092_s2 }
 0x6d7   : > { %v7841_v31 = vpop.eup %6449 }
 0x6d8   : > { %2586 = vrot.lane.b32.xlu0 %v7631_v37, %s7092_s2  ;;  %v2212_v42 = vsel %vm1613_vm3, %v7841_v31, 0.0 }
 0x6e7   : > { %2213 = vadd.xlane.f32.xlu1 %v2212_v42 }
 0x6f8   : > { %2588 = vrot.lane.b32.xlu1 %v7614_v14, %s7092_s2 }
 0x6fa   : > { %v2193_v47 = vpop.xlane.xlu0 %2192 }
 0x6fb   : > { %6451 = vrcp.f32 %v2193_v47 }
 0x6fc   : > { %2639 = vrot.lane.b32.xlu1 %v7634_v43, %s7092_s2 }
 0x6fe   : > { %v2196_v44 = vpop.xlane.xlu1 %2195 }
 0x6ff   : > { %6453 = vrcp.f32 %v2196_v44 }
 0x700   : > { %2637 = vrot.lane.b32.xlu1 %v7652_v51, %s7092_s2 }
 0x708   : > { %v6452_v25 = vpop.eup %6451 }
 0x709   : > { %v2223_v36 = vmul.f32 %v6452_v25, %v7811_v38 }
 0x70c   : > { %v6454_v30 = vpop.eup %6453 }
 0x70d   : > { %v2224_v50 = vmul.f32 %v6454_v30, %v7815_v58 }
 0x70f   : > { %v2231_v45 = vpack.c.bf16 %v2224_v50, %v2223_v36 }
 0x711   : > { %5942 = vmatmul.mubr.msk.bf16.vlgmr.msra.gmra.mxu0 %vm1613_vm3, %v2231_v45 }
 0x712   : > { %5952 = vmatpush3.bf16.msra.mxu0 %v2333_v23  ;;  %5953 = vmatprep.mubr.msk.bf16.mxu0 %vm7090_vm0, %v7089_v56 }
 0x713   : > { %5963 = vmatprep.subr.bf16.mxu0 %v7089_v56 }
 0x733   : > { %v2199_v59 = vpop.xlane.xlu0 %2198 }
 0x734   : > { %6455 = vrcp.f32 %v2199_v59 }
 0x737   : > { %v2202_v61 = vpop.xlane.xlu1 %2201 }
 0x738   : > { %6457 = vrcp.f32 %v2202_v61 }
 0x73b   : > { %v2205_v53 = vpop.xlane.xlu0 %2204  ;;  %v2208_v57 = vpop.xlane.xlu1 %2207 }
 0x73c   : > { %6459 = vrcp.f32 %v2205_v53 }
 0x73d   : > { %6461 = vrcp.f32 %v2208_v57 }
 0x73f   : > { %v2211_v58 = vpop.xlane.xlu0 %2210  ;;  %v2538_v10 = vpop.permute.xlu1 %2537 }
 0x740   : > { %6463 = vrcp.f32 %v2211_v58  ;;  %v2543_v23 = vsel %vm1412_vm1, %v2538_v10, 0 }
 0x741   : > { %v6456_v38 = vpop.eup %6455 }
 0x742   : > { %v2225_v62 = vmul.f32 %v6456_v38, %v6440_v11 }
 0x743   : > { %v2487_v40 = vpop.permute.xlu0 %2486 }
 0x744   : > { %v2492_v33 = vsel %vm1412_vm1, %v2487_v40, 0 }
 0x745   : > { %v6458_v54 = vpop.eup %6457 }
 0x746   : > { %v2226_v60 = vmul.f32 %v6458_v54, %v6442_v12 }
 0x747   : > { %v2485_v9 = vpop.permute.xlu0 %2484 }
 0x748   : > { %v2232_v63 = vpack.c.bf16 %v2226_v60, %v2225_v62 }
 0x749   : > { %v6460_v0 = vpop.eup %6459 }
 0x74a   : > { %v6462_v3 = vpop.eup %6461  ;;  %5948 = vmatmul.mubr.msk.bf16.vlgmr.msra.gmra.mxu1 %vm1613_vm3, %v2232_v63  ;;  %v2227_v4 = vmul.f32 %v6460_v0, %v6446_v17 }
 0x74b   : > { %5958 = vmatpush3.bf16.msra.mxu1 %v2381_v35  ;;  %v2228_v6 = vmul.f32 %v6462_v3, %v6444_v48  ;;  %5959 = vmatprep.mubr.msk.bf16.mxu1 %vm7090_vm0, %v7089_v56  ;;  %v2536_v12 = vpop.permute.xlu0 %2535 }
 0x74c   : > { %5969 = vmatprep.subr.bf16.mxu1 %v7089_v56 }
 0x74d   : > { %v2233_v7 = vpack.c.bf16 %v2228_v6, %v2227_v4  ;;  %v6464_v13 = vpop.eup %6463 }
 0x74e   : > { %v2229_v18 = vmul.f32 %v6464_v13, %v7826_v19 }
 0x74f   : > { %5954 = vmatmul.mubr.msk.bf16.vlgmr.msra.gmra.mxu0 %vm1613_vm3, %v2233_v7  ;;  %v2587_v48 = vpop.permute.xlu0 %2586 }
 0x750   : > { %5964 = vmatpush3.bf16.xpose.msra.mxu0 %v2492_v33  ;;  %5965 = vmatprep.mubr.msk.bf16.mxu0 %vm7090_vm0, %v7089_v56 }
 0x751   : > { %5975 = vmatprep.subr.bf16.mxu0 %v7089_v56 }
 0x757   : > { %5966 = vmatmul.mubr.msk.bf16.vlgmr.msra.gmra.mxu0 %vm1412_vm1, %v2485_v9 }
 0x758   : > { %5977 = vmatprep.mubr.msk.bf16.mxu0 %vm7090_vm0, %v7089_v56 }
 0x770   : > { %v2214_v41 = vpop.xlane.xlu1 %2213 }
 0x771   : > { %6465 = vrcp.f32 %v2214_v41 }
 0x774   : > { %v2589_v11 = vpop.permute.xlu1 %2588 }
 0x775   : > { %v2594_v2 = vsel %vm1412_vm1, %v2589_v11, 0 }
 0x776   : > { %5976 = vmatpush3.bf16.xpose.msra.mxu0 %v2594_v2 }
 0x777   : > { %5987 = vmatprep.subr.bf16.mxu0 %v7089_v56 }
 0x778   : > { %v2640_v24 = vpop.permute.xlu1 %2639 }
 0x779   : > { %v2645_v27 = vsel %vm1412_vm1, %v2640_v24, 0 }
 0x77c   : > { %v2638_v19 = vpop.permute.xlu1 %2637 }
 0x77d   : > { %5978 = vmatmul.mubr.msk.bf16.vlgmr.msra.gmra.mxu0 %vm1412_vm1, %v2587_v48 }
 0x77e   : > { %v6466_v17 = vpop.eup %6465  ;;  %5989 = vmatprep.mubr.msk.bf16.mxu0 %vm7090_vm0, %v7089_v56 }
 0x77f   : > { %v2230_v49 = vmul.f32 %v6466_v17, %v7841_v31 }
 0x781   : > { %v2234_v22 = vpack.c.bf16 %v2230_v49, %v2229_v18 }
 0x783   : > { %5960 = vmatmul.mubr.msk.bf16.vlgmr.msra.gmra.mxu1 %vm1613_vm3, %v2234_v22 }
 0x784   : > { %5970 = vmatpush3.bf16.xpose.msra.mxu1 %v2543_v23  ;;  %5971 = vmatprep.mubr.msk.bf16.mxu1 %vm7090_vm0, %v7089_v56 }
 0x785   : > { %5981 = vmatprep.subr.bf16.mxu1 %v7089_v56 }
 0x78b   : > { %5972 = vmatmul.mubr.msk.bf16.vlgmr.msra.gmra.mxu1 %vm1412_vm1, %v2536_v12 }
 0x78c   : > { %5982 = vmatpush3.bf16.xpose.msra.mxu1 %v2645_v27  ;;  %5983 = vmatprep.mubr.msk.bf16.mxu1 %vm7090_vm0, %v7089_v56 }
 0x78d   : > { %5993 = vmatprep.subr.bf16.mxu1 %v7089_v56 }
 0x793   : > { %5984 = vmatmul.mubr.msk.bf16.vlgmr.msra.gmra.mxu1 %vm1412_vm1, %v2638_v19 }
 0x794   : > { %5995 = vmatprep.mubr.msk.bf16.mxu1 %vm7090_vm0, %v7089_v56 }
 0x7d1   : > { %v7889_v29 = vpop.f32.mrf.mxu0 }
 0x7d3   : > { %v5943_v31 = vpop.f32.mrf.mxu0 }
 0x7d5   : > { %v7891_v42 = vpop.f32.mrf.mxu0 }
 0x7d7   : > { %v5944_v35 = vpop.f32.mrf.mxu0 }
 0x80a   : > { %v7893_v47 = vpop.f32.mrf.mxu1 }
 0x80c   : > { %v5949_v44 = vpop.f32.mrf.mxu1 }
 0x80e   : > { %v7895_v25 = vpop.f32.mrf.mxu1 }
 0x80f   : > { %v7897_v30 = vpop.f32.mrf.mxu0 }
 0x810   : > { %v5950_v36 = vpop.f32.mrf.mxu1 }
 0x811   : > { %v5955_v50 = vpop.f32.mrf.mxu0 }
 0x813   : > { %v7899_v45 = vpop.f32.mrf.mxu0 }
 0x815   : > { %v5956_v59 = vpop.f32.mrf.mxu0 }
 0x817   : > { %v2528_v61 = vpop.f32.mrf.mxu0 }
 0x818   : > { %v2688_v53 = vsel %vm7665_vm2, %v2528_v61, -1e+30 }
 0x819   : > { %v5967_v57 = vpop.f32.mrf.mxu0  ;;  %v2696_v38 = vsel %vm1613_vm3, %v2688_v53, -inf }
 0x81a   : > { %2697 = vmax.xlane.f32.xlu0 %v2696_v38 }
 0x81b   : > { %v2531_v54 = vpop.f32.mrf.mxu0 }
 0x81c   : > { %v2689_v58 = vsel %vm7671_vm4, %v2531_v54, -1e+30 }
 0x81d   : > { %v5968_v62 = vpop.f32.mrf.mxu0  ;;  %v2699_v60 = vsel %vm1613_vm3, %v2689_v58, -inf }
 0x81e   : > { %2700 = vmax.xlane.f32.xlu1 %v2699_v60 }
 0x83d   : > { %v2630_v63 = vpop.f32.mrf.mxu0 }
 0x83e   : > { %v2692_v49 = vsel %vm7665_vm2, %v2630_v63, -1e+30 }
 0x83f   : > { %v5979_v0 = vpop.f32.mrf.mxu0  ;;  %v2708_v24 = vsel %vm1613_vm3, %v2692_v49, -inf }
 0x841   : > { %v2633_v3 = vpop.f32.mrf.mxu0 }
 0x842   : > { %v2693_v4 = vsel %vm7671_vm4, %v2633_v3, -1e+30 }
 0x843   : > { %v7909_v6 = vpop.f32.mrf.mxu1  ;;  %v5980_v40 = vpop.f32.mrf.mxu0  ;;  %v2711_v7 = vsel %vm1613_vm3, %v2693_v4, -inf }
 0x844   : > { %2712 = vmax.xlane.f32.xlu1 %v2711_v7 }
 0x845   : > { %v5961_v33 = vpop.f32.mrf.mxu1 }
 0x847   : > { %v7912_v9 = vpop.f32.mrf.mxu1 }
 0x849   : > { %v5962_v10 = vpop.f32.mrf.mxu1 }
 0x84b   : > { %v2579_v41 = vpop.f32.mrf.mxu1 }
 0x84c   : > { %v2690_v11 = vsel %vm7665_vm2, %v2579_v41, -1e+30 }
 0x84d   : > { %v5973_v2 = vpop.f32.mrf.mxu1  ;;  %v2702_v12 = vsel %vm1613_vm3, %v2690_v11, -inf }
 0x84e   : > { %2703 = vmax.xlane.f32.xlu0 %v2702_v12 }
 0x84f   : > { %v2582_v13 = vpop.f32.mrf.mxu1 }
 0x850   : > { %v2691_v48 = vsel %vm7671_vm4, %v2582_v13, -1e+30 }
 0x851   : > { %v5974_v17 = vpop.f32.mrf.mxu1  ;;  %v2705_v18 = vsel %vm1613_vm3, %v2691_v48, -inf }
 0x852   : > { %2706 = vmax.xlane.f32.xlu0 %v2705_v18 }
 0x853   : > { %v2681_v22 = vpop.f32.mrf.mxu1 }
 0x854   : > { %v2694_v27 = vsel %vm7665_vm2, %v2681_v22, -1e+30 }
 0x855   : > { %v5985_v23 = vpop.f32.mrf.mxu1  ;;  %v2714_v44 = vsel %vm1613_vm3, %v2694_v27, -inf }
 0x856   : > { %2709 = vmax.xlane.f32.xlu0 %v2708_v24 }
 0x857   : > { %v2684_v19 = vpop.f32.mrf.mxu1 }
 0x858   : > { %v2695_v31 = vsel %vm7671_vm4, %v2684_v19, -1e+30 }
 0x859   : > { %v5986_v35 = vpop.f32.mrf.mxu1  ;;  %v2717_v36 = vsel %vm1613_vm3, %v2695_v31, -inf }
 0x85a   : > { %2715 = vmax.xlane.f32.xlu0 %v2714_v44  ;;  %2718 = vmax.xlane.f32.xlu1 %v2717_v36 }
 0x86b   : > { %2835 = vrot.lane.b32.xlu1 %v7654_v52, %s7092_s2 }
 0x86f   : > { %2882 = vrot.lane.b32.xlu1 %v7606_v8, %s7092_s2 }
 0x870   : > { %2788 = vrot.lane.b32.xlu0 %v7636_v46, %s7092_s2 }
 0x873   : > { %2929 = vrot.lane.b32.xlu1 %v7598_v5, %s7092_s2 }
 0x8a3   : > { %v2698_v50 = vpop.xlane.xlu0 %2697 }
 0x8a4   : > { %v2720_v59 = vsub.f32 %v2688_v53, %v2698_v50 }
 0x8a6   : > { %v2728_v61 = vmul.f32 1.442695, %v2720_v59 }
 0x8a7   : > { %v2701_v57 = vpop.xlane.xlu1 %2700 }
 0x8a8   : > { %6467 = vpow2.f32 %v2728_v61  ;;  %v2721_v38 = vsub.f32 %v2689_v58, %v2701_v57 }
 0x8aa   : > { %v2730_v54 = vmul.f32 1.442695, %v2721_v38 }
 0x8ac   : > { %6469 = vpow2.f32 %v2730_v54 }
 0x8b5   : > { %v7937_v62 = vpop.eup %6467 }
 0x8b6   : > { %v2744_v60 = vsel %vm1613_vm3, %v7937_v62, 0.0 }
 0x8b7   : > { %2745 = vadd.xlane.f32.xlu0 %v2744_v60 }
 0x8b9   : > { %v7941_v63 = vpop.eup %6469 }
 0x8ba   : > { %v2747_v0 = vsel %vm1613_vm3, %v7941_v63, 0.0 }
 0x8bb   : > { %2748 = vadd.xlane.f32.xlu1 %v2747_v0 }
 0x8cd   : > { %v2713_v3 = vpop.xlane.xlu1 %2712 }
 0x8ce   : > { %v2725_v7 = vsub.f32 %v2693_v4, %v2713_v3 }
 0x8d0   : > { %v2738_v41 = vmul.f32 1.442695, %v2725_v7 }
 0x8d7   : > { %v2704_v53 = vpop.xlane.xlu0 %2703 }
 0x8d8   : > { %v2722_v40 = vsub.f32 %v2690_v11, %v2704_v53 }
 0x8da   : > { %v2732_v33 = vmul.f32 1.442695, %v2722_v40 }
 0x8db   : > { %v2707_v58 = vpop.xlane.xlu0 %2706 }
 0x8dc   : > { %6471 = vpow2.f32 %v2732_v33  ;;  %v2723_v10 = vsub.f32 %v2691_v48, %v2707_v58 }
 0x8de   : > { %v2734_v2 = vmul.f32 1.442695, %v2723_v10 }
 0x8df   : > { %v2710_v12 = vpop.xlane.xlu0 %2709 }
 0x8e0   : > { %6473 = vpow2.f32 %v2734_v2  ;;  %v2724_v13 = vsub.f32 %v2692_v49, %v2710_v12 }
 0x8e1   : > { %6475 = vpow2.f32 %v2738_v41 }
 0x8e2   : > { %v2736_v17 = vmul.f32 1.442695, %v2724_v13 }
 0x8e3   : > { %v2716_v18 = vpop.xlane.xlu0 %2715  ;;  %v2719_v22 = vpop.xlane.xlu1 %2718 }
 0x8e4   : > { %6477 = vpow2.f32 %v2736_v17  ;;  %v2726_v23 = vsub.f32 %v2694_v27, %v2716_v18  ;;  %v2727_v24 = vsub.f32 %v2695_v31, %v2719_v22 }
 0x8e6   : > { %v2740_v19 = vmul.f32 1.442695, %v2726_v23  ;;  %v2742_v35 = vmul.f32 1.442695, %v2727_v24 }
 0x8e7   : > { %v2789_v11 = vpop.permute.xlu0 %2788  ;;  %v2836_v4 = vpop.permute.xlu1 %2835 }
 0x8e8   : > { %6479 = vpow2.f32 %v2740_v19  ;;  %5988 = vmatpush3.bf16.msra.mxu0 %v2789_v11  ;;  %5994 = vmatpush3.bf16.msra.mxu1 %v2836_v4 }
 0x8e9   : > { %v6472_v48 = vpop.eup %6471  ;;  %6481 = vpow2.f32 %v2742_v35  ;;  %5999 = vmatprep.subr.bf16.mxu0 %v7089_v56  ;;  %6005 = vmatprep.subr.bf16.mxu1 %v7089_v56 }
 0x8ea   : > { %v2750_v49 = vsel %vm1613_vm3, %v6472_v48, 0.0 }
 0x8eb   : > { %2751 = vadd.xlane.f32.xlu0 %v2750_v49 }
 0x8ed   : > { %v6474_v44 = vpop.eup %6473 }
 0x8ee   : > { %v2753_v27 = vsel %vm1613_vm3, %v6474_v44, 0.0  ;;  %v6476_v31 = vpop.eup %6475 }
 0x8ef   : > { %2754 = vadd.xlane.f32.xlu1 %v2753_v27  ;;  %v2759_v59 = vsel %vm1613_vm3, %v6476_v31, 0.0 }
 0x8f1   : > { %v6478_v36 = vpop.eup %6477 }
 0x8f2   : > { %v2756_v50 = vsel %vm1613_vm3, %v6478_v36, 0.0 }
 0x8f3   : > { %2757 = vadd.xlane.f32.xlu0 %v2756_v50  ;;  %2760 = vadd.xlane.f32.xlu1 %v2759_v59 }
 0x8f5   : > { %v6480_v61 = vpop.eup %6479 }
 0x8f6   : > { %v7951_v57 = vpop.eup %6481  ;;  %v2762_v38 = vsel %vm1613_vm3, %v6480_v61, 0.0 }
 0x8f7   : > { %2763 = vadd.xlane.f32.xlu0 %v2762_v38  ;;  %v2765_v54 = vsel %vm1613_vm3, %v7951_v57, 0.0 }
 0x8f8   : > { %2766 = vadd.xlane.f32.xlu1 %v2765_v54 }
 0x909   : > { %3086 = vrot.lane.b32.xlu1 %v7592_v32, %s7093_s30  ;;  %v2883_v32 = vpop.permute.xlu1 %2882 }
 0x90d   : > { %3084 = vrot.lane.b32.xlu1 %v7616_v15, %s7093_s30  ;;  %3035 = vrot.lane.b32.xlu0 %v7577_v39, %s7093_s30  ;;  %v2930_v15 = vpop.permute.xlu1 %2929 }
 0x911   : > { %3188 = vrot.lane.b32.xlu1 %v7634_v43, %s7093_s30  ;;  %3033 = vrot.lane.b32.xlu0 %v7595_v1, %s7093_s30 }
 0x915   : > { %3186 = vrot.lane.b32.xlu1 %v7652_v51, %s7093_s30  ;;  %3137 = vrot.lane.b32.xlu0 %v7614_v14, %s7093_s30 }
 0x919   : > { %3135 = vrot.lane.b32.xlu0 %v7631_v37, %s7093_s30 }
 0x940   : > { %v2746_v60 = vpop.xlane.xlu0 %2745 }
 0x941   : > { %6483 = vrcp.f32 %v2746_v60 }
 0x944   : > { %v2749_v39 = vpop.xlane.xlu1 %2748 }
 0x945   : > { %6485 = vrcp.f32 %v2749_v39 }
 0x94e   : > { %v6484_v0 = vpop.eup %6483 }
 0x94f   : > { %v2776_v3 = vmul.f32 %v6484_v0, %v7937_v62 }
 0x952   : > { %v6486_v43 = vpop.eup %6485 }
 0x953   : > { %v2777_v1 = vmul.f32 %v6486_v43, %v7941_v63 }
 0x955   : > { %v2784_v53 = vpack.c.bf16 %v2777_v1, %v2776_v3 }
 0x957   : > { %5990 = vmatmul.mubr.msk.bf16.vlgmr.msra.gmra.mxu0 %vm1613_vm3, %v2784_v53 }
 0x958   : > { %6000 = vmatpush3.bf16.msra.mxu0 %v2883_v32  ;;  %6001 = vmatprep.mubr.msk.bf16.mxu0 %vm7090_vm0, %v7089_v56 }
 0x959   : > { %6011 = vmatprep.subr.bf16.mxu0 %v7089_v56 }
 0x974   : > { %v2752_v14 = vpop.xlane.xlu0 %2751 }
 0x975   : > { %6487 = vrcp.f32 %v2752_v14 }
 0x978   : > { %v2755_v37 = vpop.xlane.xlu1 %2754 }
 0x979   : > { %6489 = vrcp.f32 %v2755_v37 }
 0x97c   : > { %v2758_v51 = vpop.xlane.xlu0 %2757  ;;  %v2761_v40 = vpop.xlane.xlu1 %2760 }
 0x97d   : > { %6491 = vrcp.f32 %v2758_v51 }
 0x97e   : > { %6493 = vrcp.f32 %v2761_v40 }
 0x980   : > { %v2764_v62 = vpop.xlane.xlu0 %2763 }
 0x981   : > { %6495 = vrcp.f32 %v2764_v62  ;;  %v2767_v63 = vpop.xlane.xlu1 %2766 }
 0x982   : > { %6497 = vrcp.f32 %v2767_v63  ;;  %v6488_v7 = vpop.eup %6487 }
 0x983   : > { %v2778_v58 = vmul.f32 %v6488_v7, %v6472_v48 }
 0x984   : > { %v3036_v41 = vpop.permute.xlu0 %3035 }
 0x985   : > { %v3087_v22 = vpop.permute.xlu1 %3086  ;;  %v3041_v4 = vsel %vm1412_vm1, %v3036_v41, 0 }
 0x986   : > { %v6490_v33 = vpop.eup %6489  ;;  %v3092_v27 = vsel %vm1412_vm1, %v3087_v22, 0 }
 0x987   : > { %v2779_v10 = vmul.f32 %v6490_v33, %v6474_v44 }
 0x988   : > { %v3034_v35 = vpop.permute.xlu0 %3033 }
 0x989   : > { %v2785_v2 = vpack.c.bf16 %v2779_v10, %v2778_v58  ;;  %v3085_v44 = vpop.permute.xlu1 %3084 }
 0x98a   : > { %v6492_v12 = vpop.eup %6491 }
 0x98b   : > { %v6494_v13 = vpop.eup %6493  ;;  %5996 = vmatmul.mubr.msk.bf16.vlgmr.msra.gmra.mxu1 %vm1613_vm3, %v2785_v2  ;;  %v2780_v17 = vmul.f32 %v6492_v12, %v6478_v36 }
 0x98c   : > { %6006 = vmatpush3.bf16.msra.mxu1 %v2930_v15  ;;  %v2781_v18 = vmul.f32 %v6494_v13, %v6476_v31  ;;  %6007 = vmatprep.mubr.msk.bf16.mxu1 %vm7090_vm0, %v7089_v56  ;;  %v3138_v31 = vpop.permute.xlu0 %3137 }
 0x98d   : > { %6017 = vmatprep.subr.bf16.mxu1 %v7089_v56  ;;  %v3143_v36 = vsel %vm1412_vm1, %v3138_v31, 0  ;;  %v3189_v50 = vpop.permute.xlu1 %3188 }
 0x98e   : > { %v6496_v23 = vpop.eup %6495  ;;  %v2786_v24 = vpack.c.bf16 %v2781_v18, %v2780_v17  ;;  %v3194_v59 = vsel %vm1412_vm1, %v3189_v50, 0 }
 0x98f   : > { %v6498_v19 = vpop.eup %6497  ;;  %v2782_v11 = vmul.f32 %v6496_v23, %v6480_v61 }
 0x990   : > { %6002 = vmatmul.mubr.msk.bf16.vlgmr.msra.gmra.mxu0 %vm1613_vm3, %v2786_v24  ;;  %v2783_v48 = vmul.f32 %v6498_v19, %v7951_v57  ;;  %v3136_v61 = vpop.permute.xlu0 %3135 }
 0x991   : > { %6012 = vmatpush3.bf16.xpose.msra.mxu0 %v3041_v4  ;;  %6013 = vmatprep.mubr.msk.bf16.mxu0 %vm7090_vm0, %v7089_v56  ;;  %v3187_v57 = vpop.permute.xlu1 %3186 }
 0x992   : > { %v2787_v49 = vpack.c.bf16 %v2783_v48, %v2782_v11  ;;  %6023 = vmatprep.subr.bf16.mxu0 %v7089_v56 }
 0x994   : > { %6008 = vmatmul.mubr.msk.bf16.vlgmr.msra.gmra.mxu1 %vm1613_vm3, %v2787_v49 }
 0x995   : > { %6018 = vmatpush3.bf16.xpose.msra.mxu1 %v3092_v27  ;;  %6019 = vmatprep.mubr.msk.bf16.mxu1 %vm7090_vm0, %v7089_v56 }
 0x996   : > { %6029 = vmatprep.subr.bf16.mxu1 %v7089_v56 }
 0x998   : > { %6014 = vmatmul.mubr.msk.bf16.vlgmr.msra.gmra.mxu0 %vm1412_vm1, %v3034_v35 }
 0x999   : > { %6024 = vmatpush3.bf16.xpose.msra.mxu0 %v3143_v36  ;;  %6025 = vmatprep.mubr.msk.bf16.mxu0 %vm7090_vm0, %v7089_v56 }
 0x99a   : > { %6035 = vmatprep.subr.bf16.mxu0 %v7089_v56 }
 0x99c   : > { %6020 = vmatmul.mubr.msk.bf16.vlgmr.msra.gmra.mxu1 %vm1412_vm1, %v3085_v44 }
 0x99d   : > { %6030 = vmatpush3.bf16.xpose.msra.mxu1 %v3194_v59  ;;  %6031 = vmatprep.mubr.msk.bf16.mxu1 %vm7090_vm0, %v7089_v56 }
 0x99e   : > { %6041 = vmatprep.subr.bf16.mxu1 %v7089_v56 }
 0x9a0   : > { %6026 = vmatmul.mubr.msk.bf16.vlgmr.msra.gmra.mxu0 %vm1412_vm1, %v3136_v61 }
 0x9a1   : > { %6037 = vmatprep.mubr.msk.bf16.mxu0 %vm7090_vm0, %v7089_v56 }
 0x9a4   : > { %6032 = vmatmul.mubr.msk.bf16.vlgmr.msra.gmra.mxu1 %vm1412_vm1, %v3187_v57 }
 0x9a5   : > { %6043 = vmatprep.mubr.msk.bf16.mxu1 %vm7090_vm0, %v7089_v56 }
 0xa17   : > { %v8009_v38 = vpop.f32.mrf.mxu0 }
 0xa19   : > { %v5991_v54 = vpop.f32.mrf.mxu0 }
 0xa1b   : > { %v8011_v32 = vpop.f32.mrf.mxu0 }
 0xa1d   : > { %v5992_v15 = vpop.f32.mrf.mxu0 }
 0xa4b   : > { %v8013_v60 = vpop.f32.mrf.mxu1 }
 0xa4d   : > { %v5997_v39 = vpop.f32.mrf.mxu1 }
 0xa4f   : > { %v8015_v0 = vpop.f32.mrf.mxu1 }
 0xa50   : > { %v8017_v43 = vpop.f32.mrf.mxu0 }
 0xa51   : > { %v5998_v3 = vpop.f32.mrf.mxu1 }
 0xa52   : > { %v6003_v1 = vpop.f32.mrf.mxu0 }
 0xa54   : > { %v8019_v53 = vpop.f32.mrf.mxu0  ;;  %v8021_v14 = vpop.f32.mrf.mxu1 }
 0xa56   : > { %v6004_v37 = vpop.f32.mrf.mxu0  ;;  %v6009_v51 = vpop.f32.mrf.mxu1 }
 0xa58   : > { %v8023_v40 = vpop.f32.mrf.mxu1  ;;  %v3077_v62 = vpop.f32.mrf.mxu0 }
 0xa59   : > { %v3237_v63 = vsel %vm7665_vm2, %v3077_v62, -1e+30 }
 0xa5a   : > { %v6010_v7 = vpop.f32.mrf.mxu1  ;;  %v6015_v33 = vpop.f32.mrf.mxu0  ;;  %v3245_v58 = vsel %vm1613_vm3, %v3237_v63, -inf }
 0xa5b   : > { %3246 = vmax.xlane.f32.xlu0 %v3245_v58 }
 0xa5c   : > { %v3080_v10 = vpop.f32.mrf.mxu0  ;;  %v3128_v41 = vpop.f32.mrf.mxu1 }
 0xa5d   : > { %v3238_v2 = vsel %vm7671_vm4, %v3080_v10, -1e+30  ;;  %v3239_v12 = vsel %vm7665_vm2, %v3128_v41, -1e+30 }
 0xa5e   : > { %v3248_v13 = vsel %vm1613_vm3, %v3238_v2, -inf  ;;  %v6016_v17 = vpop.f32.mrf.mxu0  ;;  %v6021_v18 = vpop.f32.mrf.mxu1  ;;  %v3251_v22 = vsel %vm1613_vm3, %v3239_v12, -inf }
 0xa5f   : > { %3249 = vmax.xlane.f32.xlu1 %v3248_v13  ;;  %3252 = vmax.xlane.f32.xlu0 %v3251_v22 }
 0xa60   : > { %v3131_v23 = vpop.f32.mrf.mxu1  ;;  %v3179_v24 = vpop.f32.mrf.mxu0 }
 0xa61   : > { %v3240_v19 = vsel %vm7671_vm4, %v3131_v23, -1e+30  ;;  %v3241_v48 = vsel %vm7665_vm2, %v3179_v24, -1e+30 }
 0xa62   : > { %v3254_v35 = vsel %vm1613_vm3, %v3240_v19, -inf  ;;  %v6022_v11 = vpop.f32.mrf.mxu1  ;;  %v6027_v4 = vpop.f32.mrf.mxu0  ;;  %v3257_v31 = vsel %vm1613_vm3, %v3241_v48, -inf }
 0xa63   : > { %3255 = vmax.xlane.f32.xlu0 %v3254_v35 }
 0xa64   : > { %v3182_v49 = vpop.f32.mrf.mxu0  ;;  %v3230_v44 = vpop.f32.mrf.mxu1 }
 0xa65   : > { %v3242_v27 = vsel %vm7671_vm4, %v3182_v49, -1e+30  ;;  %v3243_v61 = vsel %vm7665_vm2, %v3230_v44, -1e+30 }
 0xa66   : > { %v3260_v36 = vsel %vm1613_vm3, %v3242_v27, -inf  ;;  %v6028_v50 = vpop.f32.mrf.mxu0  ;;  %v6033_v59 = vpop.f32.mrf.mxu1  ;;  %v3263_v15 = vsel %vm1613_vm3, %v3243_v61, -inf }
 0xa67   : > { %3261 = vmax.xlane.f32.xlu1 %v3260_v36  ;;  %3258 = vmax.xlane.f32.xlu0 %v3257_v31 }
 0xa68   : > { %v3233_v57 = vpop.f32.mrf.mxu1 }
 0xa69   : > { %v8047_v54 = vsel %vm7671_vm4, %v3233_v57, -1e+30 }
 0xa6a   : > { %v3266_v39 = vsel %vm1613_vm3, %v8047_v54, -inf  ;;  %v6034_v3 = vpop.f32.mrf.mxu1 }
 0xa6b   : > { %3264 = vmax.xlane.f32.xlu0 %v3263_v15  ;;  %3267 = vmax.xlane.f32.xlu1 %v3266_v39  ;;  %v5642_v39 = vpack.c.bf16 %v7889_v29, %v7889_v29  ;;  %v5646_v29 = vpack.c.bf16 %v7897_v30, %v7897_v30  ;;  %v5645_v30 = vpack.c.bf16 %v7895_v25, %v7895_v25 }
 0xae4   : > { %v3247_v1 = vpop.xlane.xlu0 %3246 }
 0xae5   : > { %v3269_v37 = vsub.f32 %v3237_v63, %v3247_v1 }
 0xae7   : > { %v3277_v51 = vmul.f32 1.442695, %v3269_v37  ;;  %v5644_v37 = vpack.c.bf16 %v7893_v47, %v7893_v47  ;;  %v5648_v47 = vpack.c.bf16 %v7909_v6, %v7909_v6  ;;  %v5651_v6 = vpack.c.bf16 %v8011_v32, %v8011_v32 }
 0xae8   : > { %v3250_v28 = vpop.xlane.xlu1 %3249  ;;  %v3253_v62 = vpop.xlane.xlu0 %3252 }
 0xae9   : > { %6499 = vpow2.f32 %v3277_v51  ;;  %v3270_v7 = vsub.f32 %v3238_v2, %v3250_v28  ;;  %v3271_v33 = vsub.f32 %v3239_v12, %v3253_v62  ;;  %v5653_v51 = vpack.c.bf16 %v8015_v0, %v8015_v0 }
 0xaeb   : > { %v3279_v58 = vmul.f32 1.442695, %v3270_v7  ;;  %v3281_v55 = vmul.f32 1.442695, %v3271_v33 }
 0xaec   : > { %v3256_v10 = vpop.xlane.xlu0 %3255 }
 0xaed   : > { %6501 = vpow2.f32 %v3279_v58  ;;  %v3272_v41 = vsub.f32 %v3240_v19, %v3256_v10 }
 0xaee   : > { %6503 = vpow2.f32 %v3281_v55 }
 0xaef   : > { %v3283_v13 = vmul.f32 1.442695, %v3272_v41 }
 0xaf0   : > { %v3262_v17 = vpop.xlane.xlu1 %3261  ;;  %v3259_v18 = vpop.xlane.xlu0 %3258 }
 0xaf1   : > { %6505 = vpow2.f32 %v3283_v13  ;;  %v3274_v22 = vsub.f32 %v3242_v27, %v3262_v17  ;;  %v3273_v23 = vsub.f32 %v3241_v48, %v3259_v18 }
 0xaf3   : > { %v3287_v24 = vmul.f32 1.442695, %v3274_v22  ;;  %v3285_v63 = vmul.f32 1.442695, %v3273_v23 }
 0xaf4   : > { %v3265_v35 = vpop.xlane.xlu0 %3264  ;;  %v3268_v3 = vpop.xlane.xlu1 %3267 }
 0xaf5   : > { %6507 = vpow2.f32 %v3287_v24  ;;  %v3275_v11 = vsub.f32 %v3243_v61, %v3265_v35  ;;  %v3276_v1 = vsub.f32 %v8047_v54, %v3268_v3 }
 0xaf6   : > { %v8052_v4 = vpop.eup %6499  ;;  %6509 = vpow2.f32 %v3285_v63 }
 0xaf7   : > { %v3289_v2 = vmul.f32 1.442695, %v3275_v11  ;;  %v3293_v12 = vsel %vm1613_vm3, %v8052_v4, 0.0 }
 0xaf8   : > { %3294 = vadd.xlane.f32.xlu0 %v3293_v12 }
 0xaf9   : > { %6511 = vpow2.f32 %v3289_v2 }
 0xafa   : > { %v8056_v19 = vpop.eup %6501 }
 0xafb   : > { %v8058_v49 = vpop.eup %6503  ;;  %v3296_v48 = vsel %vm1613_vm3, %v8056_v19, 0.0 }
 0xafc   : > { %v3299_v44 = vsel %vm1613_vm3, %v8058_v49, 0.0  ;;  %3297 = vadd.xlane.f32.xlu1 %v3296_v48 }
 0xafd   : > { %3300 = vadd.xlane.f32.xlu0 %v3299_v44 }
 0xafe   : > { %v8064_v27 = vpop.eup %6505 }
 0xaff   : > { %v3302_v31 = vsel %vm1613_vm3, %v8064_v27, 0.0 }
 0xb00   : > { %3303 = vadd.xlane.f32.xlu1 %v3302_v31 }
 0xb02   : > { %v8068_v36 = vpop.eup %6507 }
 0xb03   : > { %v8070_v50 = vpop.eup %6509  ;;  %v3308_v59 = vsel %vm1613_vm3, %v8068_v36, 0.0 }
 0xb04   : > { %v3305_v61 = vsel %vm1613_vm3, %v8070_v50, 0.0  ;;  %3309 = vadd.xlane.f32.xlu1 %v3308_v59 }
 0xb05   : > { %3306 = vadd.xlane.f32.xlu0 %v3305_v61 }
 0xb06   : > { %v8076_v57 = vpop.eup %6511 }
 0xb07   : > { %v3311_v15 = vsel %vm1613_vm3, %v8076_v57, 0.0 }
 0xb09   : > { %3312 = vadd.xlane.f32.xlu0 %v3311_v15 }
 0xb15   : > { %3384 = vrot.lane.b32.xlu1 %v7654_v52, %s7093_s30  ;;  %v3291_v52 = vmul.f32 1.442695, %v3276_v1 }
 0xb17   : > { %6513 = vpow2.f32 %v3291_v52 }
 0xb19   : > { %3431 = vrot.lane.b32.xlu1 %v7606_v8, %s7093_s30  ;;  %v5650_v8 = vpack.c.bf16 %v8009_v38, %v8009_v38 }
 0xb1f   : > { %3337 = vrot.lane.b32.xlu0 %v7636_v46, %s7093_s30  ;;  %v5652_v46 = vpack.c.bf16 %v8013_v60, %v8013_v60  ;;  %v5643_v60 = vpack.c.bf16 %v7891_v42, %v7891_v42  ;;  %v5649_v42 = vpack.c.bf16 %v7912_v9, %v7912_v9 }
 0xb23   : > { %2451 = vrot.lane.b32.xlu0 %v5642_v39, %s7093_s30 }
 0xb24   : > { %v8105_v54 = vpop.eup %6513 }
 0xb25   : > { %v3314_v38 = vsel %vm1613_vm3, %v8105_v54, 0.0 }
 0xb27   : > { %2455 = vrot.lane.b32.xlu0 %v5644_v37, %s7093_s30 }
 0xb2b   : > { %3000 = vrot.lane.b32.xlu0 %v5650_v8, %s7092_s2 }
 0xb2f   : > { %3004 = vrot.lane.b32.xlu0 %v5652_v46, %s7092_s2  ;;  %v6295_v46 = vld [vmem:[%s7432_s3 + $0x38] sm:$0xff]  }
 0xb33   : > { %2459 = vrot.lane.b32.xlu0 %v5646_v29, %s7093_s30  ;;  %v6296_v29 = vld [vmem:[%s7432_s3 + $0x30] sm:$0xff]  }
 0xb37   : > { %2463 = vrot.lane.b32.xlu0 %v5648_v47, %s7093_s30  ;;  %v6297_v47 = vld [vmem:[%s7432_s3 + $0x28] sm:$0xff]  }
 0xb3d   : > { %3315 = vadd.xlane.f32.xlu1 %v3314_v38  ;;  %v6299_v38 = vld [vmem:[%s7432_s3 + $0x18] sm:$0xff]  }
 0xb4e   : > { %3478 = vrot.lane.b32.xlu1 %v7598_v5, %s7093_s30  ;;  %v5647_v5 = vpack.c.bf16 %v7899_v45, %v7899_v45 }
 0xb52   : > { %2453 = vrot.lane.b32.xlu1 %v5643_v60, %s7093_s30  ;;  %v6300_v60 = vld [vmem:[%s7432_s3 + $0x10] sm:$0xff]  }
 0xb56   : > { %2457 = vrot.lane.b32.xlu1 %v5645_v30, %s7093_s30  ;;  %v6301_v30 = vld [vmem:[%s7432_s3 + $0x8] sm:$0xff]  }
 0xb5a   : > { %3002 = vrot.lane.b32.xlu1 %v5651_v6, %s7092_s2 }
 0xb5e   : > { %3006 = vrot.lane.b32.xlu1 %v5653_v51, %s7092_s2 }
 0xb62   : > { %2461 = vrot.lane.b32.xlu1 %v5647_v5, %s7093_s30  ;;  %v6302_v5 = vld [vmem:[%s7432_s3] sm:$0xff]  }
 0xb66   : > { %2465 = vrot.lane.b32.xlu1 %v5649_v42, %s7093_s30 }
 0xb81   : > { %v3295_v25 = vpop.xlane.xlu0 %3294 }
 0xb82   : > { %6515 = vrcp.f32 %v3295_v25 }
 0xb85   : > { %v3298_v32 = vpop.xlane.xlu1 %3297 }
 0xb86   : > { %v3301_v28 = vpop.xlane.xlu0 %3300  ;;  %6517 = vrcp.f32 %v3298_v32 }
 0xb87   : > { %6519 = vrcp.f32 %v3301_v28 }
 0xb89   : > { %v3304_v62 = vpop.xlane.xlu1 %3303 }
 0xb8a   : > { %6521 = vrcp.f32 %v3304_v62 }
 0xb8d   : > { %v3310_v0 = vpop.xlane.xlu1 %3309 }
 0xb8e   : > { %v3307_v7 = vpop.xlane.xlu0 %3306  ;;  %6523 = vrcp.f32 %v3310_v0 }
 0xb8f   : > { %6525 = vrcp.f32 %v3307_v7  ;;  %v6516_v45 = vpop.eup %6515 }
 0xb90   : > { %v3325_v9 = vmul.f32 %v6516_v45, %v8052_v4 }
 0xb91   : > { %v3385_v33 = vpop.permute.xlu1 %3384 }
 0xb92   : > { %v3313_v58 = vpop.xlane.xlu0 %3312  ;;  %6042 = vmatpush3.bf16.msra.mxu1 %v3385_v33 }
 0xb93   : > { %v6518_v55 = vpop.eup %6517  ;;  %6053 = vmatprep.subr.bf16.mxu1 %v7089_v56  ;;  %6527 = vrcp.f32 %v3313_v58 }
 0xb94   : > { %v3326_v10 = vmul.f32 %v6518_v55, %v8056_v19  ;;  %v6520_v41 = vpop.eup %6519 }
 0xb95   : > { %v3327_v22 = vmul.f32 %v6520_v41, %v8058_v49  ;;  %v3432_v24 = vpop.permute.xlu1 %3431 }
 0xb96   : > { %v3338_v13 = vpop.permute.xlu0 %3337  ;;  %v3333_v17 = vpack.c.bf16 %v3326_v10, %v3325_v9  ;;  %v5654_v9 = vpack.c.bf16 %v8017_v43, %v8017_v43  ;;  %v5657_v43 = vpack.c.bf16 %v8023_v40, %v8023_v40 }
 0xb97   : > { %v6522_v18 = vpop.eup %6521  ;;  %6036 = vmatpush3.bf16.msra.mxu0 %v3338_v13  ;;  %v5655_v13 = vpack.c.bf16 %v8019_v53, %v8019_v53 }
 0xb98   : > { %6047 = vmatprep.subr.bf16.mxu0 %v7089_v56  ;;  %v3328_v23 = vmul.f32 %v6522_v18, %v8064_v27 }
 0xb9a   : > { %v2452_v63 = vpop.permute.xlu0 %2451  ;;  %6038 = vmatmul.mubr.msk.bf16.vlgmr.msra.gmra.mxu0 %vm1613_vm3, %v3333_v17  ;;  %v3334_v35 = vpack.c.bf16 %v3328_v23, %v3327_v22  ;;  %v5656_v17 = vpack.c.bf16 %v8021_v14, %v8021_v14 }
 0xb9b   : > { %v6524_v11 = vpop.eup %6523  ;;  %2476 = vst.msk [vmem:[#allocation3] sm:$0xf] %vm2475_vm6, %v2452_v63  ;;  %6048 = vmatpush3.bf16.msra.mxu0 %v3432_v24  ;;  %6049 = vmatprep.mubr.msk.bf16.mxu0 %vm7090_vm0, %v7089_v56 }
 0xb9c   : > { %v6526_v4 = vpop.eup %6525  ;;  %6044 = vmatmul.mubr.msk.bf16.vlgmr.msra.gmra.mxu1 %vm1613_vm3, %v3334_v35  ;;  %v3330_v2 = vmul.f32 %v6524_v11, %v8068_v36  ;;  %6059 = vmatprep.subr.bf16.mxu0 %v6295_v46 }
 0xb9d   : > { %v3329_v12 = vmul.f32 %v6526_v4, %v8070_v50  ;;  %6055 = vmatprep.mubr.msk.bf16.mxu1 %vm7090_vm0, %v7089_v56 }
 0xb9e   : > { %v2456_v19 = vpop.permute.xlu0 %2455 }
 0xb9f   : > { %2478 = vst.msk [vmem:[#allocation3 + $0x8] sm:$0xf] %vm2475_vm6, %v2456_v19  ;;  %v3335_v49 = vpack.c.bf16 %v3330_v2, %v3329_v12 }
 0xba0   : > { %v6528_v59 = vpop.eup %6527 }
 0xba1   : > { %v3331_v39 = vmul.f32 %v6528_v59, %v8076_v57 }
 0xba2   : > { %v3001_v48 = vpop.permute.xlu0 %3000  ;;  %6050 = vmatmul.mubr.msk.bf16.vlgmr.msra.gmra.mxu0 %vm1613_vm3, %v3335_v49 }
 0xba3   : > { %3025 = vst.msk [vmem:[#allocation3] sm:$0xf] %vm3024_vm7, %v3001_v48  ;;  %6060 = vmatpush3.bf16.msra.mxu0 %v6295_v46 }
 0xba4   : > { %6061 = vmatprep.subr.bf16.mxu0 %v6296_v29 }
 0xba6   : > { %v3005_v44 = vpop.permute.xlu0 %3004 }
 0xba7   : > { %3027 = vst.msk [vmem:[#allocation3 + $0x8] sm:$0xf] %vm3024_vm7, %v3005_v44  ;;  %6062 = vmatpush3.bf16.msra.mxu0 %v6296_v29 }
 0xba8   : > { %6063 = vmatprep.subr.bf16.mxu0 %v6297_v47 }
 0xbaa   : > { %v2460_v27 = vpop.permute.xlu0 %2459 }
 0xbab   : > { %2480 = vst.msk [vmem:[#allocation3 + $0x10] sm:$0xf] %vm2475_vm6, %v2460_v27  ;;  %6064 = vmatpush3.bf16.msra.mxu0 %v6297_v47 }
 0xbae   : > { %v2464_v31 = vpop.permute.xlu0 %2463 }
 0xbaf   : > { %2482 = vst.msk [vmem:[#allocation3 + $0x18] sm:$0xf] %vm2475_vm6, %v2464_v31 }
 0xbc6   : > { %v3316_v56 = vpop.xlane.xlu1 %3315 }
 0xbc7   : > { %6529 = vrcp.f32 %v3316_v56 }
 0xbca   : > { %v3479_v36 = vpop.permute.xlu1 %3478 }
 0xbcb   : > { %6054 = vmatpush3.bf16.msra.mxu1 %v3479_v36 }
 0xbce   : > { %v2454_v50 = vpop.permute.xlu1 %2453 }
 0xbcf   : > { %2477 = vst.msk [vmem:[#allocation3 + $0x4] sm:$0xf] %vm2475_vm6, %v2454_v50 }
 0xbd2   : > { %v2458_v61 = vpop.permute.xlu1 %2457 }
 0xbd3   : > { %2479 = vst.msk [vmem:[#allocation3 + $0xc] sm:$0xf] %vm2475_vm6, %v2458_v61 }
 0xbd4   : > { %v6530_v15 = vpop.eup %6529 }
 0xbd5   : > { %v3332_v3 = vmul.f32 %v6530_v15, %v8105_v54  ;;  %v6298_v54 = vld [vmem:[%s7432_s3 + $0x20] sm:$0xff]   ;;  %s8738_s3 = scalar_lea.vmem [#allocation14], %s7420_s21 }
 0xbd6   : > { %v3003_v1 = vpop.permute.xlu1 %3002  ;;  %6065 = vmatprep.subr.bf16.mxu0 %v6298_v54 }
 0xbd7   : > { %3026 = vst.msk [vmem:[#allocation3 + $0x4] sm:$0xf] %vm3024_vm7, %v3003_v1  ;;  %v3336_v37 = vpack.c.bf16 %v3332_v3, %v3331_v39  ;;  %6066 = vmatpush3.bf16.msra.mxu0 %v6298_v54  ;;  %v6675_v1 = vld [vmem:[#allocation2] sm:$0xff]  ;;  %v6677_v54 = vld [vmem:[#allocation2 + $0x8] sm:$0xff] }
 0xbd8   : > { %6067 = vmatprep.subr.bf16.mxu0 %v6299_v38 }
 0xbd9   : > { %6056 = vmatmul.mubr.msk.bf16.vlgmr.msra.gmra.mxu1 %vm1613_vm3, %v3336_v37 }
 0xbda   : > { %v3007_v52 = vpop.permute.xlu1 %3006  ;;  %4134 = vmatprep.mubr.bf16.mxu1 %v7088_v16 }
 0xbdb   : > { %3028 = vst.msk [vmem:[#allocation3 + $0xc] sm:$0xf] %vm3024_vm7, %v3007_v52  ;;  %6068 = vmatpush3.bf16.msra.mxu0 %v6299_v38  ;;  %v5510_v52 = vld [vmem:[%s8738_s3] ss:$0 sm:$0xff] }
 0xbdc   : > { %6069 = vmatprep.subr.bf16.mxu0 %v6300_v60 }
 0xbde   : > { %v2462_v8 = vpop.permute.xlu1 %2461 }
 0xbdf   : > { %2481 = vst.msk [vmem:[#allocation3 + $0x14] sm:$0xf] %vm2475_vm6, %v2462_v8  ;;  %6070 = vmatpush3.bf16.msra.mxu0 %v6300_v60 }
 0xbe0   : > { %6071 = vmatprep.subr.bf16.mxu0 %v6301_v30 }
 0xbe2   : > { %v2466_v57 = vpop.permute.xlu1 %2465 }
 0xbe3   : > { %2483 = vst.msk [vmem:[#allocation3 + $0x1c] sm:$0xf] %vm2475_vm6, %v2466_v57  ;;  %6072 = vmatpush3.bf16.msra.mxu0 %v6301_v30  ;;  %v6676_v57 = vld [vmem:[#allocation2 + $0x10] sm:$0xff]  ;;  %v6678_v30 = vld [vmem:[#allocation2 + $0x18] sm:$0xff] }
 0xbe4   : > { %6073 = vmatprep.subr.bf16.mxu0 %v6302_v5 }
 0xbe7   : > { %6074 = vmatpush3.bf16.msra.mxu0 %v6302_v5 }
 0xc5a   : > { %v3377_v6 = vpop.f32.mrf.mxu0 }
 0xc5b   : > { %v5658_v51 = vpack.c.bf16 %v3377_v6, %v3377_v6 }
 0xc5c   : > { %v6039_v42 = vpop.f32.mrf.mxu0  ;;  %v3424_v25 = vpop.f32.mrf.mxu1 }
 0xc5d   : > { %3549 = vrot.lane.b32.xlu0 %v5658_v51, %s7091_s6  ;;  %v5660_v32 = vpack.c.bf16 %v3424_v25, %v3424_v25 }
 0xc5e   : > { %v3380_v28 = vpop.f32.mrf.mxu0  ;;  %v6045_v62 = vpop.f32.mrf.mxu1 }
 0xc5f   : > { %v5659_v0 = vpack.c.bf16 %v3380_v28, %v3380_v28 }
 0xc60   : > { %v6040_v7 = vpop.f32.mrf.mxu0  ;;  %v3427_v45 = vpop.f32.mrf.mxu1 }
 0xc61   : > { %3551 = vrot.lane.b32.xlu1 %v5659_v0, %s7091_s6  ;;  %3553 = vrot.lane.b32.xlu0 %v5660_v32, %s7091_s6  ;;  %v5661_v33 = vpack.c.bf16 %v3427_v45, %v3427_v45  ;;  %v6679_v32 = vld [vmem:[#allocation2 + $0x20] sm:$0xff]  ;;  %v6680_v0 = vld [vmem:[#allocation2 + $0x30] sm:$0xff] }
 0xc62   : > { %v3471_v58 = vpop.f32.mrf.mxu0  ;;  %v6046_v55 = vpop.f32.mrf.mxu1 }
 0xc63   : > { %v5662_v22 = vpack.c.bf16 %v3471_v58, %v3471_v58  ;;  %v6681_v58 = vld [vmem:[#allocation2 + $0x28] sm:$0xff] }
 0xc64   : > { %v6051_v10 = vpop.f32.mrf.mxu0 }
 0xc65   : > { %3008 = vrot.lane.b32.xlu0 %v5654_v9, %s7092_s2  ;;  %3555 = vrot.lane.b32.xlu1 %v5661_v33, %s7091_s6  ;;  %v6682_v10 = vld [vmem:[#allocation2 + $0x38] sm:$0xff] }
 0xc66   : > { %v3474_v41 = vpop.f32.mrf.mxu0 }
 0xc67   : > { %v5663_v23 = vpack.c.bf16 %v3474_v41, %v3474_v41 }
 0xc68   : > { %v6052_v18 = vpop.f32.mrf.mxu0 }
 0xc69   : > { %3012 = vrot.lane.b32.xlu0 %v5656_v17, %s7092_s2  ;;  %3010 = vrot.lane.b32.xlu1 %v5655_v13, %s7092_s2  ;;  %v6307_v18 = vld [vmem:[%s7436_s10 + $0xe0] ss:$16 sps:$4 sm:$0xff]  }
 0xc6d   : > { %3557 = vrot.lane.b32.xlu0 %v5662_v22, %s7091_s6  ;;  %3014 = vrot.lane.b32.xlu1 %v5657_v43, %s7092_s2  ;;  %v6309_v43 = vld [vmem:[%s7436_s10 + $0xe4] ss:$16 sps:$4 sm:$0xff]   ;;  %v6310_v22 = vld [vmem:[%s7436_s10 + $0xe8] ss:$16 sps:$4 sm:$0xff]  }
 0xc6e   : > { %4102 = vmatprep.subr.bf16.mxu1 %v6309_v43 }
 0xc6f   : > { %4103 = vmatpush1.bf16.msra.mxu1 %v6307_v18 }
 0xc71   : > { %3559 = vrot.lane.b32.xlu1 %v5663_v23, %s7091_s6  ;;  %v6312_v23 = vld [vmem:[%s7436_s10 + $0xec] ss:$16 sps:$4 sm:$0xff]  }
 0xc72   : > { %4175 = vmatprep.subr.bf16.mxu0 %v6312_v23 }
 0xc99   : > { %v3518_v53 = vpop.f32.mrf.mxu1 }
 0xc9a   : > { %v5664_v24 = vpack.c.bf16 %v3518_v53, %v3518_v53 }
 0xc9b   : > { %v6057_v63 = vpop.f32.mrf.mxu1 }
 0xc9c   : > { %3561 = vrot.lane.b32.xlu0 %v5664_v24, %s7091_s6 }
 0xc9d   : > { %v3521_v14 = vpop.f32.mrf.mxu1 }
 0xc9e   : > { %v5665_v35 = vpack.c.bf16 %v3521_v14, %v3521_v14 }
 0xc9f   : > { %v6058_v11 = vpop.f32.mrf.mxu1 }
 0xca0   : > { %3563 = vrot.lane.b32.xlu1 %v5665_v35, %s7091_s6 }
 0xccf   : > { %v3550_v40 = vpop.permute.xlu0 %3549 }
 0xcd0   : > { %3574 = vst.msk [vmem:[#allocation3] sm:$0xf] %vm3573_vm8, %v3550_v40 }
 0xcd3   : > { %v3552_v4 = vpop.permute.xlu1 %3551  ;;  %v3554_v2 = vpop.permute.xlu0 %3553 }
 0xcd4   : > { %3575 = vst.msk [vmem:[#allocation3 + $0x4] sm:$0xf] %vm3573_vm8, %v3552_v4  ;;  %3576 = vst.msk [vmem:[#allocation3 + $0x8] sm:$0xf] %vm3573_vm8, %v3554_v2 }
 0xcd7   : > { %v3009_v12 = vpop.permute.xlu0 %3008  ;;  %v3556_v19 = vpop.permute.xlu1 %3555 }
 0xcd8   : > { %3029 = vst.msk [vmem:[#allocation3 + $0x10] sm:$0xf] %vm3024_vm7, %v3009_v12 }
 0xcd9   : > { %3577 = vst.msk [vmem:[#allocation3 + $0xc] sm:$0xf] %vm3573_vm8, %v3556_v19 }
 0xcdb   : > { %v3013_v49 = vpop.permute.xlu0 %3012  ;;  %v3011_v48 = vpop.permute.xlu1 %3010  ;;  %v6303_v44 = vld [vmem:[#allocation3] sm:$0xff]  }
 0xcdc   : > { %3031 = vst.msk [vmem:[#allocation3 + $0x18] sm:$0xf] %vm3024_vm7, %v3013_v49  ;;  %3030 = vst.msk [vmem:[#allocation3 + $0x14] sm:$0xf] %vm3024_vm7, %v3011_v48  ;;  %6075 = vmatprep.mubr.bf16.mxu0 %v6303_v44 }
 0xcdf   : > { %v3558_v27 = vpop.permute.xlu0 %3557  ;;  %v3015_v31 = vpop.permute.xlu1 %3014 }
 0xce0   : > { %v6304_v56 = vld [vmem:[#allocation3 + $0x8] sm:$0xff]   ;;  %3578 = vst.msk [vmem:[#allocation3 + $0x10] sm:$0xf] %vm3573_vm8, %v3558_v27 }
 0xce1   : > { %3032 = vst.msk [vmem:[#allocation3 + $0x1c] sm:$0xf] %vm3024_vm7, %v3015_v31  ;;  %6076 = vmatmul.mubr.bf16.vlgmr.msra.gmra.mxu0 %v6304_v56  ;;  %v6315_v56 = vld [vmem:[%s7436_s10 + $0xc4] ss:$16 sps:$4 sm:$0xff]  }
 0xce2   : > { %4176 = vmatpush1.bf16.msra.mxu0 %v6310_v22  ;;  %4104 = vmatprep.subr.bf16.mxu1 %v6315_v56 }
 0xce3   : > { %v3560_v36 = vpop.permute.xlu1 %3559 }
 0xce4   : > { %3579 = vst.msk [vmem:[#allocation3 + $0x14] sm:$0xf] %vm3573_vm8, %v3560_v36  ;;  %v6318_v36 = vld [vmem:[%s7436_s10 + $0xcc] ss:$16 sps:$4 sm:$0xff]  }
 0xce5   : > { %4177 = vmatprep.subr.bf16.mxu0 %v6318_v36 }
 0xceb   : > { %v6305_v50 = vld [vmem:[#allocation3 + $0x10] sm:$0xff]  }
 0xcec   : > { %6079 = vmatprep.mubr.bf16.mxu0 %v6305_v50  ;;  %v6313_v50 = vld [vmem:[%s7436_s10 + $0xc0] ss:$16 sps:$4 sm:$0xff]  }
 0xced   : > { %4105 = vmatpush1.bf16.msra.mxu1 %v6313_v50 }
 0xd0e   : > { %v3562_v59 = vpop.permute.xlu0 %3561 }
 0xd0f   : > { %3580 = vst.msk [vmem:[#allocation3 + $0x18] sm:$0xf] %vm3573_vm8, %v3562_v59  ;;  %v6316_v59 = vld [vmem:[%s7436_s10 + $0xc8] ss:$16 sps:$4 sm:$0xff]  }
 0xd10   : > { %4178 = vmatpush1.bf16.msra.mxu0 %v6316_v59 }
 0xd12   : > { %v3564_v61 = vpop.permute.xlu1 %3563 }
 0xd13   : > { %3581 = vst.msk [vmem:[#allocation3 + $0x1c] sm:$0xf] %vm3573_vm8, %v3564_v61  ;;  %v6321_v61 = vld [vmem:[%s7436_s10 + $0xa4] ss:$16 sps:$4 sm:$0xff]  }
 0xd14   : > { %4106 = vmatprep.subr.bf16.mxu1 %v6321_v61 }
 0xd1a   : > { %v6306_v15 = vld [vmem:[#allocation3 + $0x18] sm:$0xff]  }
 0xd1b   : > { %6080 = vmatmul.mubr.bf16.gmra.mxu0 %v6306_v15  ;;  %v6324_v15 = vld [vmem:[%s7436_s10 + $0xac] ss:$16 sps:$4 sm:$0xff]  }
 0xd1c   : > { %4207 = vmatprep.mubr.bf16.mxu0 %v7088_v16  ;;  %4179 = vmatprep.subr.bf16.mxu0 %v6324_v15 }
 0xda1   : > { %v6077_v39 = vpop.f32.mrf.mxu0 }
 0xda2   : > { %v3745_v46 = vadd.f32 %v6676_v57, %v6077_v39  ;;  %v6319_v39 = vld [vmem:[%s7436_s10 + $0xa0] ss:$16 sps:$4 sm:$0xff]  }
 0xda3   : > { %v3712_v3 = vpop.f32.mrf.mxu0  ;;  %4107 = vmatpush1.bf16.msra.mxu1 %v6319_v39  ;;  %v6331_v57 = vld [vmem:[%s7436_s10 + $0x60] ss:$16 sps:$4 sm:$0xff]  }
 0xda4   : > { %v3743_v37 = vadd.f32 %v6675_v1, %v3712_v3  ;;  %v8206_v60 = vadd.f32 %v5510_v52, %v3745_v46  ;;  %v6322_v3 = vld [vmem:[%s7436_s10 + $0xa8] ss:$16 sps:$4 sm:$0xff]   ;;  %v6327_v1 = vld [vmem:[%s7436_s10 + $0x84] ss:$16 sps:$4 sm:$0xff]  }
 0xda5   : > { %v6078_v8 = vpop.f32.mrf.mxu0  ;;  %4180 = vmatpush1.bf16.msra.mxu0 %v6322_v3  ;;  %4108 = vmatprep.subr.bf16.mxu1 %v6327_v1  ;;  %v6333_v46 = vld [vmem:[%s7436_s10 + $0x64] ss:$16 sps:$4 sm:$0xff]  }
 0xda6   : > { %v8203_v29 = vadd.f32 %v5510_v52, %v3743_v37  ;;  %v3746_v6 = vadd.f32 %v6678_v30, %v6078_v8  ;;  %v6330_v37 = vld [vmem:[%s7436_s10 + $0x8c] ss:$16 sps:$4 sm:$0xff]   ;;  %v6328_v8 = vld [vmem:[%s7436_s10 + $0x88] ss:$16 sps:$4 sm:$0xff]  }
 0xda7   : > { %v3715_v47 = vpop.f32.mrf.mxu0  ;;  %4181 = vmatprep.subr.bf16.mxu0 %v6330_v37  ;;  %v6342_v30 = vld [vmem:[%s7436_s10 + $0x4c] ss:$16 sps:$4 sm:$0xff]  }
 0xda8   : > { %v3744_v38 = vadd.f32 %v6677_v54, %v3715_v47  ;;  %3768 = vadd.xlane.f32.xlu0 %v8203_v29  ;;  %v8212_v5 = vadd.f32 %v5510_v52, %v3746_v6  ;;  %v6334_v47 = vld [vmem:[%s7436_s10 + $0x68] ss:$16 sps:$4 sm:$0xff]   ;;  %v6336_v54 = vld [vmem:[%s7436_s10 + $0x6c] ss:$16 sps:$4 sm:$0xff]   ;;  %v6337_v6 = vld [vmem:[%s7436_s10 + $0x40] ss:$16 sps:$4 sm:$0xff]  }
 0xda9   : > { %4182 = vmatpush1.bf16.msra.mxu0 %v6328_v8 }
 0xdaa   : > { %v8208_v51 = vadd.f32 %v5510_v52, %v3744_v38  ;;  %v6339_v38 = vld [vmem:[%s7436_s10 + $0x44] ss:$16 sps:$4 sm:$0xff]   ;;  %4183 = vmatprep.subr.bf16.mxu0 %v6336_v54 }
 0xdac   : > { %3772 = vadd.xlane.f32.xlu0 %v8206_v60  ;;  %3770 = vadd.xlane.f32.xlu1 %v8208_v51 }
 0xdad   : > { %4184 = vmatpush1.bf16.msra.mxu0 %v6334_v47 }
 0xdae   : > { %4185 = vmatprep.subr.bf16.mxu0 %v6342_v30 }
 0xdb0   : > { %3774 = vadd.xlane.f32.xlu0 %v8212_v5 }
 0xddb   : > { %v6081_v42 = vpop.f32.mrf.mxu0 }
 0xddc   : > { %v3749_v7 = vadd.f32 %v6680_v0, %v6081_v42  ;;  %v6340_v42 = vld [vmem:[%s7436_s10 + $0x48] ss:$16 sps:$4 sm:$0xff]   ;;  %v6351_v0 = vld [vmem:[%s7436_s10 + $0x4] ss:$16 sps:$4 sm:$0xff]  }
 0xddd   : > { %v3728_v25 = vpop.f32.mrf.mxu0  ;;  %4186 = vmatpush1.bf16.msra.mxu0 %v6340_v42 }
 0xdde   : > { %v3747_v28 = vadd.f32 %v6679_v32, %v3728_v25  ;;  %v8218_v9 = vadd.f32 %v5510_v52, %v3749_v7  ;;  %v6345_v25 = vld [vmem:[%s7436_s10 + $0x24] ss:$16 sps:$4 sm:$0xff]   ;;  %v6348_v32 = vld [vmem:[%s7436_s10 + $0x2c] ss:$16 sps:$4 sm:$0xff]  }
 0xddf   : > { %v6082_v62 = vpop.f32.mrf.mxu0  ;;  %4187 = vmatprep.subr.bf16.mxu0 %v6348_v32  ;;  %v6354_v7 = vld [vmem:[%s7436_s10 + $0xc] ss:$16 sps:$4 sm:$0xff]  }
 0xde0   : > { %v8215_v45 = vadd.f32 %v5510_v52, %v3747_v28  ;;  %v3750_v41 = vadd.f32 %v6682_v10, %v6082_v62  ;;  %v6343_v28 = vld [vmem:[%s7436_s10 + $0x20] ss:$16 sps:$4 sm:$0xff]   ;;  %v6346_v62 = vld [vmem:[%s7436_s10 + $0x28] ss:$16 sps:$4 sm:$0xff]  }
 0xde1   : > { %v3731_v33 = vpop.f32.mrf.mxu0  ;;  %4188 = vmatpush1.bf16.msra.mxu0 %v6346_v62 }
 0xde2   : > { %v3748_v55 = vadd.f32 %v6681_v58, %v3731_v33  ;;  %3776 = vadd.xlane.f32.xlu0 %v8215_v45  ;;  %v8224_v17 = vadd.f32 %v5510_v52, %v3750_v41  ;;  %v6349_v33 = vld [vmem:[%s7436_s10] ss:$16 sps:$4 sm:$0xff]   ;;  %v6352_v58 = vld [vmem:[%s7436_s10 + $0x8] ss:$16 sps:$4 sm:$0xff]   ;;  %4189 = vmatprep.subr.bf16.mxu0 %v6354_v7 }
 0xde4   : > { %v8220_v13 = vadd.f32 %v5510_v52, %v3748_v55  ;;  %v6325_v52 = vld [vmem:[%s7436_s10 + $0x80] ss:$16 sps:$4 sm:$0xff]   ;;  %s8739_s10 = scalar_lea.vmem [#allocation15], %s7420_s21 }
 0xde5   : > { %4109 = vmatpush1.bf16.msra.mxu1 %v6325_v52  ;;  %4190 = vmatpush1.bf16.msra.mxu0 %v6352_v58  ;;  %v5511_v8 = vld [vmem:[%s8739_s10] ss:$0 sm:$0xff] }
 0xde6   : > { %3780 = vadd.xlane.f32.xlu0 %v8218_v9  ;;  %3778 = vadd.xlane.f32.xlu1 %v8220_v13 }
 0xde7   : > { %4110 = vmatprep.subr.bf16.mxu1 %v6333_v46 }
 0xde9   : > { %4111 = vmatpush1.bf16.msra.mxu1 %v6331_v57 }
 0xdea   : > { %3782 = vadd.xlane.f32.xlu1 %v8224_v17  ;;  %4112 = vmatprep.subr.bf16.mxu1 %v6339_v38  ;;  %v5512_v38 = vld [vmem:[%s900_s28] ss:$0 sm:$0xff]  ;;  %s5613_s28 = sld [smem:[#allocation5 + $0x2]] (!%p5610_p0) }
 0xded   : > { %4113 = vmatpush1.bf16.msra.mxu1 %v6337_v6 }
 0xdee   : > { %4114 = vmatprep.subr.bf16.mxu1 %v6345_v25 }
 0xdf0   : > { %s5234_s14 = scalar_lea.vmem (!%p5610_p0), [#allocation2], %s5613_s28 }
 0xdf1   : > { %4115 = vmatpush1.bf16.msra.mxu1 %v6343_v28 }
 0xdf2   : > { %4116 = vmatprep.subr.bf16.mxu1 %v6351_v0 }
 0xdf5   : > { %4117 = vmatpush1.bf16.msra.mxu1 %v6349_v33 }
 0xe31   : > { %v3769_v53 = vpop.xlane.xlu0 %3768 }
 0xe32   : > { %v3784_v24 = vmul.f32 0.0078125, %v3769_v53 }
 0xe34   : > { %v8232_v63 = vsub.f32 %v8203_v29, %v3784_v24 }
 0xe35   : > { %v3773_v14 = vpop.xlane.xlu0 %3772  ;;  %v3771_v35 = vpop.xlane.xlu1 %3770 }
 0xe36   : > { %v3786_v11 = vmul.f32 0.0078125, %v3773_v14  ;;  %v3785_v40 = vmul.f32 0.0078125, %v3771_v35  ;;  %v3800_v4 = vmul.f32 %v8232_v63, %v8232_v63 }
 0xe38   : > { %v8237_v2 = vsub.f32 %v8206_v60, %v3786_v11  ;;  %v8240_v12 = vsub.f32 %v8208_v51, %v3785_v40  ;;  %3808 = vadd.xlane.f32.xlu0 %v3800_v4 }
 0xe39   : > { %v3775_v19 = vpop.xlane.xlu0 %3774 }
 0xe3a   : > { %v3787_v49 = vmul.f32 0.0078125, %v3775_v19  ;;  %v3802_v48 = vmul.f32 %v8237_v2, %v8237_v2  ;;  %v3801_v44 = vmul.f32 %v8240_v12, %v8240_v12 }
 0xe3c   : > { %v8247_v27 = vsub.f32 %v8212_v5, %v3787_v49  ;;  %3812 = vadd.xlane.f32.xlu0 %v3802_v48  ;;  %3810 = vadd.xlane.f32.xlu1 %v3801_v44 }
 0xe3e   : > { %v3803_v31 = vmul.f32 %v8247_v27, %v8247_v27 }
 0xe40   : > { %3814 = vadd.xlane.f32.xlu1 %v3803_v31 }
 0xe6b   : > { %v3777_v55 = vpop.xlane.xlu0 %3776 }
 0xe6c   : > { %v3788_v10 = vmul.f32 0.0078125, %v3777_v55 }
 0xe6e   : > { %v8280_v41 = vsub.f32 %v8215_v45, %v3788_v10 }
 0xe6f   : > { %v3781_v18 = vpop.xlane.xlu0 %3780  ;;  %v3779_v43 = vpop.xlane.xlu1 %3778 }
 0xe70   : > { %v3790_v22 = vmul.f32 0.0078125, %v3781_v18  ;;  %v3789_v23 = vmul.f32 0.0078125, %v3779_v43  ;;  %v3804_v53 = vmul.f32 %v8280_v41, %v8280_v41 }
 0xe72   : > { %v8285_v24 = vsub.f32 %v8218_v9, %v3790_v22  ;;  %v8288_v14 = vsub.f32 %v8220_v13, %v3789_v23  ;;  %3816 = vadd.xlane.f32.xlu0 %v3804_v53 }
 0xe73   : > { %v3783_v35 = vpop.xlane.xlu1 %3782 }
 0xe74   : > { %v3791_v11 = vmul.f32 0.0078125, %v3783_v35  ;;  %v3806_v40 = vmul.f32 %v8285_v24, %v8285_v24  ;;  %v3805_v4 = vmul.f32 %v8288_v14, %v8288_v14 }
 0xe76   : > { %v8295_v19 = vsub.f32 %v8224_v17, %v3791_v11  ;;  %3820 = vadd.xlane.f32.xlu0 %v3806_v40  ;;  %3818 = vadd.xlane.f32.xlu1 %v3805_v4 }
 0xe78   : > { %v3807_v49 = vmul.f32 %v8295_v19, %v8295_v19 }
 0xe7a   : > { %3822 = vadd.xlane.f32.xlu1 %v3807_v49 }
 0xec1   : > { %v3809_v48 = vpop.xlane.xlu0 %3808 }
 0xec2   : > { %v3824_v44 = vmul.f32 0.0078125, %v3809_v48 }
 0xec4   : > { %v3832_v31 = vadd.f32 1e-05, %v3824_v44 }
 0xec5   : > { %v3813_v56 = vpop.xlane.xlu0 %3812  ;;  %v3811_v36 = vpop.xlane.xlu1 %3810 }
 0xec6   : > { %6531 = vrsqrt.f32 %v3832_v31  ;;  %v3826_v50 = vmul.f32 0.0078125, %v3813_v56  ;;  %v3825_v59 = vmul.f32 0.0078125, %v3811_v36 }
 0xec8   : > { %v3833_v61 = vadd.f32 1e-05, %v3825_v59  ;;  %v3834_v15 = vadd.f32 1e-05, %v3826_v50 }
 0xec9   : > { %v3815_v39 = vpop.xlane.xlu1 %3814 }
 0xeca   : > { %v3827_v3 = vmul.f32 0.0078125, %v3815_v39  ;;  %6533 = vrsqrt.f32 %v3833_v61 }
 0xecb   : > { %6535 = vrsqrt.f32 %v3834_v15 }
 0xecc   : > { %v3835_v1 = vadd.f32 1e-05, %v3827_v3 }
 0xece   : > { %6537 = vrsqrt.f32 %v3835_v1 }
 0xed3   : > { %v6532_v37 = vpop.eup %6531 }
 0xed4   : > { %v3848_v52 = vmul.f32 %v6532_v37, %v8232_v63  ;;  %v6356_v37 = vld [vmem:[%s7438_s29 + $0xf8] sm:$0xff]  }
 0xed5   : > { %5794 = vmatprep.subr.bf16.mxu0 %v6356_v37 }
 0xed6   : > { %v3862_v47 = vmul.f32 %v5511_v8, %v3848_v52  ;;  %v6357_v52 = vld [vmem:[%s7438_s29 + $0x38] sm:$0xff]  }
 0xed7   : > { %v6534_v57 = vpop.eup %6533 }
 0xed8   : > { %v3849_v46 = vmul.f32 %v6534_v57, %v8240_v12  ;;  %v6536_v54 = vpop.eup %6535  ;;  %v3876_v25 = vadd.f32 %v5512_v38, %v3862_v47  ;;  %v8329_v57 = vld [vmem:[%s7438_s29 + $0xf0] sm:$0xff]  }
 0xed9   : > { %v3850_v63 = vmul.f32 %v6536_v54, %v8237_v2  ;;  %v8333_v47 = vld [vmem:[%s7438_s29 + $0xb0] sm:$0xff]   ;;  %v6363_v54 = vld [vmem:[%s7438_s29 + $0x68] sm:$0xff]  }
 0xeda   : > { %v3863_v6 = vmul.f32 %v5511_v8, %v3849_v46  ;;  %v6361_v46 = vld [vmem:[%s7438_s29 + $0x30] sm:$0xff]  }
 0xedb   : > { %v6538_v30 = vpop.eup %6537  ;;  %v3864_v12 = vmul.f32 %v5511_v8, %v3850_v63  ;;  %v8353_v63 = vld [vmem:[%s7438_s29 + $0xa0] sm:$0xff]  }
 0xedc   : > { %v3851_v42 = vmul.f32 %v6538_v30, %v8247_v27  ;;  %v3877_v32 = vadd.f32 %v5512_v38, %v3863_v6  ;;  %v6365_v30 = vld [vmem:[%s7438_s29 + $0x28] sm:$0xff]  }
 0xedd   : > { %v3878_v7 = vadd.f32 %v5512_v38, %v3864_v12  ;;  %v8343_v6 = vld [vmem:[%s7438_s29 + $0xa8] sm:$0xff]   ;;  %v6373_v12 = vld [vmem:[%s7438_s29 + $0x18] sm:$0xff]  }
 0xede   : > { %v3884_v28 = vpack.c.bf16 %v3877_v32, %v3876_v25  ;;  %v3865_v62 = vmul.f32 %v5511_v8, %v3851_v42  ;;  %v6367_v42 = vld [vmem:[%s7438_s29 + $0x60] sm:$0xff]  }
 0xedf   : > { %v8349_v25 = vld [vmem:[%s7438_s29 + $0xe0] sm:$0xff]  }
 0xee0   : > { %4135 = vmatmul.mubr.bf16.vlgmr.msra.gmra.mxu1 %v3884_v28  ;;  %4208 = vmatmul.mubr.bf16.vlgmr.msra.gmra.mxu0 %v3884_v28  ;;  %v3879_v0 = vadd.f32 %v5512_v38, %v3865_v62  ;;  %v6369_v32 = vld [vmem:[%s7438_s29 + $0x20] sm:$0xff]   ;;  %v6371_v28 = vld [vmem:[%s7438_s29 + $0x58] sm:$0xff]  }
 0xee1   : > { %4144 = vmatprep.mubr.bf16.mxu1 %v7088_v16  ;;  %4217 = vmatprep.mubr.bf16.mxu0 %v7088_v16  ;;  %v8359_v62 = vld [vmem:[%s7438_s29 + $0xd8] sm:$0xff]  }
 0xee2   : > { %v3885_v33 = vpack.c.bf16 %v3879_v0, %v3878_v7  ;;  %v8363_v0 = vld [vmem:[%s7438_s29 + $0x98] sm:$0xff]   ;;  %v6375_v7 = vld [vmem:[%s7438_s29 + $0x50] sm:$0xff]  }
 0xee8   : > { %4145 = vmatmul.mubr.bf16.gmra.mxu1 %v3885_v33  ;;  %4218 = vmatmul.mubr.bf16.gmra.mxu0 %v3885_v33  ;;  %v8369_v33 = vld [vmem:[%s7438_s29 + $0xd0] sm:$0xff]  }
 0xee9   : > { %4154 = vmatprep.mubr.bf16.mxu1 %v7088_v16  ;;  %4227 = vmatprep.mubr.bf16.mxu0 %v7088_v16 }
 0xefb   : > { %v3817_v27 = vpop.xlane.xlu0 %3816 }
 0xefc   : > { %v3828_v2 = vmul.f32 0.0078125, %v3817_v27  ;;  %v6377_v27 = vld [vmem:[%s7438_s29 + $0x10] sm:$0xff]  }
 0xefe   : > { %v3836_v58 = vadd.f32 1e-05, %v3828_v2  ;;  %v8373_v2 = vld [vmem:[%s7438_s29 + $0x90] sm:$0xff]  }
 0xeff   : > { %v3821_v55 = vpop.xlane.xlu0 %3820  ;;  %v3819_v10 = vpop.xlane.xlu1 %3818 }
 0xf00   : > { %6539 = vrsqrt.f32 %v3836_v58  ;;  %v3830_v18 = vmul.f32 0.0078125, %v3821_v55  ;;  %v3829_v43 = vmul.f32 0.0078125, %v3819_v10  ;;  %v6379_v58 = vld [vmem:[%s7438_s29 + $0x48] sm:$0xff]  }
 0xf01   : > { %v8379_v55 = vld [vmem:[%s7438_s29 + $0xc8] sm:$0xff]  }
 0xf02   : > { %v3837_v22 = vadd.f32 1e-05, %v3829_v43  ;;  %v3838_v23 = vadd.f32 1e-05, %v3830_v18  ;;  %v6381_v10 = vld [vmem:[%s7438_s29 + $0x8] sm:$0xff]   ;;  %v6383_v43 = vld [vmem:[%s7438_s29 + $0x40] sm:$0xff]  }
 0xf03   : > { %v3823_v53 = vpop.xlane.xlu1 %3822  ;;  %v8383_v18 = vld [vmem:[%s7438_s29 + $0x88] sm:$0xff]  }
 0xf04   : > { %v3831_v35 = vmul.f32 0.0078125, %v3823_v53  ;;  %6541 = vrsqrt.f32 %v3837_v22  ;;  %v8389_v22 = vld [vmem:[%s7438_s29 + $0xc0] sm:$0xff]  }
 0xf05   : > { %6543 = vrsqrt.f32 %v3838_v23  ;;  %v6385_v23 = vld [vmem:[%s7438_s29] sm:$0xff]  }
 0xf06   : > { %v3839_v11 = vadd.f32 1e-05, %v3831_v35  ;;  %v8393_v53 = vld [vmem:[%s7438_s29 + $0x80] sm:$0xff]   ;;  %v3920_v35 = vld [vmem:[%s7466_s0] sm:$0xf]  ;;  %s5236_s0 = scalar_lea.vmem (!%p5610_p0), [#allocation2], %s5615_s23 }
 0xf08   : > { %6545 = vrsqrt.f32 %v3839_v11  ;;  %v3936_v11 = vsub.s32 3, %v7555_v20 }
 0xf0d   : > { %v6540_v40 = vpop.eup %6539 }
 0xf0e   : > { %v3852_v4 = vmul.f32 %v6540_v40, %v8280_v41  ;;  %v8401_v40 = vrot.slane %v3920_v35, %v1106_v26 }
 0xf10   : > { %v3866_v44 = vmul.f32 %v5511_v8, %v3852_v4  ;;  %v8405_v4 = vrot.slane %v3920_v35, %v1114_v34 }
 0xf11   : > { %v6542_v49 = vpop.eup %6541 }
 0xf12   : > { %v3853_v48 = vmul.f32 %v6542_v49, %v8288_v14  ;;  %v6544_v31 = vpop.eup %6543  ;;  %v3880_v59 = vadd.f32 %v5512_v38, %v3866_v44  ;;  %v8409_v49 = vrot.slane %v3920_v35, %v1110_v21 }
 0xf13   : > { %v3854_v15 = vmul.f32 %v6544_v31, %v8285_v24  ;;  %v6355_v24 = vld [vmem:[%s7438_s29 + $0x78] sm:$0xff]  }
 0xf14   : > { %v3867_v36 = vmul.f32 %v5511_v8, %v3853_v48  ;;  %5754 = vmatprep.subr.bf16.mxu1 %v6355_v24  ;;  %v8411_v48 = vrot.slane %v3920_v35, %v3936_v11 }
 0xf15   : > { %v6546_v56 = vpop.eup %6545  ;;  %v3868_v41 = vmul.f32 %v5511_v8, %v3854_v15  ;;  %5755 = vmatpush3.bf16.msra.mxu1 %v6357_v52 }
 0xf16   : > { %v3855_v50 = vmul.f32 %v6546_v56, %v8295_v19  ;;  %v3881_v61 = vadd.f32 %v5512_v38, %v3867_v36 }
 0xf17   : > { %v3882_v19 = vadd.f32 %v5512_v38, %v3868_v41 }
 0xf18   : > { %v3886_v39 = vpack.c.bf16 %v3881_v61, %v3880_v59  ;;  %v3869_v3 = vmul.f32 %v5511_v8, %v3855_v50  ;;  %v8324_v8 = vld [vmem:[%s7438_s29 + $0xb8] sm:$0xff]  }
 0xf19   : > { %5795 = vmatpush3.bf16.msra.mxu0 %v8324_v8 }
 0xf1a   : > { %4155 = vmatmul.mubr.bf16.gmra.mxu1 %v3886_v39  ;;  %4228 = vmatmul.mubr.bf16.gmra.mxu0 %v3886_v39  ;;  %v3883_v14 = vadd.f32 %v5512_v38, %v3869_v3  ;;  %v8339_v38 = vld [vmem:[%s7438_s29 + $0xe8] sm:$0xff]  }
 0xf1b   : > { %4164 = vmatprep.mubr.bf16.mxu1 %v7088_v16  ;;  %4237 = vmatprep.mubr.bf16.mxu0 %v7088_v16  ;;  %v6359_v16 = vld [vmem:[%s7438_s29 + $0x70] sm:$0xff]  }
 0xf1c   : > { %v3887_v1 = vpack.c.bf16 %v3883_v14, %v3882_v19  ;;  %5756 = vmatprep.subr.bf16.mxu1 %v6359_v16  ;;  %5796 = vmatprep.subr.bf16.mxu0 %v8329_v57 }
 0xf1d   : > { %5757 = vmatpush3.bf16.msra.mxu1 %v6361_v46  ;;  %5797 = vmatpush3.bf16.msra.mxu0 %v8333_v47 }
 0xf1e   : > { %5758 = vmatprep.subr.bf16.mxu1 %v6363_v54  ;;  %5798 = vmatprep.subr.bf16.mxu0 %v8339_v38 }
 0xf21   : > { %5759 = vmatpush3.bf16.msra.mxu1 %v6365_v30  ;;  %5799 = vmatpush3.bf16.msra.mxu0 %v8343_v6 }
 0xf22   : > { %4165 = vmatmul.mubr.bf16.gmra.mxu1 %v3887_v1  ;;  %4238 = vmatmul.mubr.bf16.gmra.mxu0 %v3887_v1 }
 0xf23   : > { %5760 = vmatprep.subr.bf16.mxu1 %v6367_v42  ;;  %5800 = vmatprep.subr.bf16.mxu0 %v8349_v25 }
 0xf25   : > { %5761 = vmatpush3.bf16.msra.mxu1 %v6369_v32  ;;  %5801 = vmatpush3.bf16.msra.mxu0 %v8353_v63 }
 0xf26   : > { %5762 = vmatprep.subr.bf16.mxu1 %v6371_v28  ;;  %5802 = vmatprep.subr.bf16.mxu0 %v8359_v62 }
 0xf29   : > { %5763 = vmatpush3.bf16.msra.mxu1 %v6373_v12  ;;  %5803 = vmatpush3.bf16.msra.mxu0 %v8363_v0 }
 0xf2a   : > { %5764 = vmatprep.subr.bf16.mxu1 %v6375_v7  ;;  %5804 = vmatprep.subr.bf16.mxu0 %v8369_v33 }
 0xf2d   : > { %5765 = vmatpush3.bf16.msra.mxu1 %v6377_v27  ;;  %5805 = vmatpush3.bf16.msra.mxu0 %v8373_v2 }
 0xf2e   : > { %5766 = vmatprep.subr.bf16.mxu1 %v6379_v58  ;;  %5806 = vmatprep.subr.bf16.mxu0 %v8379_v55 }
 0xf31   : > { %5767 = vmatpush3.bf16.msra.mxu1 %v6381_v10  ;;  %5807 = vmatpush3.bf16.msra.mxu0 %v8383_v18 }
 0xf32   : > { %5768 = vmatprep.subr.bf16.mxu1 %v6383_v43  ;;  %5808 = vmatprep.subr.bf16.mxu0 %v8389_v22 }
 0xf35   : > { %5769 = vmatpush3.bf16.msra.mxu1 %v6385_v23  ;;  %5809 = vmatpush3.bf16.msra.mxu0 %v8393_v53 }
 0xf36   : > { %6103 = vmatprep.subr.bf16.mxu1 %v6356_v37 }
 0xfa0   : > { %v4136_v44 = vpop.f32.mrf.mxu1  ;;  %v4209_v31 = vpop.f32.mrf.mxu0 }
 0xfa1   : > { %v8414_v56 = vadd.f32 %v4136_v44, %v8401_v40  ;;  %v8417_v36 = vadd.f32 %v4209_v31, %v8405_v4 }
 0xfa2   : > { %v4138_v26 = vpop.f32.mrf.mxu1  ;;  %v4211_v50 = vpop.f32.mrf.mxu0 }
 0xfa3   : > { %v5545_v59 = vmul.f32 -1.702, %v8414_v56  ;;  %v5547_v34 = vmul.f32 -1.702, %v8417_v36  ;;  %v8422_v20 = vadd.f32 %v4138_v26, %v8409_v49  ;;  %v8425_v21 = vadd.f32 %v4211_v50, %v8411_v48 }
 0xfa4   : > { %v4140_v61 = vpop.f32.mrf.mxu1  ;;  %v4213_v15 = vpop.f32.mrf.mxu0 }
 0xfa5   : > { %v4312_v39 = vmul.f32 1.442695, %v5545_v59  ;;  %v4316_v3 = vmul.f32 1.442695, %v5547_v34  ;;  %v5546_v41 = vmul.f32 -1.702, %v8422_v20  ;;  %v8429_v14 = vadd.f32 %v4140_v61, %v8401_v40 }
 0xfa6   : > { %v5548_v19 = vmul.f32 -1.702, %v8425_v21  ;;  %v8433_v1 = vadd.f32 %v4213_v15, %v8405_v4  ;;  %v4142_v24 = vpop.f32.mrf.mxu1  ;;  %v4215_v37 = vpop.f32.mrf.mxu0 }
 0xfa7   : > { %6547 = vpow2.f32 %v4312_v39  ;;  %v4314_v52 = vmul.f32 1.442695, %v5546_v41  ;;  %v5549_v16 = vmul.f32 -1.702, %v8429_v14  ;;  %v8437_v46 = vadd.f32 %v4142_v24, %v8409_v49 }
 0xfa8   : > { %6549 = vpow2.f32 %v4316_v3  ;;  %v4318_v54 = vmul.f32 1.442695, %v5548_v19  ;;  %v5551_v30 = vmul.f32 -1.702, %v8433_v1  ;;  %v8441_v42 = vadd.f32 %v4215_v37, %v8411_v48  ;;  %v4146_v32 = vpop.f32.mrf.mxu1  ;;  %v4219_v28 = vpop.f32.mrf.mxu0 }
 0xfa9   : > { %6551 = vpow2.f32 %v4314_v52  ;;  %v4320_v12 = vmul.f32 1.442695, %v5549_v16  ;;  %v5550_v7 = vmul.f32 -1.702, %v8437_v46  ;;  %v8445_v27 = vadd.f32 %v4146_v32, %v8401_v40 }
 0xfaa   : > { %6553 = vpow2.f32 %v4318_v54  ;;  %v4324_v58 = vmul.f32 1.442695, %v5551_v30  ;;  %v5552_v10 = vmul.f32 -1.702, %v8441_v42  ;;  %v8449_v43 = vadd.f32 %v4219_v28, %v8405_v4  ;;  %v4148_v23 = vpop.f32.mrf.mxu1  ;;  %v4221_v35 = vpop.f32.mrf.mxu0 }
 0xfab   : > { %6555 = vpow2.f32 %v4320_v12  ;;  %v4322_v11 = vmul.f32 1.442695, %v5550_v7  ;;  %v5553_v44 = vmul.f32 -1.702, %v8445_v27  ;;  %v8453_v31 = vadd.f32 %v4148_v23, %v8409_v49 }
 0xfac   : > { %6557 = vpow2.f32 %v4324_v58  ;;  %v4326_v26 = vmul.f32 1.442695, %v5552_v10  ;;  %v5555_v50 = vmul.f32 -1.702, %v8449_v43  ;;  %v8457_v59 = vadd.f32 %v4221_v35, %v8411_v48  ;;  %v4150_v34 = vpop.f32.mrf.mxu1  ;;  %v4223_v61 = vpop.f32.mrf.mxu0 }
 0xfad   : > { %6559 = vpow2.f32 %v4322_v11  ;;  %v4328_v15 = vmul.f32 1.442695, %v5553_v44  ;;  %v5554_v39 = vmul.f32 -1.702, %v8453_v31  ;;  %v8461_v3 = vadd.f32 %v4150_v34, %v8401_v40 }
 0xfae   : > { %6561 = vpow2.f32 %v4326_v26  ;;  %v4332_v41 = vmul.f32 1.442695, %v5555_v50  ;;  %v5556_v19 = vmul.f32 -1.702, %v8457_v59  ;;  %v8465_v24 = vadd.f32 %v4223_v61, %v8405_v4  ;;  %v4152_v37 = vpop.f32.mrf.mxu1  ;;  %v4225_v52 = vpop.f32.mrf.mxu0 }
 0xfaf   : > { %6563 = vpow2.f32 %v4328_v15  ;;  %v4330_v16 = vmul.f32 1.442695, %v5554_v39  ;;  %v5557_v54 = vmul.f32 -1.702, %v8461_v3  ;;  %v8469_v30 = vadd.f32 %v4152_v37, %v8409_v49 }
 0xfb0   : > { %6565 = vpow2.f32 %v4332_v41  ;;  %v4334_v32 = vmul.f32 1.442695, %v5556_v19  ;;  %v5559_v28 = vmul.f32 -1.702, %v8465_v24  ;;  %v8473_v12 = vadd.f32 %v4225_v52, %v8411_v48 }
 0xfb1   : > { %6567 = vpow2.f32 %v4330_v16  ;;  %v4336_v7 = vmul.f32 1.442695, %v5557_v54  ;;  %v5558_v58 = vmul.f32 -1.702, %v8469_v30 }
 0xfb2   : > { %6569 = vpow2.f32 %v4334_v32  ;;  %v4340_v10 = vmul.f32 1.442695, %v5559_v28  ;;  %v5560_v23 = vmul.f32 -1.702, %v8473_v12 }
 0xfb3   : > { %6571 = vpow2.f32 %v4336_v7  ;;  %v4338_v35 = vmul.f32 1.442695, %v5558_v58 }
 0xfb4   : > { %v6548_v11 = vpop.eup %6547  ;;  %6573 = vpow2.f32 %v4340_v10  ;;  %v4342_v44 = vmul.f32 1.442695, %v5560_v23 }
 0xfb5   : > { %v6550_v26 = vpop.eup %6549  ;;  %v4376_v50 = vadd.f32 1.0, %v6548_v11  ;;  %6575 = vpow2.f32 %v4338_v35 }
 0xfb6   : > { %v6552_v34 = vpop.eup %6551  ;;  %v4378_v61 = vadd.f32 1.0, %v6550_v26  ;;  %6577 = vpow2.f32 %v4342_v44 }
 0xfb7   : > { %v6554_v15 = vpop.eup %6553  ;;  %6579 = vrcp.f32 %v4376_v50  ;;  %v4377_v39 = vadd.f32 1.0, %v6552_v34 }
 0xfb8   : > { %v6556_v41 = vpop.eup %6555  ;;  %6581 = vrcp.f32 %v4378_v61  ;;  %v4379_v19 = vadd.f32 1.0, %v6554_v15 }
 0xfb9   : > { %v6558_v37 = vpop.eup %6557  ;;  %6583 = vrcp.f32 %v4377_v39  ;;  %v4380_v52 = vadd.f32 1.0, %v6556_v41 }
 0xfba   : > { %v6560_v16 = vpop.eup %6559  ;;  %6585 = vrcp.f32 %v4379_v19  ;;  %v4382_v54 = vadd.f32 1.0, %v6558_v37 }
 0xfbb   : > { %v6562_v32 = vpop.eup %6561  ;;  %6587 = vrcp.f32 %v4380_v52  ;;  %v4381_v28 = vadd.f32 1.0, %v6560_v16 }
 0xfbc   : > { %v6564_v7 = vpop.eup %6563  ;;  %6589 = vrcp.f32 %v4382_v54  ;;  %v4383_v58 = vadd.f32 1.0, %v6562_v32 }
 0xfbd   : > { %v6566_v10 = vpop.eup %6565  ;;  %6591 = vrcp.f32 %v4381_v28  ;;  %v4384_v23 = vadd.f32 1.0, %v6564_v7 }
 0xfbe   : > { %v6568_v35 = vpop.eup %6567  ;;  %6593 = vrcp.f32 %v4383_v58  ;;  %v4386_v11 = vadd.f32 1.0, %v6566_v10 }
 0xfbf   : > { %v6570_v44 = vpop.eup %6569  ;;  %6595 = vrcp.f32 %v4384_v23  ;;  %v4385_v26 = vadd.f32 1.0, %v6568_v35 }
 0xfc0   : > { %v6572_v50 = vpop.eup %6571  ;;  %6597 = vrcp.f32 %v4386_v11  ;;  %v4387_v34 = vadd.f32 1.0, %v6570_v44 }
 0xfc1   : > { %v6574_v61 = vpop.eup %6573  ;;  %6599 = vrcp.f32 %v4385_v26  ;;  %v4388_v15 = vadd.f32 1.0, %v6572_v50 }
 0xfc2   : > { %v6576_v39 = vpop.eup %6575  ;;  %6601 = vrcp.f32 %v4387_v34  ;;  %v4390_v41 = vadd.f32 1.0, %v6574_v61 }
 0xfc3   : > { %v6578_v19 = vpop.eup %6577  ;;  %6603 = vrcp.f32 %v4388_v15  ;;  %v4389_v37 = vadd.f32 1.0, %v6576_v39 }
 0xfc4   : > { %v6580_v52 = vpop.eup %6579  ;;  %6605 = vrcp.f32 %v4390_v41  ;;  %v4391_v16 = vadd.f32 1.0, %v6578_v19 }
 0xfc5   : > { %v6582_v54 = vpop.eup %6581  ;;  %6607 = vrcp.f32 %v4389_v37  ;;  %v4472_v34 = vmul.f32 %v6580_v52, %v8414_v56 }
 0xfc6   : > { %v6584_v32 = vpop.eup %6583  ;;  %6609 = vrcp.f32 %v4391_v16  ;;  %v4474_v41 = vmul.f32 %v6582_v54, %v8417_v36 }
 0xfc7   : > { %v6586_v28 = vpop.eup %6585  ;;  %v4473_v11 = vmul.f32 %v6584_v32, %v8422_v20 }
 0xfc8   : > { %v6588_v7 = vpop.eup %6587  ;;  %v4475_v61 = vmul.f32 %v6586_v28, %v8425_v21 }
 0xfc9   : > { %v6590_v58 = vpop.eup %6589  ;;  %v4476_v23 = vmul.f32 %v6588_v7, %v8429_v14 }
 0xfca   : > { %v6592_v10 = vpop.eup %6591  ;;  %v4478_v44 = vmul.f32 %v6590_v58, %v8433_v1 }
 0xfcb   : > { %v6594_v35 = vpop.eup %6593  ;;  %v4477_v26 = vmul.f32 %v6592_v10, %v8437_v46  ;;  %v4504_v14 = vpack.c.bf16 %v4476_v23, %v4472_v34 }
 0xfcc   : > { %v6596_v50 = vpop.eup %6595  ;;  %v4479_v15 = vmul.f32 %v6594_v35, %v8441_v42  ;;  %v4506_v20 = vpack.c.bf16 %v4478_v44, %v4474_v41 }
 0xfcd   : > { %v6598_v39 = vpop.eup %6597  ;;  %v4505_v19 = vpack.c.bf16 %v4477_v26, %v4473_v11  ;;  %v4480_v32 = vmul.f32 %v6596_v50, %v8445_v27 }
 0xfce   : > { %v6600_v37 = vpop.eup %6599  ;;  %v4507_v16 = vpack.c.bf16 %v4479_v15, %v4475_v61 }
 0xfcf   : > { %v6602_v7 = vpop.eup %6601  ;;  %4808 = vmatprep.mubr.bf16.mxu1 %v4505_v19  ;;  %v4481_v42 = vmul.f32 %v6600_v37, %v8453_v31 }
 0xfd0   : > { %v6604_v1 = vpop.eup %6603  ;;  %4873 = vmatprep.mubr.bf16.mxu0 %v4507_v16  ;;  %4809 = vmatmul.mubr.bf16.vlgmr.msra.gmra.mxu1 %v4504_v14  ;;  %v4483_v28 = vmul.f32 %v6602_v7, %v8457_v59 }
 0xfd1   : > { %v6606_v46 = vpop.eup %6605  ;;  %4874 = vmatmul.mubr.bf16.vlgmr.msra.gmra.mxu0 %v4506_v20  ;;  %6111 = vmatpush3.bf16.msra.mxu1 %v8324_v8  ;;  %v4484_v21 = vmul.f32 %v6604_v1, %v8461_v3  ;;  %v4482_v8 = vmul.f32 %v6598_v39, %v8449_v43 }
 0xfd2   : > { %v6608_v56 = vpop.eup %6607  ;;  %6104 = vmatprep.subr.bf16.mxu1 %v8329_v57  ;;  %v4486_v52 = vmul.f32 %v6606_v46, %v8465_v24 }
 0xfd3   : > { %v6610_v36 = vpop.eup %6609  ;;  %v4485_v54 = vmul.f32 %v6608_v56, %v8469_v30  ;;  %v4508_v57 = vpack.c.bf16 %v4484_v21, %v4480_v32 }
 0xfd4   : > { %v4487_v58 = vmul.f32 %v6610_v36, %v8473_v12  ;;  %v4510_v31 = vpack.c.bf16 %v4486_v52, %v4482_v8 }
 0xfd5   : > { %v4509_v10 = vpack.c.bf16 %v4485_v54, %v4481_v42  ;;  %6112 = vmatpush3.bf16.msra.mxu1 %v8333_v47 }
 0xfd6   : > { %v4511_v3 = vpack.c.bf16 %v4487_v58, %v4483_v28  ;;  %6105 = vmatprep.subr.bf16.mxu1 %v8339_v38 }
 0xfd7   : > { %4816 = vmatprep.mubr.bf16.mxu1 %v4509_v10 }
 0xfd8   : > { %4881 = vmatprep.mubr.bf16.mxu0 %v4511_v3  ;;  %4817 = vmatmul.mubr.bf16.gmra.mxu1 %v4508_v57 }
 0xfd9   : > { %4882 = vmatmul.mubr.bf16.gmra.mxu0 %v4510_v31  ;;  %6113 = vmatpush3.bf16.msra.mxu1 %v8343_v6 }
 0xfda   : > { %6106 = vmatprep.subr.bf16.mxu1 %v8349_v25  ;;  %v4156_v27 = vpop.f32.mrf.mxu1  ;;  %v4229_v59 = vpop.f32.mrf.mxu0 }
 0xfdb   : > { %v8500_v43 = vadd.f32 %v4156_v27, %v8401_v40  ;;  %v8540_v56 = vadd.f32 %v4229_v59, %v8405_v4 }
 0xfdc   : > { %v4158_v24 = vpop.f32.mrf.mxu1  ;;  %v4231_v47 = vpop.f32.mrf.mxu0 }
 0xfdd   : > { %6114 = vmatpush3.bf16.msra.mxu1 %v8353_v63  ;;  %v5561_v38 = vmul.f32 -1.702, %v8500_v43  ;;  %v8505_v30 = vadd.f32 %v4158_v24, %v8409_v49  ;;  %v8508_v12 = vadd.f32 %v4231_v47, %v8411_v48  ;;  %v5563_v57 = vmul.f32 -1.702, %v8540_v56 }
 0xfde   : > { %6107 = vmatprep.subr.bf16.mxu1 %v8359_v62  ;;  %v4160_v6 = vpop.f32.mrf.mxu1  ;;  %v4233_v25 = vpop.f32.mrf.mxu0 }
 0xfdf   : > { %v4344_v23 = vmul.f32 1.442695, %v5561_v38  ;;  %v5562_v35 = vmul.f32 -1.702, %v8505_v30  ;;  %v8513_v11 = vadd.f32 %v4160_v6, %v8401_v40  ;;  %v5564_v63 = vmul.f32 -1.702, %v8508_v12 }
 0xfe0   : > { %v4162_v44 = vpop.f32.mrf.mxu1  ;;  %v4235_v26 = vpop.f32.mrf.mxu0  ;;  %v8530_v14 = vadd.f32 %v4233_v25, %v8405_v4  ;;  %v4348_v47 = vmul.f32 1.442695, %v5563_v57 }
 0xfe1   : > { %6115 = vmatpush3.bf16.msra.mxu1 %v8363_v0  ;;  %v4346_v50 = vmul.f32 1.442695, %v5562_v35  ;;  %v5565_v34 = vmul.f32 -1.702, %v8513_v11  ;;  %v8519_v61 = vadd.f32 %v4162_v44, %v8409_v49  ;;  %6611 = vpow2.f32 %v4344_v23 }
 0xfe2   : > { %6108 = vmatprep.subr.bf16.mxu1 %v8369_v33  ;;  %v4350_v62 = vmul.f32 1.442695, %v5564_v63  ;;  %v8523_v15 = vadd.f32 %v4235_v26, %v8411_v48  ;;  %v4166_v39 = vpop.f32.mrf.mxu1  ;;  %v4239_v41 = vpop.f32.mrf.mxu0  ;;  %v5567_v28 = vmul.f32 -1.702, %v8530_v14 }
 0xfe3   : > { %6613 = vpow2.f32 %v4346_v50  ;;  %v4352_v19 = vmul.f32 1.442695, %v5565_v34  ;;  %v5566_v37 = vmul.f32 -1.702, %v8519_v61  ;;  %v8527_v0 = vadd.f32 %v4166_v39, %v8401_v40 }
 0xfe4   : > { %v5568_v16 = vmul.f32 -1.702, %v8523_v15  ;;  %v4168_v33 = vpop.f32.mrf.mxu1  ;;  %v4241_v7 = vpop.f32.mrf.mxu0  ;;  %v4356_v59 = vmul.f32 1.442695, %v5567_v28 }
 0xfe5   : > { %6116 = vmatpush3.bf16.msra.mxu1 %v8373_v2  ;;  %6615 = vpow2.f32 %v4352_v19  ;;  %v4354_v20 = vmul.f32 1.442695, %v5566_v37  ;;  %v5569_v1 = vmul.f32 -1.702, %v8527_v0  ;;  %v8536_v46 = vadd.f32 %v4168_v33, %v8409_v49 }
 0xfe6   : > { %6109 = vmatprep.subr.bf16.mxu1 %v8379_v55  ;;  %6617 = vpow2.f32 %v4350_v62  ;;  %v4358_v21 = vmul.f32 1.442695, %v5568_v16  ;;  %v8543_v36 = vadd.f32 %v4241_v7, %v8411_v48  ;;  %v4170_v42 = vpop.f32.mrf.mxu1  ;;  %v4243_v52 = vpop.f32.mrf.mxu0 }
 0xfe7   : > { %6619 = vpow2.f32 %v4354_v20  ;;  %v4360_v2 = vmul.f32 1.442695, %v5569_v1  ;;  %v5570_v54 = vmul.f32 -1.702, %v8536_v46  ;;  %v8547_v32 = vadd.f32 %v4170_v42, %v8401_v40 }
 0xfe8   : > { %6621 = vpow2.f32 %v4358_v21  ;;  %v4172_v55 = vpop.f32.mrf.mxu1  ;;  %v4245_v58 = vpop.f32.mrf.mxu0  ;;  %v5572_v31 = vmul.f32 -1.702, %v8543_v36  ;;  %v8563_v24 = vadd.f32 %v4243_v52, %v8405_v4 }
 0xfe9   : > { %6117 = vmatpush3.bf16.msra.mxu1 %v8383_v18  ;;  %v4362_v8 = vmul.f32 1.442695, %v5570_v54  ;;  %v5573_v10 = vmul.f32 -1.702, %v8547_v32  ;;  %v8553_v3 = vadd.f32 %v4172_v55, %v8409_v49  ;;  %6623 = vpow2.f32 %v4360_v2 }
 0xfea   : > { %6110 = vmatprep.subr.bf16.mxu1 %v8389_v22  ;;  %v8558_v40 = vadd.f32 %v4245_v58, %v8411_v48  ;;  %v8568_v22 = vadd.f32 %v4239_v41, %v8405_v4  ;;  %v4366_v25 = vmul.f32 1.442695, %v5572_v31  ;;  %v5575_v35 = vmul.f32 -1.702, %v8563_v24 }
 0xfeb   : > { %6625 = vpow2.f32 %v4362_v8  ;;  %v4368_v27 = vmul.f32 1.442695, %v5573_v10  ;;  %v5574_v18 = vmul.f32 -1.702, %v8553_v3 }
 0xfec   : > { %v5576_v49 = vmul.f32 -1.702, %v8558_v40  ;;  %v5571_v44 = vmul.f32 -1.702, %v8568_v22  ;;  %v4372_v62 = vmul.f32 1.442695, %v5575_v35 }
 0xfed   : > { %6118 = vmatpush3.bf16.msra.mxu1 %v8393_v53  ;;  %6627 = vpow2.f32 %v4368_v27  ;;  %v4370_v48 = vmul.f32 1.442695, %v5574_v18 }
 0xfee   : > { %v4374_v38 = vmul.f32 1.442695, %v5576_v49  ;;  %v6612_v6 = vpop.eup %6611  ;;  %v4364_v19 = vmul.f32 1.442695, %v5571_v44 }
 0xfef   : > { %6629 = vpow2.f32 %v4370_v48  ;;  %v4392_v53 = vadd.f32 1.0, %v6612_v6 }
 0xff0   : > { %v6614_v23 = vpop.eup %6613  ;;  %6631 = vpow2.f32 %v4356_v59 }
 0xff1   : > { %v4393_v63 = vadd.f32 1.0, %v6614_v23  ;;  %6633 = vpow2.f32 %v4374_v38 }
 0xff2   : > { %v6616_v26 = vpop.eup %6615  ;;  %6635 = vpow2.f32 %v4348_v47 }
 0xff3   : > { %v6618_v4 = vpop.eup %6617  ;;  %v4396_v50 = vadd.f32 1.0, %v6616_v26  ;;  %6637 = vpow2.f32 %v4366_v25 }
 0xff4   : > { %v6620_v34 = vpop.eup %6619  ;;  %6639 = vrcp.f32 %v4393_v63  ;;  %v4395_v37 = vadd.f32 1.0, %v6618_v4 }
 0xff5   : > { %v6622_v39 = vpop.eup %6621  ;;  %6641 = vrcp.f32 %v4396_v50  ;;  %v4397_v41 = vadd.f32 1.0, %v6620_v34 }
 0xff6   : > { %6643 = vrcp.f32 %v4392_v53  ;;  %v6624_v16 = vpop.eup %6623  ;;  %v4399_v33 = vadd.f32 1.0, %v6622_v39 }
 0xff7   : > { %6645 = vrcp.f32 %v4397_v41  ;;  %v4400_v21 = vadd.f32 1.0, %v6624_v16 }
 0xff8   : > { %v6626_v7 = vpop.eup %6625  ;;  %6647 = vpow2.f32 %v4372_v62 }
 0xff9   : > { %6649 = vpow2.f32 %v4364_v19  ;;  %v4401_v20 = vadd.f32 1.0, %v6626_v7 }
 0xffa   : > { %v6628_v1 = vpop.eup %6627  ;;  %6651 = vrcp.f32 %v4395_v37 }
 0xffb   : > { %6653 = vrcp.f32 %v4399_v33  ;;  %v4404_v42 = vadd.f32 1.0, %v6628_v1 }
 0xffc   : > { %v6630_v52 = vpop.eup %6629  ;;  %6655 = vrcp.f32 %v4401_v20 }
 0xffd   : > { %v6632_v2 = vpop.eup %6631  ;;  %6657 = vrcp.f32 %v4404_v42  ;;  %v4405_v54 = vadd.f32 1.0, %v6630_v52 }
 0xffe   : > { %v6634_v28 = vpop.eup %6633  ;;  %6659 = vrcp.f32 %v4400_v21  ;;  %v4398_v8 = vadd.f32 1.0, %v6632_v2 }
 0xfff   : > { %v6636_v55 = vpop.eup %6635  ;;  %6661 = vrcp.f32 %v4405_v54  ;;  %v4407_v57 = vadd.f32 1.0, %v6634_v28 }
0x1000   : > { %v6638_v58 = vpop.eup %6637  ;;  %v4394_v27 = vadd.f32 1.0, %v6636_v55  ;;  %6663 = vrcp.f32 %v4398_v8 }
0x1001   : > { %v6640_v10 = vpop.eup %6639  ;;  %v4403_v59 = vadd.f32 1.0, %v6638_v58  ;;  %6665 = vrcp.f32 %v4407_v57 }
0x1002   : > { %v6642_v31 = vpop.eup %6641  ;;  %v4489_v38 = vmul.f32 %v6640_v10, %v8505_v30  ;;  %6667 = vrcp.f32 %v4394_v27  ;;  %v8593_v27 = vld [vmem:[%s907_s4] ss:$0 sm:$0xff] }
0x1003   : > { %v6644_v18 = vpop.eup %6643  ;;  %v4492_v48 = vmul.f32 %v6642_v31, %v8513_v11  ;;  %6669 = vrcp.f32 %v4403_v59 }
0x1004   : > { %v6646_v49 = vpop.eup %6645  ;;  %v4488_v23 = vmul.f32 %v6644_v18, %v8500_v43 }
0x1005   : > { %v6648_v47 = vpop.eup %6647  ;;  %v4493_v6 = vmul.f32 %v6646_v49, %v8519_v61 }
0x1006   : > { %v6650_v25 = vpop.eup %6649  ;;  %v4406_v26 = vadd.f32 1.0, %v6648_v47  ;;  %v4512_v53 = vpack.c.bf16 %v4492_v48, %v4488_v23 }
0x1007   : > { %v6652_v35 = vpop.eup %6651  ;;  %v4513_v63 = vpack.c.bf16 %v4493_v6, %v4489_v38  ;;  %v4402_v50 = vadd.f32 1.0, %v6650_v25 }
0x1008   : > { %v6654_v44 = vpop.eup %6653  ;;  %6671 = vrcp.f32 %v4406_v26  ;;  %v4491_v19 = vmul.f32 %v6652_v35, %v8508_v12 }
0x1009   : > { %v6656_v4 = vpop.eup %6655  ;;  %4824 = vmatprep.mubr.bf16.mxu1 %v4513_v63  ;;  %v4495_v62 = vmul.f32 %v6654_v44, %v8523_v15  ;;  %6673 = vrcp.f32 %v4402_v50 }
0x100a   : > { %v6658_v11 = vpop.eup %6657  ;;  %4825 = vmatmul.mubr.bf16.gmra.mxu1 %v4512_v53  ;;  %v4497_v43 = vmul.f32 %v6656_v4, %v8536_v46 }
0x100b   : > { %v6660_v34 = vpop.eup %6659  ;;  %v4500_v61 = vmul.f32 %v6658_v11, %v8547_v32  ;;  %v4515_v7 = vpack.c.bf16 %v4495_v62, %v4491_v19 }
0x100c   : > { %v6662_v30 = vpop.eup %6661  ;;  %v4496_v41 = vmul.f32 %v6660_v34, %v8527_v0 }
0x100d   : > { %v4501_v39 = vmul.f32 %v6662_v30, %v8553_v3  ;;  %v6664_v33 = vpop.eup %6663 }
0x100e   : > { %v4516_v16 = vpack.c.bf16 %v4500_v61, %v4496_v41  ;;  %v6666_v20 = vpop.eup %6665  ;;  %v4494_v15 = vmul.f32 %v6664_v33, %v8530_v14 }
0x100f   : > { %v4517_v37 = vpack.c.bf16 %v4501_v39, %v4497_v43  ;;  %v6668_v32 = vpop.eup %6667  ;;  %v4503_v46 = vmul.f32 %v6666_v20, %v8558_v40 }
0x1010   : > { %v6670_v1 = vpop.eup %6669  ;;  %v4490_v3 = vmul.f32 %v6668_v32, %v8540_v56 }
0x1011   : > { %4832 = vmatprep.mubr.bf16.mxu1 %v4517_v37  ;;  %v4499_v0 = vmul.f32 %v6670_v1, %v8543_v36 }
0x1012   : > { %4833 = vmatmul.mubr.bf16.gmra.mxu1 %v4516_v16  ;;  %v4514_v21 = vpack.c.bf16 %v4494_v15, %v4490_v3 }
0x1013   : > { %4889 = vmatprep.mubr.bf16.mxu1 %v4515_v7  ;;  %v4519_v42 = vpack.c.bf16 %v4503_v46, %v4499_v0 }
0x1015   : > { %v6672_v12 = vpop.eup %6671 }
0x1016   : > { %v6674_v52 = vpop.eup %6673  ;;  %v4502_v2 = vmul.f32 %v6672_v12, %v8563_v24 }
0x1017   : > { %v4498_v54 = vmul.f32 %v6674_v52, %v8568_v22 }
0x1019   : > { %v4518_v28 = vpack.c.bf16 %v4502_v2, %v4498_v54 }
0x101a   : > { %4890 = vmatmul.mubr.bf16.vlgmr.msra.gmra.mxu1 %v4514_v21 }
0x101b   : > { %4897 = vmatprep.mubr.bf16.mxu1 %v4519_v42 }
0x1022   : > { %4898 = vmatmul.mubr.bf16.gmra.mxu1 %v4518_v28 }
0x1090   : > { %v5770_v14 = vpop.f32.mrf.mxu1 }
0x1091   : > { %v5810_v55 = vpop.f32.mrf.mxu0 }
0x1092   : > { %v5771_v40 = vpop.f32.mrf.mxu1 }
0x1093   : > { %v5772_v58 = vadd.f32 %v5771_v40, %v5770_v14  ;;  %v5811_v56 = vpop.f32.mrf.mxu0 }
0x1094   : > { %v5812_v8 = vadd.f32 %v5811_v56, %v5810_v55  ;;  %v5773_v36 = vpop.f32.mrf.mxu1 }
0x1095   : > { %v5813_v10 = vpop.f32.mrf.mxu0 }
0x1096   : > { %v4876_v57 = vadd.f32 %v5812_v8, %v5772_v58  ;;  %v5774_v31 = vpop.f32.mrf.mxu1 }
0x1097   : > { %v5775_v24 = vadd.f32 %v5774_v31, %v5773_v36  ;;  %v5814_v22 = vpop.f32.mrf.mxu0 }
0x1098   : > { %v4906_v18 = vadd.f32 %v4876_v57, %v8203_v29  ;;  %v5815_v59 = vadd.f32 %v5814_v22, %v5813_v10  ;;  %v5776_v49 = vpop.f32.mrf.mxu1 }
0x1099   : > { %v5816_v48 = vpop.f32.mrf.mxu0 }
0x109a   : > { %v4921_v47 = vadd.f32 %v8593_v27, %v4906_v18  ;;  %v4879_v38 = vadd.f32 %v5815_v59, %v5775_v24  ;;  %v5777_v6 = vpop.f32.mrf.mxu1 }
0x109b   : > { %v5778_v25 = vadd.f32 %v5777_v6, %v5776_v49  ;;  %v5817_v23 = vpop.f32.mrf.mxu0 }
0x109c   : > { %4929 = vst [vmem:[#allocation2] sm:$0xff] %v4921_v47  ;;  %v4907_v35 = vadd.f32 %v4879_v38, %v8208_v51  ;;  %v5818_v63 = vadd.f32 %v5817_v23, %v5816_v48  ;;  %v5779_v44 = vpop.f32.mrf.mxu1 }
0x109d   : > { %v5819_v26 = vpop.f32.mrf.mxu0 }
0x109e   : > { %v4922_v53 = vadd.f32 %v8593_v27, %v4907_v35  ;;  %v4884_v4 = vadd.f32 %v5818_v63, %v5778_v25  ;;  %v5780_v11 = vpop.f32.mrf.mxu1 }
0x109f   : > { %v5781_v29 = vadd.f32 %v5780_v11, %v5779_v44  ;;  %v5820_v50 = vpop.f32.mrf.mxu0 }
0x10a0   : > { %4930 = vst [vmem:[#allocation2 + $0x8] sm:$0xff] %v4922_v53  ;;  %v4908_v34 = vadd.f32 %v4884_v4, %v8206_v60  ;;  %v5821_v30 = vadd.f32 %v5820_v50, %v5819_v26 }
0x10a2   : > { %v4923_v61 = vadd.f32 %v8593_v27, %v4908_v34  ;;  %v4887_v62 = vadd.f32 %v5821_v30, %v5781_v29 }
0x10a4   : > { %4931 = vst [vmem:[#allocation2 + $0x10] sm:$0xff] %v4923_v61  ;;  %v4909_v43 = vadd.f32 %v4887_v62, %v8212_v5 }
0x10a6   : > { %v4924_v51 = vadd.f32 %v8593_v27, %v4909_v43 }
0x10a8   : > { %4932 = vst [vmem:[#allocation2 + $0x18] sm:$0xff] %v4924_v51 }
0x10ca   : > { %v5782_v39 = vpop.f32.mrf.mxu1 }
0x10cc   : > { %v5783_v41 = vpop.f32.mrf.mxu1 }
0x10cd   : > { %v5784_v1 = vadd.f32 %v5783_v41, %v5782_v39 }
0x10ce   : > { %v5785_v19 = vpop.f32.mrf.mxu1 }
0x10d0   : > { %v5786_v37 = vpop.f32.mrf.mxu1 }
0x10d1   : > { %v5787_v21 = vadd.f32 %v5786_v37, %v5785_v19 }
0x10d2   : > { %v5788_v16 = vpop.f32.mrf.mxu1 }
0x10d4   : > { %v5789_v33 = vpop.f32.mrf.mxu1 }
0x10d5   : > { %v5790_v28 = vadd.f32 %v5789_v33, %v5788_v16 }
0x10d6   : > { %v5791_v7 = vpop.f32.mrf.mxu1 }
0x10d8   : > { %v5792_v20 = vpop.f32.mrf.mxu1 }
0x10d9   : > { %v5793_v36 = vadd.f32 %v5792_v20, %v5791_v7 }
0x10da   : > { %v5822_v32 = vpop.f32.mrf.mxu1 }
0x10dc   : > { %v5823_v60 = vpop.f32.mrf.mxu1 }
0x10dd   : > { %v5824_v15 = vadd.f32 %v5823_v60, %v5822_v32 }
0x10de   : > { %v5825_v46 = vpop.f32.mrf.mxu1 }
0x10df   : > { %v4892_v3 = vadd.f32 %v5824_v15, %v5784_v1 }
0x10e0   : > { %v5826_v0 = vpop.f32.mrf.mxu1 }
0x10e1   : > { %v4910_v5 = vadd.f32 %v4892_v3, %v8215_v45  ;;  %v5827_v12 = vadd.f32 %v5826_v0, %v5825_v46 }
0x10e2   : > { %v5828_v42 = vpop.f32.mrf.mxu1 }
0x10e3   : > { %v4925_v52 = vadd.f32 %v8593_v27, %v4910_v5  ;;  %v4895_v2 = vadd.f32 %v5827_v12, %v5787_v21 }
0x10e4   : > { %v5829_v54 = vpop.f32.mrf.mxu1 }
0x10e5   : > { %4933 = vst [vmem:[#allocation2 + $0x20] sm:$0xff] %v4925_v52  ;;  %v4911_v14 = vadd.f32 %v4895_v2, %v8220_v13  ;;  %v5830_v55 = vadd.f32 %v5829_v54, %v5828_v42 }
0x10e6   : > { %v5831_v40 = vpop.f32.mrf.mxu1 }
0x10e7   : > { %v4926_v58 = vadd.f32 %v8593_v27, %v4911_v14  ;;  %v4900_v56 = vadd.f32 %v5830_v55, %v5790_v28 }
0x10e8   : > { %v5832_v8 = vpop.f32.mrf.mxu1 }
0x10e9   : > { %4934 = vst [vmem:[#allocation2 + $0x28] sm:$0xff] %v4926_v58  ;;  %v4912_v45 = vadd.f32 %v4900_v56, %v8218_v9  ;;  %v5833_v10 = vadd.f32 %v5832_v8, %v5831_v40 }
0x10eb   : > { %v4927_v57 = vadd.f32 %v8593_v27, %v4912_v45  ;;  %v4903_v31 = vadd.f32 %v5833_v10, %v5793_v36 }
0x10ed   : > { %4935 = vst [vmem:[#allocation2 + $0x30] sm:$0xff] %v4927_v57  ;;  %v4913_v24 = vadd.f32 %v4903_v31, %v8224_v17  ;;  %4940 = sbr.rel (%p5610_p0) target bundleno = 4859 (0x12fb), region = 136 }
0x10ef   : > { %v4928_v22 = vadd.f32 %v8593_v27, %v4913_v24 }
0x10f1   : > { %4936 = vst [vmem:[#allocation2 + $0x38] sm:$0xff] %v4928_v22 }
0x10f2   : > { %vm4969_vm9 = vcmask 1040384   ;;  %vm4971_vm10 = vcmask 1041408   ;;  %vm4973_vm11 = vcmask 1042432   ;;  %vm4977_vm12 = vcmask 1043456   ;;  %v6683_v25 = vld [vmem:[#allocation18 + $0x38] sm:$0xff]   ;;  %v6684_v35 = vld [vmem:[#allocation18 + $0x30] sm:$0xff]  }
0x10f3   : > { %v7094_v23 = vmov 0.0   ;;  %v6685_v11 = vld [vmem:[#allocation18 + $0x28] sm:$0xff]   ;;  %v6686_v29 = vld [vmem:[#allocation18 + $0x20] sm:$0xff]   ;;  %vm7095_vm13 = vmmov 0   ;;  %v6687_v50 = vld [vmem:[#allocation18 + $0x18] sm:$0xff]  }
0x10f4   : > { %6083 = vmatprep.subr.bf16.mxu0 %v7094_v23  ;;  %6099 = vmatprep.mubr.msk.bf16.mxu0 %vm7095_vm13, %v7094_v23  ;;  %v6688_v34 = vld [vmem:[#allocation18 + $0x10] sm:$0xff]   ;;  %v6689_v30 = vld [vmem:[#allocation18 + $0x8] sm:$0xff]   ;;  %v6690_v61 = vld [vmem:[#allocation18] sm:$0xff]  }
0x10f5   : > { %6084 = vmatpush3.bf16.msra.mxu0 %v6683_v25  ;;  %v5617_v41 = vld [vmem:[%s8743_s7] ss:$0 sm:$0xff] }
0x10f6   : > { %6085 = vmatprep.subr.bf16.mxu0 %v7094_v23  ;;  %v5618_v37 = vld [vmem:[%s8744_s18] ss:$0 sm:$0xff] }
0x10f8   : > { %v4944_v13 = vld [vmem:[%s4943_s19] sm:$0x1]  ;;  %v5612_v9 = vld [vmem:[%s5232_s22 + $0x10] sm:$0x1] }
0x10f9   : > { %v5614_v18 = vld [vmem:[%s5234_s14 + $0x20] sm:$0x1]  ;;  %v4961_v59 = vrot.slane %v5612_v9, 7  ;;  %v5616_v17 = vld [vmem:[%s5236_s0 + $0x30] sm:$0x1]  ;;  %6086 = vmatpush3.bf16.msra.mxu0 %v6684_v35 }
0x10fa   : > { %v4964_v27 = vrot.slane %v5614_v18, 6  ;;  %v4967_v49 = vrot.slane %v5616_v17, 5  ;;  %6087 = vmatprep.subr.bf16.mxu0 %v7094_v23 }
0x10fb   : > { %v4970_v48 = vsel %vm4969_vm9, %v4944_v13, %v4961_v59 }
0x10fc   : > { %v4972_v47 = vsel %vm4971_vm10, %v4970_v48, %v4964_v27 }
0x10fd   : > { %v4974_v38 = vsel %vm4973_vm11, %v4972_v47, %v4967_v49  ;;  %6088 = vmatpush3.bf16.msra.mxu0 %v6685_v11 }
0x10fe   : > { %v4978_v6 = vsel %vm4977_vm12, %v4974_v38, 0.0  ;;  %6089 = vmatprep.subr.bf16.mxu0 %v7094_v23 }
0x10ff   : > { %4979 = vadd.xlane.f32.xlu0 %v4978_v6 }
0x1101   : > { %6090 = vmatpush3.bf16.msra.mxu0 %v6686_v29 }
0x1102   : > { %6091 = vmatprep.subr.bf16.mxu0 %v7094_v23 }
0x1105   : > { %6092 = vmatpush3.bf16.msra.mxu0 %v6687_v50 }
0x1106   : > { %6093 = vmatprep.subr.bf16.mxu0 %v7094_v23 }
0x1109   : > { %6094 = vmatpush3.bf16.msra.mxu0 %v6688_v34 }
0x110a   : > { %6095 = vmatprep.subr.bf16.mxu0 %v7094_v23 }
0x110d   : > { %6096 = vmatpush3.bf16.msra.mxu0 %v6689_v30 }
0x110e   : > { %6097 = vmatprep.subr.bf16.mxu0 %v7094_v23 }
0x1111   : > { %6098 = vmatpush3.bf16.msra.mxu0 %v6690_v61 }
0x1188   : > { %v4980_v63 = vpop.xlane.xlu0 %4979 }
0x1189   : > { %v4981_v44 = vmul.f32 0.0078125, %v4980_v63 }
0x118b   : > { %v4982_v26 = vsub.f32 %v4974_v38, %v4981_v44 }
0x118d   : > { %v4983_v53 = vmul.f32 %v4982_v26, %v4982_v26 }
0x118f   : > { %v4984_v4 = vsel %vm4977_vm12, %v4983_v53, 0.0 }
0x1190   : > { %4985 = vadd.xlane.f32.xlu0 %v4984_v4 }
0x1219   : > { %v4986_v62 = vpop.xlane.xlu0 %4985 }
0x121a   : > { %v4987_v43 = vmul.f32 0.0078125, %v4986_v62 }
0x121c   : > { %v4988_v51 = vadd.f32 1e-05, %v4987_v43 }
0x121e   : > { %6691 = vrsqrt.f32 %v4988_v51 }
0x122b   : > { %v6692_v39 = vpop.eup %6691 }
0x122c   : > { %v4990_v19 = vmul.f32 %v6692_v39, %v4982_v26 }
0x122e   : > { %v4997_v16 = vmul.f32 %v5617_v41, %v4990_v19 }
0x1230   : > { %v5004_v33 = vadd.f32 %v5618_v37, %v4997_v16 }
0x1232   : > { %v5005_v7 = vpack.c.bf16 %v5004_v33, %v5004_v33 }
0x1234   : > { %6100 = vmatmul.mubr.bf16.vlgmr.msra.gmra.mxu0 %v5005_v7 }
0x12f4   : > { %v5104_v20 = vpop.f32.mrf.mxu0 }
0x12f5   : > { %5110 = vst [vmem:[#allocation19] sm:$0xf] %v5104_v20 }
0x12f6   : > { %v6101_v32 = vpop.f32.mrf.mxu0 }
0x12f8   : > { %v5107_v60 = vpop.f32.mrf.mxu0 }
0x12fa   : > { %v6102_v1 = vpop.f32.mrf.mxu0 }
0x12fb PF: > { %p6192_p1 = scmp.eq.s32.totalorder %s7224_s12, 1  ;;  %s7096_s6 = smov [#allocation19]  }
0x12fc   : > { %s5120_s2 = sshll.u32 %s7096_s6, 4  ;;  %s5121_s2 = int_to_ptr.vmem [resolvable:$true] %s5120_s2 }
0x12fd   : > { %s6975_s30 = scalar_lea.vmem %s5121_s2, 64  ;;  %p6982_p9 = scmp.lt.s32.totalorder %s5121_s2, %s5121_s2 }
0x12fe   : > { %p6976_p2 = scmp.ne.s32.totalorder %s5121_s2, %s6975_s30  ;;  %p6983_p11 = scmp.lt.s32.totalorder %s6975_s30, %s6975_s30 }
0x1300   : > { %p6977_p5 = pnand %p6976_p2, %p6192_p1  ;;  %p6984_p10 = por %p6983_p11, %p6982_p9 }
0x1302   : > { %p6978_p7 = pneg %p6977_p5 }
0x1304   : > { %p6985_p4 = pnand %p6984_p10, %p6978_p7 }
0x1306   : > { %6988 = shalt.err (!%p6985_p4)
}
0x1307   : > { %s8745_s1 = sld [smem:[#allocation48_spill]] }
0x130d   : > { %6150 = dma.vmem_to_hbm [thread:$0]  (%p6192_p1), %s5121_s2, 64, %s8745_s1, [#allocation8]  }
0x130e   : > { %7042 = dma.done.wait (%p6192_p1), [#allocation8], 64  }
0x130f   : > { %7044 = vsyncadd (%p6192_p1), [#allocation8], 4294967232 }
0x1310 PF: > { %s8746_s25 = sld [smem:[#allocation29_spill]]  ;;  %s8751_s1 = smov %s7063_s20 }
0x1311   : > { %s8747_s30 = sld [smem:[#allocation26_spill]] }
0x1312   : > { %s8748_s0 = sld [smem:[#allocation27_spill]] }
0x1313   : > { %s8749_s19 = sld [smem:[#allocation32_spill]] }
0x1314   : > { %s8750_s26 = sld [smem:[#allocation31_spill]] }
0x1316   : > { %s35_s21 = sadd.s32 1, %s8746_s25  }
0x1317   : > { %p32_p3 = scmp.ge.s32.totalorder %s35_s21, 4  }
0x1319   :  { %34 = sbr.rel (!%p32_p3) target bundleno = 32 (0x20), region = 231 }
0x131a   : > { %s8752_s20 = smov %s8750_s26 }
0x131e   :  { %5133 = vsyncpa [#allocation7], 1 }
0x131f   :  { %5135 = vsyncpa [#allocation7 + $0x1], 1 }
0x1320   :  { %5136 = vsyncpa [#allocation10], 1 }
0x1321   :  { %5137 = vsyncpa [#allocation8], 1 }
0x1322   :  { %5139 = vsyncpa [#allocation8 + $0x1], 1 }

</bundles_post_ra>
